<compile_context>
chip_gen: v7x
topology: tpu7x:2x2x1
jax: 0.10.0
libtpu: 0.0.40
codegen_flags: <defaults>
</compile_context>

<pallas_src>
import functools

import jax
import jax.numpy as jnp
from jax.experimental import pallas as pl
from jax.experimental.pallas import tpu as pltpu


_SMALL_M = 64          # below this, per-call overhead dominates -> XLA path


def _round_up(x, m):
    return (x + m - 1) // m * m


# ------------------------------------------------------------------
# Fused matmul kernel (MXU) with f32 epilogue + per-tile BN stats
# ------------------------------------------------------------------
def _mm_kernel(*refs, relu, has_scale, has_shift, has_res, has_stats):
    it = iter(refs)
    a_ref = next(it)                       # (tm, K)   bf16
    b_ref = next(it)                       # (K, Nc)   bf16
    scale_ref = next(it) if has_scale else None     # (1, Nc) f32
    shift_ref = next(it) if has_shift else None     # (1, Nc) f32
    res_ref = rscale_ref = None
    if has_res:
        res_ref = next(it)                 # (tm, Nc)  bf16
        rscale_ref = next(it)              # (1, Nc)   f32
    o_ref = next(it)                       # (tm, Nc)  bf16/f32
    s_ref = q_ref = None
    if has_stats:
        s_ref = next(it)                   # (1, Nc)   f32  (per-tile partial)
        q_ref = next(it)                   # (1, Nc)   f32

    acc = jnp.dot(a_ref[...], b_ref[...], preferred_element_type=jnp.float32)

    if has_stats:
        # padded M rows are zero -> contribute exactly zero (invariant).
        s_ref[...] = jnp.sum(acc, axis=0, keepdims=True)
        q_ref[...] = jnp.sum(acc * acc, axis=0, keepdims=True)

    y = acc                                # all epilogue math in f32 (v5e VPU)
    if has_scale:
        y = y * scale_ref[...]
    if has_shift:
        y = y + shift_ref[...]
    if has_res:
        y = y + res_ref[...].astype(jnp.float32) * rscale_ref[...]
    if relu:
        y = jnp.maximum(y, 0.0)
    o_ref[...] = y.astype(o_ref.dtype)


def fused_matmul(a, b, scale=None, shift=None, residual=None, res_scale=None,
                 relu=False, want_stats=False, out_dtype=jnp.bfloat16,
                 tm_max=512):
    """y = maybe_relu(a @ b [*scale] [+shift] [+ residual*res_scale]).

    a:(M,K), b:(K,Nc); scale/shift/res_scale:(Nc,); residual:(M,Nc).
    If want_stats also returns per-column sum / sum-of-squares of raw a@b.
    Operands are cast to bf16; accumulation and epilogue stay f32.
    """
    M, K = a.shape
    K2, Nc = b.shape
    assert K == K2
    a = a.astype(jnp.bfloat16)
    b = b.astype(jnp.bfloat16)

    if M < _SMALL_M:
        # Tiny deep layers: launch overhead > work; let XLA handle them.
        acc = jnp.dot(a.astype(jnp.float32), b.astype(jnp.float32))
        y = acc
        if scale is not None:
            y = y * scale
        if shift is not None:
            y = y + shift
        if residual is not None:
            y = y + residual.astype(jnp.float32) * res_scale
        if relu:
            y = jnp.maximum(y, 0.0)
        y = y.astype(out_dtype)
        if want_stats:
            return y, jnp.sum(acc, axis=0), jnp.sum(acc * acc, axis=0)
        return y

    Mp = _round_up(M, 8)
    if Mp <= tm_max:
        tm = Mp
    else:
        tm = tm_max
        Mp = _round_up(M, tm)
    nt = Mp // tm

    a_p = jnp.pad(a, ((0, Mp - M), (0, 0)))     # bf16, rows only; K unpadded

    has_scale = scale is not None
    has_shift = shift is not None
    has_res = residual is not None

    inputs = [a_p, b]
    in_specs = [pl.BlockSpec((tm, K), lambda i: (i, 0)),
                pl.BlockSpec((K, Nc), lambda i: (0, 0))]
    if has_scale:
        inputs.append(jnp.reshape(scale, (1, Nc)).astype(jnp.float32))
        in_specs.append(pl.BlockSpec((1, Nc), lambda i: (0, 0)))
    if has_shift:
        inputs.append(jnp.reshape(shift, (1, Nc)).astype(jnp.float32))
        in_specs.append(pl.BlockSpec((1, Nc), lambda i: (0, 0)))
    if has_res:
        res_p = jnp.pad(residual.astype(jnp.bfloat16), ((0, Mp - M), (0, 0)))
        inputs += [res_p, jnp.reshape(res_scale, (1, Nc)).astype(jnp.float32)]
        in_specs += [pl.BlockSpec((tm, Nc), lambda i: (i, 0)),
                     pl.BlockSpec((1, Nc), lambda i: (0, 0))]

    if want_stats:
        # Per-M-tile partial sums (reduced in XLA) -> grid axis stays
        # 'parallel' so v7x's two TensorCores can split the M loop.
        out_shape = (jax.ShapeDtypeStruct((Mp, Nc), out_dtype),
                     jax.ShapeDtypeStruct((nt, 1, Nc), jnp.float32),
                     jax.ShapeDtypeStruct((nt, 1, Nc), jnp.float32))
        out_specs = (pl.BlockSpec((tm, Nc), lambda i: (i, 0)),
                     pl.BlockSpec((None, 1, Nc), lambda i: (i, 0, 0)),
                     pl.BlockSpec((None, 1, Nc), lambda i: (i, 0, 0)))
    else:
        out_shape = jax.ShapeDtypeStruct((Mp, Nc), out_dtype)
        out_specs = pl.BlockSpec((tm, Nc), lambda i: (i, 0))

    kernel = functools.partial(_mm_kernel, relu=relu, has_scale=has_scale,
                               has_shift=has_shift, has_res=has_res,
                               has_stats=want_stats)
    out = pl.pallas_call(
        kernel,
        out_shape=out_shape,
        grid=(nt,),
        in_specs=in_specs,
        out_specs=out_specs,
        compiler_params=pltpu.CompilerParams(
            dimension_semantics=("parallel",)),
    )(*inputs)

    if want_stats:
        y, s, q = out
        return y[:M], jnp.sum(s, axis=(0, 1)), jnp.sum(q, axis=(0, 1))
    return out[:M]


# ------------------------------------------------------------------
# Direct 3x3 stride-1 conv kernel: 9 taps accumulated in-kernel, no im2col
# ------------------------------------------------------------------
def _conv3x3_kernel(x_ref, w_ref, mask_ref, o_ref, s_ref, q_ref, *, W, C):
    # x_ref: (Rin, C) f32 flat padded activation for one image
    # w_ref: (9*C, Cout) f32 ; mask_ref: (Rout, 1) f32 valid-column mask
    # o_ref: (Rout, Cout) bf16 ; s_ref/q_ref: (1, Cout) f32
    Wp = W + 2
    Rout = o_ref.shape[0]
    acc = None
    for di in range(3):
        for dj in range(3):
            off = di * Wp + dj                              # static offset
            a = x_ref[pl.ds(off, Rout), :]                  # shifted window
            wt = w_ref[pl.ds((di * 3 + dj) * C, C), :]
            part = jnp.dot(a, wt, preferred_element_type=jnp.float32)
            acc = part if acc is None else acc + part
    m = mask_ref[...]
    masked = acc * m                                        # stats over valid cols only
    s_ref[...] = jnp.sum(masked, axis=0, keepdims=True)
    q_ref[...] = jnp.sum(masked * acc, axis=0, keepdims=True)
    o_ref[...] = acc.astype(o_ref.dtype)


def conv3x3_direct(x, w, pre_scale=None, pre_shift=None, pre_relu=False):
    """3x3 / stride 1 / pad 1 conv, no bias.  Returns (y(N,H,W,Cout) bf16,
    per-channel sum, per-channel sum-of-squares) of the raw conv output.
    The optional per-channel affine(+ReLU) is applied to the INPUT (folds the
    previous BatchNorm) in the XLA producer pass.

    Taps are accumulated inside the kernel from a flat padded activation
    buffer (rows = padded spatial positions), so there is no 9x im2col
    materialization.  The two right-most "columns" of each flat row are
    garbage (row-stride trick) and are masked out of the stats and cropped
    from the output.  The tap buffer is kept f32 so sublane-unaligned tap
    slices stay on the well-supported 32-bit path.
    """
    N, H, W, C = x.shape
    Cout = w.shape[-1]
    xf = x.astype(jnp.float32)
    if pre_scale is not None:
        xf = xf * pre_scale + pre_shift
    if pre_relu:
        xf = jnp.maximum(xf, 0.0)

    if N * H * W < _SMALL_M:
        y = jax.lax.conv_general_dilated(
            xf, w.astype(jnp.float32), (1, 1), 'SAME',
            dimension_numbers=('NHWC', 'HWIO', 'NHWC'))
        return (y.astype(jnp.bfloat16),
                jnp.sum(y, axis=(0, 1, 2)), jnp.sum(y * y, axis=(0, 1, 2)))

    Wp = W + 2
    Rout = H * Wp                       # valid rows: all H, first W cols valid
    Rin = (H + 2) * Wp + 8              # + slack for the largest tap offset

    xpad = jnp.pad(xf, ((0, 0), (1, 1), (1, 1), (0, 0)))        # (N,H+2,W+2,C)
    Xf = xpad.reshape(N, (H + 2) * Wp, C)
    Xf = jnp.pad(Xf, ((0, 0), (0, Rin - (H + 2) * Wp), (0, 0)))
    wf = w.reshape(9 * C, Cout).astype(jnp.float32)
    mask = (jnp.arange(Rout) % Wp < W).astype(jnp.float32).reshape(Rout, 1)

    # TODO(synk): add an H-tile grid axis (halo via manual DMA) for very large
    # images; one image per grid step is plenty for the resolutions used here.
    kernel = functools.partial(_conv3x3_kernel, W=W, C=C)
    zf, s, q = pl.pallas_call(
        kernel,
        out_shape=(jax.ShapeDtypeStruct((N, Rout, Cout), jnp.bfloat16),
                   jax.ShapeDtypeStruct((N, 1, Cout), jnp.float32),
                   jax.ShapeDtypeStruct((N, 1, Cout), jnp.float32)),
        grid=(N,),
        in_specs=[pl.BlockSpec((None, Rin, C), lambda n: (n, 0, 0)),
                  pl.BlockSpec((9 * C, Cout), lambda n: (0, 0)),
                  pl.BlockSpec((Rout, 1), lambda n: (0, 0))],
        out_specs=(pl.BlockSpec((None, Rout, Cout), lambda n: (n, 0, 0)),
                   pl.BlockSpec((None, 1, Cout), lambda n: (n, 0, 0)),
                   pl.BlockSpec((None, 1, Cout), lambda n: (n, 0, 0))),
        compiler_params=pltpu.CompilerParams(
            dimension_semantics=("parallel",)),
    )(Xf, wf, mask)

    y = zf.reshape(N, H, Wp, Cout)[:, :, :W, :]          # crop garbage cols
    return y, jnp.sum(s, axis=(0, 1)), jnp.sum(q, axis=(0, 1))


# ------------------------------------------------------------------
# Lane-dense classifier kernel: output (ncls, M) with M on the lane axis
# ------------------------------------------------------------------
def _cls_kernel(w_ref, z_ref, b_ref, o_ref):
    o_ref[...] = (jnp.dot(w_ref[...], z_ref[...],
                          preferred_element_type=jnp.float32) + b_ref[...])


def classifier_lane_dense(z, w, b, tm_lane=512):
    """1x1-conv classifier computed transposed so stores are unmasked and
    lane-dense, and the final NCHW layout needs only a cheap chunk permute."""
    N, H, W, C = z.shape
    M = N * H * W
    ncls = w.shape[1]
    Np = _round_up(ncls, 8)

    zT = z.reshape(M, C).astype(jnp.bfloat16).T                  # (C, M)
    tM = min(tm_lane, _round_up(M, 128))
    Mp = _round_up(M, tM)
    zT = jnp.pad(zT, ((0, 0), (0, Mp - M)))
    wT = jnp.pad(w.T.astype(jnp.bfloat16), ((0, Np - ncls), (0, 0)))  # (Np, C)
    bp = jnp.pad(b.astype(jnp.float32).reshape(ncls, 1),
                 ((0, Np - ncls), (0, 0)))                            # (Np, 1)

    out = pl.pallas_call(
        _cls_kernel,
        out_shape=jax.ShapeDtypeStruct((Np, Mp), jnp.float32),
        grid=(Mp // tM,),
        in_specs=[pl.BlockSpec((Np, C), lambda i: (0, 0)),
                  pl.BlockSpec((C, tM), lambda i: (0, i)),
                  pl.BlockSpec((Np, 1), lambda i: (0, 0))],
        out_specs=pl.BlockSpec((Np, tM), lambda i: (0, i)),
        compiler_params=pltpu.CompilerParams(
            dimension_semantics=("parallel",)),
    )(wT, zT, bp)

    out = out[:ncls, :M].reshape(ncls, N, H, W)
    return jnp.transpose(out, (1, 0, 2, 3))          # contiguous-chunk permute


# ------------------------------------------------------------------
# XLA glue: stride-2 patch gather (c1 only) and BatchNorm folding
# ------------------------------------------------------------------
def im2col(x, k, stride, pad):
    """NHWC -> (N*OH*OW, k*k*C) in bf16.  Only used for the stride-2 c1 convs
    (blow-up there is ~2.25x, not 9x).
    TODO(synk): fold the stride-2 taps into the kernel as well."""
    N, H, W, C = x.shape
    xp = jnp.pad(x.astype(jnp.bfloat16), ((0, 0), (pad, pad), (pad, pad), (0, 0)))
    OH = (H + 2 * pad - k) // stride + 1
    OW = (W + 2 * pad - k) // stride + 1
    patches = [xp[:, di:di + stride * OH:stride, dj:dj + stride * OW:stride, :]
               for di in range(k) for dj in range(k)]
    cols = jnp.stack(patches, axis=3)            # (N, OH, OW, k*k, C)
    return cols.reshape(N * OH * OW, k * k * C), (N, OH, OW)


def bn_scale_shift(s, q, count, gamma, beta, eps=1e-5):
    """Train-mode BatchNorm (biased variance) folded to y = x*scale + shift."""
    mean = s / count
    var = jnp.maximum(q / count - mean * mean, 0.0)
    scale = gamma * jax.lax.rsqrt(var + eps)
    shift = beta - mean * scale
    return scale, shift


# ------------------------------------------------------------------
# FCN building blocks
# ------------------------------------------------------------------
def down_block(x, p):
    """relu(bn3(c3(relu(bn2(c2(relu(bn1(c1(x)))))))) + skip(x))."""
    cout = p['c1'].shape[-1]

    # c1 (3x3, stride 2, no bias): raw conv + per-channel stats
    cols, (N, OH, OW) = im2col(x, 3, 2, 1)
    m = N * OH * OW
    y1, s1, q1 = fused_matmul(cols, p['c1'].reshape(-1, cout), want_stats=True)
    sc1, sh1 = bn_scale_shift(s1, q1, m, p['g1'], p['be1'])

    # c2 / c3 (3x3, stride 1): direct-conv kernel; previous BN affine + ReLU
    # folded into the tap-buffer producer.
    y2, s2, q2 = conv3x3_direct(y1.reshape(N, OH, OW, cout), p['c2'],
                                pre_scale=sc1, pre_shift=sh1, pre_relu=True)
    sc2, sh2 = bn_scale_shift(s2, q2, m, p['g2'], p['be2'])

    y3, s3, q3 = conv3x3_direct(y2, p['c3'],
                                pre_scale=sc2, pre_shift=sh2, pre_relu=True)
    sc3, sh3 = bn_scale_shift(s3, q3, m, p['g3'], p['be3'])

    # skip (1x1, stride 2, bias) with BN3 affine + residual add + ReLU fused
    # into its epilogue:  relu(skip(x) + b_skip + sh3 + y3 * sc3)
    xs = x[:, ::2, ::2, :].reshape(m, -1)
    out = fused_matmul(xs, p['skip_w'].reshape(-1, cout),
                       shift=p['skip_b'] + sh3,
                       residual=y3.reshape(m, cout), res_scale=sc3, relu=True)
    return out.reshape(N, OH, OW, cout)


def up_block(z, w, b):
    """ConvTranspose2d(k=3, stride=2, pad=1, output_padding=1) + bias + ReLU as
    one sub-pixel matmul (4 input taps -> 4 output parities), no zero-dilation.
    """
    N, H, W, Cin = z.shape
    Cout = w.shape[-1]
    zp = jnp.pad(z, ((0, 0), (0, 1), (0, 1), (0, 0)))
    taps = jnp.concatenate([zp[:, :H, :W, :], zp[:, :H, 1:W + 1, :],
                            zp[:, 1:H + 1, :W, :], zp[:, 1:H + 1, 1:W + 1, :]],
                           axis=-1)
    A = taps.reshape(N * H * W, 4 * Cin)

    # out[2my+ry, 2mx+rx] contributions (group g = 2*ry + rx, w is (kh,kw,ci,co))
    B4 = jnp.zeros((4, Cin, 4, Cout), jnp.float32)
    B4 = B4.at[0, :, 0, :].set(w[1, 1])                       # (even, even)
    B4 = B4.at[0, :, 1, :].set(w[1, 2])                       # (even, odd)
    B4 = B4.at[1, :, 1, :].set(w[1, 0])
    B4 = B4.at[0, :, 2, :].set(w[2, 1])                       # (odd, even)
    B4 = B4.at[2, :, 2, :].set(w[0, 1])
    B4 = B4.at[0, :, 3, :].set(w[2, 2])                       # (odd, odd)
    B4 = B4.at[1, :, 3, :].set(w[2, 0])
    B4 = B4.at[2, :, 3, :].set(w[0, 2])
    B4 = B4.at[3, :, 3, :].set(w[0, 0])
    Bm = B4.reshape(4 * Cin, 4 * Cout)

    y = fused_matmul(A, Bm, shift=jnp.tile(b, 4), relu=True)   # (M, 4*Cout) bf16
    # TODO(synk): scatter the 4 output parities straight from the kernel
    # epilogue (strided output placement) so this XLA de-interleave pass,
    # now bf16, disappears entirely.
    y = y.reshape(N, H, W, 2, 2, Cout).transpose(0, 1, 3, 2, 4, 5)
    return y.reshape(N, 2 * H, 2 * W, Cout)


def detector_forward(params, x_nchw):
    # NCHW -> NHWC
    x = jnp.transpose(x_nchw, (0, 2, 3, 1)).astype(jnp.float32)
    mean = jnp.array([0.2788, 0.2657, 0.2629], jnp.float32)
    std = jnp.array([0.2064, 0.1944, 0.2252], jnp.float32)
    z = (x - mean) / std

    n_conv = 4
    ups = []
    for i in range(n_conv):
        ups.append(z)
        z = down_block(z, params['conv%d' % i])
    for i in reversed(range(n_conv)):
        p = params['upconv%d' % i]
        z = up_block(z, p['w'], p['b'])
        z = z[:, :ups[i].shape[1], :ups[i].shape[2], :]
        z = jnp.concatenate([z, ups[i].astype(z.dtype)], axis=-1)

    # classifier: 1x1 conv (K=19, Cout=3), transposed/lane-dense, bias fused
    return classifier_lane_dense(z, params['cls_w'], params['cls_b'])


# ------------------------------------------------------------------
# Deterministic parameter init (shapes from FCN.__init__)
# ------------------------------------------------------------------
def init_params(key):
    layers = [16, 32, 64, 128]
    n_out = 3
    keys = iter(jax.random.split(key, 64))

    def rnd(shape, scale=0.1):
        return jax.random.normal(next(keys), shape, jnp.float32) * scale

    params = {}
    c = 3
    for i, l in enumerate(layers):
        params['conv%d' % i] = {
            'c1': rnd((3, 3, c, l)),
            'c2': rnd((3, 3, l, l)),
            'c3': rnd((3, 3, l, l)),
            'g1': jnp.ones((l,), jnp.float32), 'be1': jnp.zeros((l,), jnp.float32),
            'g2': jnp.ones((l,), jnp.float32), 'be2': jnp.zeros((l,), jnp.float32),
            'g3': jnp.ones((l,), jnp.float32), 'be3': jnp.zeros((l,), jnp.float32),
            'skip_w': rnd((1, 1, c, l)),
            'skip_b': rnd((l,)),
        }
        c = l

    skip_layer_size = [3] + layers[:-1]
    for i, l in list(enumerate(layers))[::-1]:
        params['upconv%d' % i] = {'w': rnd((3, 3, c, l)), 'b': rnd((l,))}
        c = l + skip_layer_size[i]

    params['cls_w'] = rnd((c, n_out))           # 1x1 conv: (19, 3)
    params['cls_b'] = rnd((n_out,))
    return params


if __name__ == "__main__":
    key = jax.random.PRNGKey(0)
    pkey, xkey = jax.random.split(key)
    params = init_params(pkey)
    x = jax.random.uniform(xkey, (2, 3, 16, 16), jnp.float32)  # NCHW like PyTorch

    fwd = jax.jit(detector_forward)
    y = fwd(params, x)
    jax.block_until_ready(y)
    assert y.shape == (2, 3, 16, 16), y.shape
    assert y.dtype == jnp.float32
    print("KERNEL_OK")
</pallas_src>

<mosaic_0001>
module attributes {stable_mosaic.version = 11 : i64} {
  func.func @_mm_kernel(%arg0: i32, %arg1: memref<128x27xbf16, #tpu.memory_space<vmem>>, %arg2: memref<27x16xbf16, #tpu.memory_space<vmem>>, %arg3: memref<128x16xbf16, #tpu.memory_space<vmem>>, %arg4: memref<1x1x16xf32, #tpu.memory_space<vmem>>, %arg5: memref<1x1x16xf32, #tpu.memory_space<vmem>>) attributes {dimension_semantics = [#tpu.dimension_semantics<parallel>], iteration_bounds = array<i64: 1>, scalar_prefetch = 0 : i64, scratch_operands = 0 : i64, tpu.core_type = #tpu.core_type<tc>, window_params = [{transform_indices = @transform_0, window_bounds = array<i64: 128, 27>}, {pipeline_mode = #tpu.pipeline_mode<synchronous>, transform_indices = @transform_1, window_bounds = array<i64: 27, 16>}, {transform_indices = @transform_2, window_bounds = array<i64: 128, 16>}, {transform_indices = @transform_3, window_bounds = array<i64: 1, 1, 16>}, {transform_indices = @transform_4, window_bounds = array<i64: 1, 1, 16>}]} {
    %c0 = arith.constant 0 : index
    %c0_0 = arith.constant 0 : index
    %0 = vector.load %arg1[%c0, %c0_0] : memref<128x27xbf16, #tpu.memory_space<vmem>>, vector<128x27xbf16>
    %c0_1 = arith.constant 0 : index
    %c0_2 = arith.constant 0 : index
    %1 = vector.load %arg2[%c0_1, %c0_2] : memref<27x16xbf16, #tpu.memory_space<vmem>>, vector<27x16xbf16>
    %cst = arith.constant dense<0.000000e+00> : vector<128x16xf32>
    %2 = tpu.matmul %0, %1, %cst {dimension_numbers = #tpu.dot_dimension_numbers<[1], [0], [0], [1], [0, 0, 1, 1], [], []>} : vector<128x27xbf16>, vector<27x16xbf16>, vector<128x16xf32> -> vector<128x16xf32>
    %cst_3 = arith.constant dense<0.000000e+00> : vector<16xf32>
    %3 = vector.multi_reduction <add>, %2, %cst_3 [0] : vector<128x16xf32> to vector<16xf32>
    %4 = vector.shape_cast %3 : vector<16xf32> to vector<1x16xf32>
    %c0_4 = arith.constant 0 : index
    %c0_5 = arith.constant 0 : index
    %c0_6 = arith.constant 0 : index
    %5 = vector.load %arg4[%c0_4, %c0_5, %c0_6] : memref<1x1x16xf32, #tpu.memory_space<vmem>>, vector<1x1x16xf32>
    %6 = vector.shape_cast %5 : vector<1x1x16xf32> to vector<1x16xf32>
    %7 = vector.shape_cast %4 : vector<1x16xf32> to vector<1x1x16xf32>
    tpu.vector_store %arg4[%c0_4, %c0_5, %c0_6], %7 {strides = array<i32>} : memref<1x1x16xf32, #tpu.memory_space<vmem>>, vector<1x1x16xf32>,
    %8 = arith.mulf %2, %2 : vector<128x16xf32>
    %cst_7 = arith.constant dense<0.000000e+00> : vector<16xf32>
    %9 = vector.multi_reduction <add>, %8, %cst_7 [0] : vector<128x16xf32> to vector<16xf32>
    %10 = vector.shape_cast %9 : vector<16xf32> to vector<1x16xf32>
    %c0_8 = arith.constant 0 : index
    %c0_9 = arith.constant 0 : index
    %c0_10 = arith.constant 0 : index
    %11 = vector.load %arg5[%c0_8, %c0_9, %c0_10] : memref<1x1x16xf32, #tpu.memory_space<vmem>>, vector<1x1x16xf32>
    %12 = vector.shape_cast %11 : vector<1x1x16xf32> to vector<1x16xf32>
    %13 = vector.shape_cast %10 : vector<1x16xf32> to vector<1x1x16xf32>
    tpu.vector_store %arg5[%c0_8, %c0_9, %c0_10], %13 {strides = array<i32>} : memref<1x1x16xf32, #tpu.memory_space<vmem>>, vector<1x1x16xf32>,
    %14 = arith.truncf %2 : vector<128x16xf32> to vector<128x16xbf16>
    %c0_11 = arith.constant 0 : index
    %c0_12 = arith.constant 0 : index
    %15 = vector.load %arg3[%c0_11, %c0_12] : memref<128x16xbf16, #tpu.memory_space<vmem>>, vector<128x16xbf16>
    tpu.vector_store %arg3[%c0_11, %c0_12], %14 {strides = array<i32>} : memref<128x16xbf16, #tpu.memory_space<vmem>>, vector<128x16xbf16>,
    return
  }
  func.func @transform_0(%arg0: i32) -> (i32, i32) {
    %c0_i32 = arith.constant 0 : i32
    %c0_i32_0 = arith.constant 0 : i32
    return %arg0, %c0_i32 : i32, i32
  }
  func.func @transform_1(%arg0: i32) -> (i32, i32) {
    %c0_i32 = arith.constant 0 : i32
    %c0_i32_0 = arith.constant 0 : i32
    %c0_i32_1 = arith.constant 0 : i32
    return %c0_i32, %c0_i32_0 : i32, i32
  }
  func.func @transform_2(%arg0: i32) -> (i32, i32) {
    %c0_i32 = arith.constant 0 : i32
    %c0_i32_0 = arith.constant 0 : i32
    return %arg0, %c0_i32 : i32, i32
  }
  func.func @transform_3(%arg0: i32) -> (i32, i32, i32) {
    %c0_i32 = arith.constant 0 : i32
    %c0_i32_0 = arith.constant 0 : i32
    %c0_i32_1 = arith.constant 0 : i32
    return %arg0, %c0_i32, %c0_i32_0 : i32, i32, i32
  }
  func.func @transform_4(%arg0: i32) -> (i32, i32, i32) {
    %c0_i32 = arith.constant 0 : i32
    %c0_i32_0 = arith.constant 0 : i32
    %c0_i32_1 = arith.constant 0 : i32
    return %arg0, %c0_i32, %c0_i32_0 : i32, i32, i32
  }
}

module attributes {stable_mosaic.version = 11 : i64} {
  func.func @_conv3x3_kernel(%arg0: i32, %arg1: memref<1x108x16xf32, #tpu.memory_space<vmem>>, %arg2: memref<144x16xf32, #tpu.memory_space<vmem>>, %arg3: memref<80x1xf32, #tpu.memory_space<vmem>>, %arg4: memref<1x80x16xbf16, #tpu.memory_space<vmem>>, %arg5: memref<1x1x16xf32, #tpu.memory_space<vmem>>, %arg6: memref<1x1x16xf32, #tpu.memory_space<vmem>>) attributes {dimension_semantics = [#tpu.dimension_semantics<parallel>], iteration_bounds = array<i64: 2>, scalar_prefetch = 0 : i64, scratch_operands = 0 : i64, tpu.core_type = #tpu.core_type<tc>, window_params = [{transform_indices = @transform_0, window_bounds = array<i64: 1, 108, 16>}, {pipeline_mode = #tpu.pipeline_mode<synchronous>, transform_indices = @transform_1, window_bounds = array<i64: 144, 16>}, {pipeline_mode = #tpu.pipeline_mode<synchronous>, transform_indices = @transform_2, window_bounds = array<i64: 80, 1>}, {transform_indices = @transform_3, window_bounds = array<i64: 1, 80, 16>}, {transform_indices = @transform_4, window_bounds = array<i64: 1, 1, 16>}, {transform_indices = @transform_5, window_bounds = array<i64: 1, 1, 16>}]} {
    %c0 = arith.constant 0 : index
    %c0_0 = arith.constant 0 : index
    %c0_1 = arith.constant 0 : index
    %0 = vector.load %arg1[%c0, %c0_0, %c0_1] : memref<1x108x16xf32, #tpu.memory_space<vmem>>, vector<1x80x16xf32>
    %1 = vector.shape_cast %0 : vector<1x80x16xf32> to vector<80x16xf32>
    %c0_2 = arith.constant 0 : index
    %c0_3 = arith.constant 0 : index
    %2 = vector.load %arg2[%c0_2, %c0_3] : memref<144x16xf32, #tpu.memory_space<vmem>>, vector<16x16xf32>
    %cst = arith.constant dense<0.000000e+00> : vector<80x16xf32>
    %3 = tpu.matmul %1, %2, %cst {dimension_numbers = #tpu.dot_dimension_numbers<[1], [0], [0], [1], [0, 0, 1, 1], [], []>} : vector<80x16xf32>, vector<16x16xf32>, vector<80x16xf32> -> vector<80x16xf32>
    %c0_4 = arith.constant 0 : index
    %c1 = arith.constant 1 : index
    %c0_5 = arith.constant 0 : index
    %4 = vector.load %arg1[%c0_4, %c1, %c0_5] : memref<1x108x16xf32, #tpu.memory_space<vmem>>, vector<1x80x16xf32>
    %5 = vector.shape_cast %4 : vector<1x80x16xf32> to vector<80x16xf32>
    %c16 = arith.constant 16 : index
    %c0_6 = arith.constant 0 : index
    %6 = vector.load %arg2[%c16, %c0_6] : memref<144x16xf32, #tpu.memory_space<vmem>>, vector<16x16xf32>
    %cst_7 = arith.constant dense<0.000000e+00> : vector<80x16xf32>
    %7 = tpu.matmul %5, %6, %cst_7 {dimension_numbers = #tpu.dot_dimension_numbers<[1], [0], [0], [1], [0, 0, 1, 1], [], []>} : vector<80x16xf32>, vector<16x16xf32>, vector<80x16xf32> -> vector<80x16xf32>
    %8 = arith.addf %3, %7 : vector<80x16xf32>
    %c0_8 = arith.constant 0 : index
    %c2 = arith.constant 2 : index
    %c0_9 = arith.constant 0 : index
    %9 = vector.load %arg1[%c0_8, %c2, %c0_9] : memref<1x108x16xf32, #tpu.memory_space<vmem>>, vector<1x80x16xf32>
    %10 = vector.shape_cast %9 : vector<1x80x16xf32> to vector<80x16xf32>
    %c32 = arith.constant 32 : index
    %c0_10 = arith.constant 0 : index
    %11 = vector.load %arg2[%c32, %c0_10] : memref<144x16xf32, #tpu.memory_space<vmem>>, vector<16x16xf32>
    %cst_11 = arith.constant dense<0.000000e+00> : vector<80x16xf32>
    %12 = tpu.matmul %10, %11, %cst_11 {dimension_numbers = #tpu.dot_dimension_numbers<[1], [0], [0], [1], [0, 0, 1, 1], [], []>} : vector<80x16xf32>, vector<16x16xf32>, vector<80x16xf32> -> vector<80x16xf32>
    %13 = arith.addf %8, %12 : vector<80x16xf32>
    %c0_12 = arith.constant 0 : index
    %c10 = arith.constant 10 : index
    %c0_13 = arith.constant 0 : index
    %14 = vector.load %arg1[%c0_12, %c10, %c0_13] : memref<1x108x16xf32, #tpu.memory_space<vmem>>, vector<1x80x16xf32>
    %15 = vector.shape_cast %14 : vector<1x80x16xf32> to vector<80x16xf32>
    %c48 = arith.constant 48 : index
    %c0_14 = arith.constant 0 : index
    %16 = vector.load %arg2[%c48, %c0_14] : memref<144x16xf32, #tpu.memory_space<vmem>>, vector<16x16xf32>
    %cst_15 = arith.constant dense<0.000000e+00> : vector<80x16xf32>
    %17 = tpu.matmul %15, %16, %cst_15 {dimension_numbers = #tpu.dot_dimension_numbers<[1], [0], [0], [1], [0, 0, 1, 1], [], []>} : vector<80x16xf32>, vector<16x16xf32>, vector<80x16xf32> -> vector<80x16xf32>
    %18 = arith.addf %13, %17 : vector<80x16xf32>
    %c0_16 = arith.constant 0 : index
    %c11 = arith.constant 11 : index
    %c0_17 = arith.constant 0 : index
    %19 = vector.load %arg1[%c0_16, %c11, %c0_17] : memref<1x108x16xf32, #tpu.memory_space<vmem>>, vector<1x80x16xf32>
    %20 = vector.shape_cast %19 : vector<1x80x16xf32> to vector<80x16xf32>
    %c64 = arith.constant 64 : index
    %c0_18 = arith.constant 0 : index
    %21 = vector.load %arg2[%c64, %c0_18] : memref<144x16xf32, #tpu.memory_space<vmem>>, vector<16x16xf32>
    %cst_19 = arith.constant dense<0.000000e+00> : vector<80x16xf32>
    %22 = tpu.matmul %20, %21, %cst_19 {dimension_numbers = #tpu.dot_dimension_numbers<[1], [0], [0], [1], [0, 0, 1, 1], [], []>} : vector<80x16xf32>, vector<16x16xf32>, vector<80x16xf32> -> vector<80x16xf32>
    %23 = arith.addf %18, %22 : vector<80x16xf32>
    %c0_20 = arith.constant 0 : index
    %c12 = arith.constant 12 : index
    %c0_21 = arith.constant 0 : index
    %24 = vector.load %arg1[%c0_20, %c12, %c0_21] : memref<1x108x16xf32, #tpu.memory_space<vmem>>, vector<1x80x16xf32>
    %25 = vector.shape_cast %24 : vector<1x80x16xf32> to vector<80x16xf32>
    %c80 = arith.constant 80 : index
    %c0_22 = arith.constant 0 : index
    %26 = vector.load %arg2[%c80, %c0_22] : memref<144x16xf32, #tpu.memory_space<vmem>>, vector<16x16xf32>
    %cst_23 = arith.constant dense<0.000000e+00> : vector<80x16xf32>
    %27 = tpu.matmul %25, %26, %cst_23 {dimension_numbers = #tpu.dot_dimension_numbers<[1], [0], [0], [1], [0, 0, 1, 1], [], []>} : vector<80x16xf32>, vector<16x16xf32>, vector<80x16xf32> -> vector<80x16xf32>
    %28 = arith.addf %23, %27 : vector<80x16xf32>
    %c0_24 = arith.constant 0 : index
    %c20 = arith.constant 20 : index
    %c0_25 = arith.constant 0 : index
    %29 = vector.load %arg1[%c0_24, %c20, %c0_25] : memref<1x108x16xf32, #tpu.memory_space<vmem>>, vector<1x80x16xf32>
    %30 = vector.shape_cast %29 : vector<1x80x16xf32> to vector<80x16xf32>
    %c96 = arith.constant 96 : index
    %c0_26 = arith.constant 0 : index
    %31 = vector.load %arg2[%c96, %c0_26] : memref<144x16xf32, #tpu.memory_space<vmem>>, vector<16x16xf32>
    %cst_27 = arith.constant dense<0.000000e+00> : vector<80x16xf32>
    %32 = tpu.matmul %30, %31, %cst_27 {dimension_numbers = #tpu.dot_dimension_numbers<[1], [0], [0], [1], [0, 0, 1, 1], [], []>} : vector<80x16xf32>, vector<16x16xf32>, vector<80x16xf32> -> vector<80x16xf32>
    %33 = arith.addf %28, %32 : vector<80x16xf32>
    %c0_28 = arith.constant 0 : index
    %c21 = arith.constant 21 : index
    %c0_29 = arith.constant 0 : index
    %34 = vector.load %arg1[%c0_28, %c21, %c0_29] : memref<1x108x16xf32, #tpu.memory_space<vmem>>, vector<1x80x16xf32>
    %35 = vector.shape_cast %34 : vector<1x80x16xf32> to vector<80x16xf32>
    %c112 = arith.constant 112 : index
    %c0_30 = arith.constant 0 : index
    %36 = vector.load %arg2[%c112, %c0_30] : memref<144x16xf32, #tpu.memory_space<vmem>>, vector<16x16xf32>
    %cst_31 = arith.constant dense<0.000000e+00> : vector<80x16xf32>
    %37 = tpu.matmul %35, %36, %cst_31 {dimension_numbers = #tpu.dot_dimension_numbers<[1], [0], [0], [1], [0, 0, 1, 1], [], []>} : vector<80x16xf32>, vector<16x16xf32>, vector<80x16xf32> -> vector<80x16xf32>
    %38 = arith.addf %33, %37 : vector<80x16xf32>
    %c0_32 = arith.constant 0 : index
    %c22 = arith.constant 22 : index
    %c0_33 = arith.constant 0 : index
    %39 = vector.load %arg1[%c0_32, %c22, %c0_33] : memref<1x108x16xf32, #tpu.memory_space<vmem>>, vector<1x80x16xf32>
    %40 = vector.shape_cast %39 : vector<1x80x16xf32> to vector<80x16xf32>
    %c128 = arith.constant 128 : index
    %c0_34 = arith.constant 0 : index
    %41 = vector.load %arg2[%c128, %c0_34] : memref<144x16xf32, #tpu.memory_space<vmem>>, vector<16x16xf32>
    %cst_35 = arith.constant dense<0.000000e+00> : vector<80x16xf32>
    %42 = tpu.matmul %40, %41, %cst_35 {dimension_numbers = #tpu.dot_dimension_numbers<[1], [0], [0], [1], [0, 0, 1, 1], [], []>} : vector<80x16xf32>, vector<16x16xf32>, vector<80x16xf32> -> vector<80x16xf32>
    %43 = arith.addf %38, %42 : vector<80x16xf32>
    %c0_36 = arith.constant 0 : index
    %c0_37 = arith.constant 0 : index
    %44 = vector.load %arg3[%c0_36, %c0_37] : memref<80x1xf32, #tpu.memory_space<vmem>>, vector<80x1xf32>
    %45 = vector.broadcast %44 : vector<80x1xf32> to vector<80x16xf32>
    %46 = arith.mulf %43, %45 : vector<80x16xf32>
    %cst_38 = arith.constant dense<0.000000e+00> : vector<16xf32>
    %47 = vector.multi_reduction <add>, %46, %cst_38 [0] : vector<80x16xf32> to vector<16xf32>
    %48 = vector.shape_cast %47 : vector<16xf32> to vector<1x16xf32>
    %c0_39 = arith.constant 0 : index
    %c0_40 = arith.constant 0 : index
    %c0_41 = arith.constant 0 : index
    %49 = vector.load %arg5[%c0_39, %c0_40, %c0_41] : memref<1x1x16xf32, #tpu.memory_space<vmem>>, vector<1x1x16xf32>
    %50 = vector.shape_cast %49 : vector<1x1x16xf32> to vector<1x16xf32>
    %51 = vector.shape_cast %48 : vector<1x16xf32> to vector<1x1x16xf32>
    tpu.vector_store %arg5[%c0_39, %c0_40, %c0_41], %51 {strides = array<i32>} : memref<1x1x16xf32, #tpu.memory_space<vmem>>, vector<1x1x16xf32>,
    %52 = arith.mulf %46, %43 : vector<80x16xf32>
    %cst_42 = arith.constant dense<0.000000e+00> : vector<16xf32>
    %53 = vector.multi_reduction <add>, %52, %cst_42 [0] : vector<80x16xf32> to vector<16xf32>
    %54 = vector.shape_cast %53 : vector<16xf32> to vector<1x16xf32>
    %c0_43 = arith.constant 0 : index
    %c0_44 = arith.constant 0 : index
    %c0_45 = arith.constant 0 : index
    %55 = vector.load %arg6[%c0_43, %c0_44, %c0_45] : memref<1x1x16xf32, #tpu.memory_space<vmem>>, vector<1x1x16xf32>
    %56 = vector.shape_cast %55 : vector<1x1x16xf32> to vector<1x16xf32>
    %57 = vector.shape_cast %54 : vector<1x16xf32> to vector<1x1x16xf32>
    tpu.vector_store %arg6[%c0_43, %c0_44, %c0_45], %57 {strides = array<i32>} : memref<1x1x16xf32, #tpu.memory_space<vmem>>, vector<1x1x16xf32>,
    %58 = arith.truncf %43 : vector<80x16xf32> to vector<80x16xbf16>
    %c0_46 = arith.constant 0 : index
    %c0_47 = arith.constant 0 : index
    %c0_48 = arith.constant 0 : index
    %59 = vector.load %arg4[%c0_46, %c0_47, %c0_48] : memref<1x80x16xbf16, #tpu.memory_space<vmem>>, vector<1x80x16xbf16>
    %60 = vector.shape_cast %59 : vector<1x80x16xbf16> to vector<80x16xbf16>
    %61 = vector.shape_cast %58 : vector<80x16xbf16> to vector<1x80x16xbf16>
    tpu.vector_store %arg4[%c0_46, %c0_47, %c0_48], %61 {strides = array<i32>} : memref<1x80x16xbf16, #tpu.memory_space<vmem>>, vector<1x80x16xbf16>,
    return
  }
  func.func @transform_0(%arg0: i32) -> (i32, i32, i32) {
    %c0_i32 = arith.constant 0 : i32
    %c0_i32_0 = arith.constant 0 : i32
    %c0_i32_1 = arith.constant 0 : i32
    return %arg0, %c0_i32, %c0_i32_0 : i32, i32, i32
  }
  func.func @transform_1(%arg0: i32) -> (i32, i32) {
    %c0_i32 = arith.constant 0 : i32
    %c0_i32_0 = arith.constant 0 : i32
    %c0_i32_1 = arith.constant 0 : i32
    return %c0_i32, %c0_i32_0 : i32, i32
  }
  func.func @transform_2(%arg0: i32) -> (i32, i32) {
    %c0_i32 = arith.constant 0 : i32
    %c0_i32_0 = arith.constant 0 : i32
    %c0_i32_1 = arith.constant 0 : i32
    return %c0_i32, %c0_i32_0 : i32, i32
  }
  func.func @transform_3(%arg0: i32) -> (i32, i32, i32) {
    %c0_i32 = arith.constant 0 : i32
    %c0_i32_0 = arith.constant 0 : i32
    %c0_i32_1 = arith.constant 0 : i32
    return %arg0, %c0_i32, %c0_i32_0 : i32, i32, i32
  }
  func.func @transform_4(%arg0: i32) -> (i32, i32, i32) {
    %c0_i32 = arith.constant 0 : i32
    %c0_i32_0 = arith.constant 0 : i32
    %c0_i32_1 = arith.constant 0 : i32
    return %arg0, %c0_i32, %c0_i32_0 : i32, i32, i32
  }
  func.func @transform_5(%arg0: i32) -> (i32, i32, i32) {
    %c0_i32 = arith.constant 0 : i32
    %c0_i32_0 = arith.constant 0 : i32
    %c0_i32_1 = arith.constant 0 : i32
    return %arg0, %c0_i32, %c0_i32_0 : i32, i32, i32
  }
}

module attributes {stable_mosaic.version = 11 : i64} {
  func.func @_mm_kernel(%arg0: i32, %arg1: memref<128x3xbf16, #tpu.memory_space<vmem>>, %arg2: memref<3x16xbf16, #tpu.memory_space<vmem>>, %arg3: memref<1x16xf32, #tpu.memory_space<vmem>>, %arg4: memref<128x16xbf16, #tpu.memory_space<vmem>>, %arg5: memref<1x16xf32, #tpu.memory_space<vmem>>, %arg6: memref<128x16xbf16, #tpu.memory_space<vmem>>) attributes {dimension_semantics = [#tpu.dimension_semantics<parallel>], iteration_bounds = array<i64: 1>, scalar_prefetch = 0 : i64, scratch_operands = 0 : i64, tpu.core_type = #tpu.core_type<tc>, window_params = [{transform_indices = @transform_0, window_bounds = array<i64: 128, 3>}, {pipeline_mode = #tpu.pipeline_mode<synchronous>, transform_indices = @transform_1, window_bounds = array<i64: 3, 16>}, {pipeline_mode = #tpu.pipeline_mode<synchronous>, transform_indices = @transform_2, window_bounds = array<i64: 1, 16>}, {transform_indices = @transform_3, window_bounds = array<i64: 128, 16>}, {pipeline_mode = #tpu.pipeline_mode<synchronous>, transform_indices = @transform_4, window_bounds = array<i64: 1, 16>}, {transform_indices = @transform_5, window_bounds = array<i64: 128, 16>}]} {
    %c0 = arith.constant 0 : index
    %c0_0 = arith.constant 0 : index
    %0 = vector.load %arg1[%c0, %c0_0] : memref<128x3xbf16, #tpu.memory_space<vmem>>, vector<128x3xbf16>
    %c0_1 = arith.constant 0 : index
    %c0_2 = arith.constant 0 : index
    %1 = vector.load %arg2[%c0_1, %c0_2] : memref<3x16xbf16, #tpu.memory_space<vmem>>, vector<3x16xbf16>
    %cst = arith.constant dense<0.000000e+00> : vector<128x16xf32>
    %2 = tpu.matmul %0, %1, %cst {dimension_numbers = #tpu.dot_dimension_numbers<[1], [0], [0], [1], [0, 0, 1, 1], [], []>} : vector<128x3xbf16>, vector<3x16xbf16>, vector<128x16xf32> -> vector<128x16xf32>
    %c0_3 = arith.constant 0 : index
    %c0_4 = arith.constant 0 : index
    %3 = vector.load %arg3[%c0_3, %c0_4] : memref<1x16xf32, #tpu.memory_space<vmem>>, vector<1x16xf32>
    %4 = vector.broadcast %3 : vector<1x16xf32> to vector<128x16xf32>
    %5 = arith.addf %2, %4 : vector<128x16xf32>
    %c0_5 = arith.constant 0 : index
    %c0_6 = arith.constant 0 : index
    %6 = vector.load %arg4[%c0_5, %c0_6] : memref<128x16xbf16, #tpu.memory_space<vmem>>, vector<128x16xbf16>
    %7 = arith.extf %6 : vector<128x16xbf16> to vector<128x16xf32>
    %c0_7 = arith.constant 0 : index
    %c0_8 = arith.constant 0 : index
    %8 = vector.load %arg5[%c0_7, %c0_8] : memref<1x16xf32, #tpu.memory_space<vmem>>, vector<1x16xf32>
    %9 = vector.broadcast %8 : vector<1x16xf32> to vector<128x16xf32>
    %10 = arith.mulf %7, %9 : vector<128x16xf32>
    %11 = arith.addf %5, %10 : vector<128x16xf32>
    %cst_9 = arith.constant 0.000000e+00 : f32
    %12 = vector.broadcast %cst_9 : f32 to vector<128x16xf32>
    %13 = arith.maximumf %11, %12 : vector<128x16xf32>
    %14 = arith.truncf %13 : vector<128x16xf32> to vector<128x16xbf16>
    %c0_10 = arith.constant 0 : index
    %c0_11 = arith.constant 0 : index
    %15 = vector.load %arg6[%c0_10, %c0_11] : memref<128x16xbf16, #tpu.memory_space<vmem>>, vector<128x16xbf16>
    tpu.vector_store %arg6[%c0_10, %c0_11], %14 {strides = array<i32>} : memref<128x16xbf16, #tpu.memory_space<vmem>>, vector<128x16xbf16>,
    return
  }
  func.func @transform_0(%arg0: i32) -> (i32, i32) {
    %c0_i32 = arith.constant 0 : i32
    %c0_i32_0 = arith.constant 0 : i32
    return %arg0, %c0_i32 : i32, i32
  }
  func.func @transform_1(%arg0: i32) -> (i32, i32) {
    %c0_i32 = arith.constant 0 : i32
    %c0_i32_0 = arith.constant 0 : i32
    %c0_i32_1 = arith.constant 0 : i32
    return %c0_i32, %c0_i32_0 : i32, i32
  }
  func.func @transform_2(%arg0: i32) -> (i32, i32) {
    %c0_i32 = arith.constant 0 : i32
    %c0_i32_0 = arith.constant 0 : i32
    %c0_i32_1 = arith.constant 0 : i32
    return %c0_i32, %c0_i32_0 : i32, i32
  }
  func.func @transform_3(%arg0: i32) -> (i32, i32) {
    %c0_i32 = arith.constant 0 : i32
    %c0_i32_0 = arith.constant 0 : i32
    return %arg0, %c0_i32 : i32, i32
  }
  func.func @transform_4(%arg0: i32) -> (i32, i32) {
    %c0_i32 = arith.constant 0 : i32
    %c0_i32_0 = arith.constant 0 : i32
    %c0_i32_1 = arith.constant 0 : i32
    return %c0_i32, %c0_i32_0 : i32, i32
  }
  func.func @transform_5(%arg0: i32) -> (i32, i32) {
    %c0_i32 = arith.constant 0 : i32
    %c0_i32_0 = arith.constant 0 : i32
    return %arg0, %c0_i32 : i32, i32
  }
}

module attributes {stable_mosaic.version = 11 : i64} {
  func.func @_mm_kernel(%arg0: i32, %arg1: memref<128x192xbf16, #tpu.memory_space<vmem>>, %arg2: memref<192x64xbf16, #tpu.memory_space<vmem>>, %arg3: memref<1x64xf32, #tpu.memory_space<vmem>>, %arg4: memref<128x64xbf16, #tpu.memory_space<vmem>>) attributes {dimension_semantics = [#tpu.dimension_semantics<parallel>], iteration_bounds = array<i64: 1>, scalar_prefetch = 0 : i64, scratch_operands = 0 : i64, tpu.core_type = #tpu.core_type<tc>, window_params = [{transform_indices = @transform_0, window_bounds = array<i64: 128, 192>}, {pipeline_mode = #tpu.pipeline_mode<synchronous>, transform_indices = @transform_1, window_bounds = array<i64: 192, 64>}, {pipeline_mode = #tpu.pipeline_mode<synchronous>, transform_indices = @transform_2, window_bounds = array<i64: 1, 64>}, {transform_indices = @transform_3, window_bounds = array<i64: 128, 64>}]} {
    %c0 = arith.constant 0 : index
    %c0_0 = arith.constant 0 : index
    %0 = vector.load %arg1[%c0, %c0_0] : memref<128x192xbf16, #tpu.memory_space<vmem>>, vector<128x192xbf16>
    %c0_1 = arith.constant 0 : index
    %c0_2 = arith.constant 0 : index
    %1 = vector.load %arg2[%c0_1, %c0_2] : memref<192x64xbf16, #tpu.memory_space<vmem>>, vector<192x64xbf16>
    %cst = arith.constant dense<0.000000e+00> : vector<128x64xf32>
    %2 = tpu.matmul %0, %1, %cst {dimension_numbers = #tpu.dot_dimension_numbers<[1], [0], [0], [1], [0, 0, 1, 1], [], []>} : vector<128x192xbf16>, vector<192x64xbf16>, vector<128x64xf32> -> vector<128x64xf32>
    %c0_3 = arith.constant 0 : index
    %c0_4 = arith.constant 0 : index
    %3 = vector.load %arg3[%c0_3, %c0_4] : memref<1x64xf32, #tpu.memory_space<vmem>>, vector<1x64xf32>
    %4 = vector.broadcast %3 : vector<1x64xf32> to vector<128x64xf32>
    %5 = arith.addf %2, %4 : vector<128x64xf32>
    %cst_5 = arith.constant 0.000000e+00 : f32
    %6 = vector.broadcast %cst_5 : f32 to vector<128x64xf32>
    %7 = arith.maximumf %5, %6 : vector<128x64xf32>
    %8 = arith.truncf %7 : vector<128x64xf32> to vector<128x64xbf16>
    %c0_6 = arith.constant 0 : index
    %c0_7 = arith.constant 0 : index
    %9 = vector.load %arg4[%c0_6, %c0_7] : memref<128x64xbf16, #tpu.memory_space<vmem>>, vector<128x64xbf16>
    tpu.vector_store %arg4[%c0_6, %c0_7], %8 {strides = array<i32>} : memref<128x64xbf16, #tpu.memory_space<vmem>>, vector<128x64xbf16>,
    return
  }
  func.func @transform_0(%arg0: i32) -> (i32, i32) {
    %c0_i32 = arith.constant 0 : i32
    %c0_i32_0 = arith.constant 0 : i32
    return %arg0, %c0_i32 : i32, i32
  }
  func.func @transform_1(%arg0: i32) -> (i32, i32) {
    %c0_i32 = arith.constant 0 : i32
    %c0_i32_0 = arith.constant 0 : i32
    %c0_i32_1 = arith.constant 0 : i32
    return %c0_i32, %c0_i32_0 : i32, i32
  }
  func.func @transform_2(%arg0: i32) -> (i32, i32) {
    %c0_i32 = arith.constant 0 : i32
    %c0_i32_0 = arith.constant 0 : i32
    %c0_i32_1 = arith.constant 0 : i32
    return %c0_i32, %c0_i32_0 : i32, i32
  }
  func.func @transform_3(%arg0: i32) -> (i32, i32) {
    %c0_i32 = arith.constant 0 : i32
    %c0_i32_0 = arith.constant 0 : i32
    return %arg0, %c0_i32 : i32, i32
  }
}

module attributes {stable_mosaic.version = 11 : i64} {
  func.func @_cls_kernel(%arg0: i32, %arg1: memref<8x19xbf16, #tpu.memory_space<vmem>>, %arg2: memref<19x512xbf16, #tpu.memory_space<vmem>>, %arg3: memref<8x1xf32, #tpu.memory_space<vmem>>, %arg4: memref<8x512xf32, #tpu.memory_space<vmem>>) attributes {dimension_semantics = [#tpu.dimension_semantics<parallel>], iteration_bounds = array<i64: 1>, scalar_prefetch = 0 : i64, scratch_operands = 0 : i64, tpu.core_type = #tpu.core_type<tc>, window_params = [{pipeline_mode = #tpu.pipeline_mode<synchronous>, transform_indices = @transform_0, window_bounds = array<i64: 8, 19>}, {transform_indices = @transform_1, window_bounds = array<i64: 19, 512>}, {pipeline_mode = #tpu.pipeline_mode<synchronous>, transform_indices = @transform_2, window_bounds = array<i64: 8, 1>}, {transform_indices = @transform_3, window_bounds = array<i64: 8, 512>}]} {
    %c0 = arith.constant 0 : index
    %c0_0 = arith.constant 0 : index
    %0 = vector.load %arg1[%c0, %c0_0] : memref<8x19xbf16, #tpu.memory_space<vmem>>, vector<8x19xbf16>
    %c0_1 = arith.constant 0 : index
    %c0_2 = arith.constant 0 : index
    %1 = vector.load %arg2[%c0_1, %c0_2] : memref<19x512xbf16, #tpu.memory_space<vmem>>, vector<19x512xbf16>
    %cst = arith.constant dense<0.000000e+00> : vector<8x512xf32>
    %2 = tpu.matmul %0, %1, %cst {dimension_numbers = #tpu.dot_dimension_numbers<[1], [0], [0], [1], [0, 0, 1, 1], [], []>} : vector<8x19xbf16>, vector<19x512xbf16>, vector<8x512xf32> -> vector<8x512xf32>
    %c0_3 = arith.constant 0 : index
    %c0_4 = arith.constant 0 : index
    %3 = vector.load %arg3[%c0_3, %c0_4] : memref<8x1xf32, #tpu.memory_space<vmem>>, vector<8x1xf32>
    %4 = vector.broadcast %3 : vector<8x1xf32> to vector<8x512xf32>
    %5 = arith.addf %2, %4 : vector<8x512xf32>
    %c0_5 = arith.constant 0 : index
    %c0_6 = arith.constant 0 : index
    %6 = vector.load %arg4[%c0_5, %c0_6] : memref<8x512xf32, #tpu.memory_space<vmem>>, vector<8x512xf32>
    tpu.vector_store %arg4[%c0_5, %c0_6], %5 {strides = array<i32>} : memref<8x512xf32, #tpu.memory_space<vmem>>, vector<8x512xf32>,
    return
  }
  func.func @transform_0(%arg0: i32) -> (i32, i32) {
    %c0_i32 = arith.constant 0 : i32
    %c0_i32_0 = arith.constant 0 : i32
    %c0_i32_1 = arith.constant 0 : i32
    return %c0_i32, %c0_i32_0 : i32, i32
  }
  func.func @transform_1(%arg0: i32) -> (i32, i32) {
    %c0_i32 = arith.constant 0 : i32
    %c0_i32_0 = arith.constant 0 : i32
    return %c0_i32, %arg0 : i32, i32
  }
  func.func @transform_2(%arg0: i32) -> (i32, i32) {
    %c0_i32 = arith.constant 0 : i32
    %c0_i32_0 = arith.constant 0 : i32
    %c0_i32_1 = arith.constant 0 : i32
    return %c0_i32, %c0_i32_0 : i32, i32
  }
  func.func @transform_3(%arg0: i32) -> (i32, i32) {
    %c0_i32 = arith.constant 0 : i32
    %c0_i32_0 = arith.constant 0 : i32
    return %c0_i32, %arg0 : i32, i32
  }
}

</mosaic_0001>

<bundles_post_ra>
// kernel: detector_forward.6
= control target key start
LH: loop header
LB: loop body
LE: loop exit
PB: predicated region body
PF: predicated region fallthrough
CT: control target
= control target key end

     0   :  { %vm111_vm0 = vcmask 1044480   ;;  %vm112_vm1 = vcmask 1045504   ;;  %vm86_vm2 = vcmask 220160   ;;  %v497_v1 = vmov 65535   ;;  %s705_s1 = inlined_call_operand.vmem [shape: bf16[27,16], index: 1, kind: input, shape index: {}]   ;;  %s706_s0 = inlined_call_operand.vmem [shape: bf16[128,27], index: 0, kind: input, shape index: {}]   ;;  %s707_s2 = inlined_call_operand.vmem [shape: bf16[128,16], index: 2, kind: output, shape index: {0}]   ;;  %s708_s3 = inlined_call_operand.vmem [shape: f32[1,1,16], index: 3, kind: output, shape index: {1}]   ;;  %s709_s4 = inlined_call_operand.vmem [shape: f32[1,1,16], index: 4, kind: output, shape index: {2}]  }
   0x1   :  { %v487_v0 = vld [vmem:[%s705_s1] sm:$0xff]   ;;  %v113_v2 = vsel %vm111_vm0, 4294967295, %v497_v1  ;;  %v488_v3 = vld [vmem:[%s705_s1 + $0x8] sm:$0x3f]   ;;  %v491_v8 = vld [vmem:[%s706_s0 + $0x10] sm:$0xff]   ;;  %vm373_vm3 = vcmask 125952  }
   0x2   :  { %462 = vmatprep.subr.bf16.mxu0 %v487_v0  ;;  %v114_v4 = vsel %vm112_vm1, %v113_v2, 0  ;;  %v489_v5 = vld [vmem:[%s706_s0] sm:$0xff]   ;;  %482 = vmatprep.subr.bf16.mxu1 %v487_v0  ;;  %v490_v7 = vld [vmem:[%s706_s0 + $0x8] sm:$0xff]   ;;  %v495_v11 = vld [vmem:[%s706_s0 + $0x30] sm:$0xff]   ;;  %vm215_vm4 = vcmask 130048   ;;  %vm253_vm5 = vcmask 122880  }
   0x3   :  { %463 = vmatpush3.bf16.msra.mxu0 %v487_v0  ;;  %v116_v6 = vand.u32 %v488_v3, %v114_v4  ;;  %484 = vmatpush3.bf16.msra.mxu1 %v487_v0  ;;  %v493_v9 = vld [vmem:[%s706_s0 + $0x20] sm:$0xff]   ;;  %v494_v10 = vld [vmem:[%s706_s0 + $0x28] sm:$0xff]   ;;  %v492_v12 = vld [vmem:[%s706_s0 + $0x18] sm:$0xff]  }
   0x4   :  { %466 = vmatprep.mubr.msk.bf16.mxu0 %vm86_vm2, %v489_v5  ;;  %474 = vmatprep.mubr.msk.bf16.mxu1 %vm86_vm2, %v493_v9  ;;  %v496_v13 = vld [vmem:[%s706_s0 + $0x38] sm:$0xff]  }
   0x5   :  { %464 = vmatprep.subr.bf16.mxu0 %v116_v6  ;;  %483 = vmatprep.subr.bf16.mxu1 %v116_v6 }
   0x7   :  { %465 = vmatpush3.bf16.msra.mxu0 %v116_v6  ;;  %485 = vmatpush3.bf16.msra.mxu1 %v116_v6 }
   0xa   :  { %467 = vmatmul.mubr.msk.bf16.vlgmr.msra.gmra.mrb[0].mxu0 %vm86_vm2, %v490_v7  ;;  %475 = vmatmul.mubr.msk.bf16.vlgmr.msra.gmra.mrb[0].mxu1 %vm86_vm2, %v494_v10 }
   0xb   :  { %470 = vmatprep.mubr.msk.bf16.mxu0 %vm86_vm2, %v491_v8  ;;  %478 = vmatprep.mubr.msk.bf16.mxu1 %vm86_vm2, %v495_v11 }
  0x12   :  { %471 = vmatmul.mubr.msk.bf16.gmra.mrb[4].mxu0 %vm86_vm2, %v492_v12  ;;  %479 = vmatmul.mubr.msk.bf16.gmra.mrb[4].mxu1 %vm86_vm2, %v496_v13 }
  0xdd   :  { %v468_v14 = vpop.f32.mrb[0].mxu0  ;;  %v561_v15 = vpop.f32.mrb[0].mxu1 }
  0xde   :  { %v438_v16 = vpack.c.bf16 %v468_v14, %v468_v14  ;;  %v152_v17 = vpop.f32.mrb[1].mxu0  ;;  %v563_v18 = vpop.f32.mrb[1].mxu1  ;;  %v257_v23 = vmul.f32 %v468_v14, %v468_v14  ;;  %v446_v33 = vpack.c.bf16 %v561_v15, %v561_v15  ;;  %v219_v34 = vsel %vm215_vm4, %v468_v14, 0.0 }
  0xdf   :  { %v255_v19 = vmul.f32 %v152_v17, %v152_v17  ;;  %v436_v20 = vpack.c.bf16 %v152_v17, %v152_v17  ;;  %v469_v21 = vpop.f32.mrb[2].mxu0  ;;  %v565_v22 = vpop.f32.mrb[2].mxu1  ;;  %v216_v27 = vsel %vm215_vm4, %v152_v17, 0.0  ;;  %v444_v37 = vpack.c.bf16 %v563_v18, %v563_v18 }
  0xe0   :  { %376 = vst.msk [vmem:[%s707_s2 + $0x8] sm:$0xf] %vm373_vm3, %v438_v16  ;;  %v439_v24 = vpack.c.bf16 %v469_v21, %v469_v21  ;;  %v155_v25 = vpop.f32.mrb[3].mxu0  ;;  %v571_v26 = vpop.f32.mrb[3].mxu1  ;;  %v258_v31 = vmul.f32 %v469_v21, %v469_v21  ;;  %384 = vst.msk [vmem:[%s707_s2 + $0x28] sm:$0xf] %vm373_vm3, %v446_v33  ;;  %v447_v42 = vpack.c.bf16 %v565_v22, %v565_v22 }
  0xe1   :  { %374 = vst.msk [vmem:[%s707_s2] sm:$0xf] %vm373_vm3, %v436_v20  ;;  %v217_v28 = vsel %vm215_vm4, %v155_v25, 0.0  ;;  %v256_v29 = vmul.f32 %v155_v25, %v155_v25  ;;  %v437_v30 = vpack.c.bf16 %v155_v25, %v155_v25  ;;  %v271_v35 = vsel %vm215_vm4, %v255_v19, 0.0  ;;  %382 = vst.msk [vmem:[%s707_s2 + $0x20] sm:$0xf] %vm373_vm3, %v444_v37 }
  0xe2   :  { %377 = vst.msk [vmem:[%s707_s2 + $0xc] sm:$0xf] %vm373_vm3, %v439_v24  ;;  %v218_v32 = vadd.f32 %v217_v28, %v216_v27  ;;  %v274_v40 = vsel %vm215_vm4, %v257_v23, 0.0  ;;  %v221_v44 = vsel %vm215_vm4, %v469_v21, 0.0  ;;  %v276_v45 = vsel %vm215_vm4, %v258_v31, 0.0 }
  0xe3   :  { %v272_v36 = vsel %vm215_vm4, %v256_v29, 0.0  ;;  %375 = vst.msk [vmem:[%s707_s2 + $0x4] sm:$0xf] %vm373_vm3, %v437_v30  ;;  %385 = vst.msk [vmem:[%s707_s2 + $0x2c] sm:$0xf] %vm373_vm3, %v447_v42  ;;  %v263_v4 = vmul.f32 %v563_v18, %v563_v18  ;;  %v445_v5 = vpack.c.bf16 %v571_v26, %v571_v26  ;;  %v231_v14 = vsel %vm215_vm4, %v563_v18, 0.0 }
  0xe4   :  { %v220_v38 = vadd.f32 %v219_v34, %v218_v32  ;;  %v273_v39 = vadd.f32 %v272_v36, %v271_v35  ;;  %v264_v24 = vmul.f32 %v571_v26, %v571_v26  ;;  %v265_v28 = vmul.f32 %v561_v15, %v561_v15 }
  0xe5   :  { %v472_v41 = vpop.f32.mrb[4].mxu0  ;;  %v605_v43 = vpop.f32.mrb[4].mxu1  ;;  %383 = vst.msk [vmem:[%s707_s2 + $0x24] sm:$0xf] %vm373_vm3, %v445_v5  ;;  %v286_v23 = vsel %vm215_vm4, %v263_v4, 0.0  ;;  %v233_v29 = vsel %vm215_vm4, %v571_v26, 0.0  ;;  %v266_v33 = vmul.f32 %v565_v22, %v565_v22 }
  0xe6   :  { %v275_v46 = vadd.f32 %v274_v40, %v273_v39  ;;  %v442_v47 = vpack.c.bf16 %v472_v41, %v472_v41  ;;  %v168_v48 = vpop.f32.mrb[5].mxu0  ;;  %v200_v49 = vpop.f32.mrb[5].mxu1  ;;  %v222_v50 = vadd.f32 %v221_v44, %v220_v38  ;;  %v261_v63 = vmul.f32 %v472_v41, %v472_v41 }
  0xe7   :  { %v223_v51 = vsel %vm215_vm4, %v168_v48, 0.0  ;;  %v259_v52 = vmul.f32 %v168_v48, %v168_v48  ;;  %v440_v53 = vpack.c.bf16 %v168_v48, %v168_v48  ;;  %v473_v54 = vpop.f32.mrb[6].mxu0  ;;  %v614_v55 = vpop.f32.mrb[6].mxu1  ;;  %v227_v6 = vsel %vm215_vm4, %v472_v41, 0.0 }
  0xe8   :  { %380 = vst.msk [vmem:[%s707_s2 + $0x18] sm:$0xf] %vm373_vm3, %v442_v47  ;;  %v277_v56 = vadd.f32 %v276_v45, %v275_v46  ;;  %v171_v57 = vpop.f32.mrb[7].mxu0  ;;  %v203_v58 = vpop.f32.mrb[7].mxu1  ;;  %v224_v59 = vadd.f32 %v223_v51, %v222_v50  ;;  %v443_v61 = vpack.c.bf16 %v473_v54, %v473_v54  ;;  %v262_v7 = vmul.f32 %v473_v54, %v473_v54 }
  0xe9   :  { %v278_v60 = vsel %vm215_vm4, %v259_v52, 0.0  ;;  %378 = vst.msk [vmem:[%s707_s2 + $0x10] sm:$0xf] %vm373_vm3, %v440_v53  ;;  %v225_v62 = vsel %vm215_vm4, %v171_v57, 0.0  ;;  %v260_v1 = vmul.f32 %v171_v57, %v171_v57  ;;  %v441_v2 = vpack.c.bf16 %v171_v57, %v171_v57 }
  0xea   :  { %v279_v0 = vadd.f32 %v278_v60, %v277_v56  ;;  %381 = vst.msk [vmem:[%s707_s2 + $0x1c] sm:$0xf] %vm373_vm3, %v443_v61  ;;  %v226_v3 = vadd.f32 %v225_v62, %v224_v59  ;;  %v450_v9 = vpack.c.bf16 %v605_v43, %v605_v43  ;;  %v282_v12 = vsel %vm215_vm4, %v261_v63, 0.0 }
  0xeb   :  { %v280_v8 = vsel %vm215_vm4, %v260_v1, 0.0  ;;  %379 = vst.msk [vmem:[%s707_s2 + $0x14] sm:$0xf] %vm373_vm3, %v441_v2  ;;  %v229_v13 = vsel %vm215_vm4, %v473_v54, 0.0  ;;  %v448_v16 = vpack.c.bf16 %v200_v49, %v200_v49  ;;  %v451_v20 = vpack.c.bf16 %v614_v55, %v614_v55 }
  0xec   :  { %v228_v10 = vadd.f32 %v227_v6, %v226_v3  ;;  %v281_v11 = vadd.f32 %v280_v8, %v279_v0  ;;  %388 = vst.msk [vmem:[%s707_s2 + $0x38] sm:$0xf] %vm373_vm3, %v450_v9  ;;  %v284_v21 = vsel %vm215_vm4, %v262_v7, 0.0  ;;  %v449_v18 = vpack.c.bf16 %v203_v58, %v203_v58 }
  0xed   :  { %386 = vst.msk [vmem:[%s707_s2 + $0x30] sm:$0xf] %vm373_vm3, %v448_v16  ;;  %389 = vst.msk [vmem:[%s707_s2 + $0x3c] sm:$0xf] %vm373_vm3, %v451_v20  ;;  %v235_v32 = vsel %vm215_vm4, %v561_v15, 0.0  ;;  %v288_v34 = vsel %vm215_vm4, %v264_v24, 0.0  ;;  %v267_v35 = vmul.f32 %v200_v49, %v200_v49  ;;  %v268_v44 = vmul.f32 %v203_v58, %v203_v58 }
  0xee   :  { %v283_v17 = vadd.f32 %v282_v12, %v281_v11  ;;  %v230_v19 = vadd.f32 %v229_v13, %v228_v10  ;;  %387 = vst.msk [vmem:[%s707_s2 + $0x34] sm:$0xf] %vm373_vm3, %v449_v18  ;;  %v290_v26 = vsel %vm215_vm4, %v265_v28, 0.0  ;;  %v237_v38 = vsel %vm215_vm4, %v565_v22, 0.0 }
  0xef   :  { %v239_v39 = vsel %vm215_vm4, %v200_v49, 0.0  ;;  %v292_v42 = vsel %vm215_vm4, %v266_v33, 0.0  ;;  %v294_v15 = vsel %vm215_vm4, %v267_v35, 0.0  ;;  %v269_v47 = vmul.f32 %v605_v43, %v605_v43 }
  0xf0   :  { %v232_v25 = vadd.f32 %v231_v14, %v230_v19  ;;  %v285_v27 = vadd.f32 %v284_v21, %v283_v17  ;;  %v241_v48 = vsel %vm215_vm4, %v203_v58, 0.0  ;;  %v243_v22 = vsel %vm215_vm4, %v605_v43, 0.0 }
  0xf1   :  { %v270_v49 = vmul.f32 %v614_v55, %v614_v55  ;;  %v296_v52 = vsel %vm215_vm4, %v268_v44, 0.0  ;;  %v298_v56 = vsel %vm215_vm4, %v269_v47, 0.0  ;;  %v245_v57 = vsel %vm215_vm4, %v614_v55, 0.0 }
  0xf2   :  { %v287_v30 = vadd.f32 %v286_v23, %v285_v27  ;;  %v234_v31 = vadd.f32 %v233_v29, %v232_v25 }
  0xf3   :  { %v300_v58 = vsel %vm215_vm4, %v270_v49, 0.0 }
  0xf4   :  { %v236_v36 = vadd.f32 %v235_v32, %v234_v31  ;;  %v289_v37 = vadd.f32 %v288_v34, %v287_v30 }
  0xf6   :  { %v291_v40 = vadd.f32 %v290_v26, %v289_v37  ;;  %v238_v41 = vadd.f32 %v237_v38, %v236_v36 }
  0xf8   :  { %v240_v45 = vadd.f32 %v239_v39, %v238_v41  ;;  %v293_v46 = vadd.f32 %v292_v42, %v291_v40 }
  0xfa   :  { %v295_v50 = vadd.f32 %v294_v15, %v293_v46  ;;  %v242_v51 = vadd.f32 %v241_v48, %v240_v45 }
  0xfc   :  { %v244_v53 = vadd.f32 %v243_v22, %v242_v51  ;;  %v297_v54 = vadd.f32 %v296_v52, %v295_v50 }
  0xfe   :  { %v246_v59 = vadd.f32 %v245_v57, %v244_v53  ;;  %v299_v60 = vadd.f32 %v298_v56, %v297_v54 }
 0x100   :  { %v247_v61 = vrot.slane %v246_v59, 4  ;;  %v301_v62 = vadd.f32 %v300_v58, %v299_v60 }
 0x102   :  { %v248_v63 = vadd.f32 %v247_v61, %v246_v59  ;;  %v302_v43 = vrot.slane %v301_v62, 4 }
 0x104   :  { %v249_v0 = vrot.slane %v248_v63, 2  ;;  %v303_v1 = vadd.f32 %v302_v43, %v301_v62 }
 0x106   :  { %v250_v2 = vadd.f32 %v249_v0, %v248_v63  ;;  %v304_v3 = vrot.slane %v303_v1, 2 }
 0x108   :  { %v251_v4 = vrot.slane %v250_v2, 1  ;;  %v305_v5 = vadd.f32 %v304_v3, %v303_v1 }
 0x10a   :  { %v252_v6 = vadd.f32 %v251_v4, %v250_v2  ;;  %v306_v7 = vrot.slane %v305_v5, 1 }
 0x10c   :  { %254 = vst.msk [vmem:[%s708_s3] sm:$0x1] %vm253_vm5, %v252_v6  ;;  %v307_v55 = vadd.f32 %v306_v7, %v305_v5 }
 0x10e   :  { %308 = vst.msk [vmem:[%s709_s4] sm:$0x1] %vm253_vm5, %v307_v55 }

// kernel: detector_forward.7
= control target key start
LH: loop header
LB: loop body
LE: loop exit
PB: predicated region body
PF: predicated region fallthrough
CT: control target
= control target key end

     0   :  { %s2583_s18 = smov 0   ;;  %s2908_s0 = inlined_call_operand.vmem [shape: f32[2,108,16], index: 0, kind: input, shape index: {}]   ;;  %s2909_s1 = inlined_call_operand.vmem [shape: f32[144,16], index: 1, kind: input, shape index: {}]   ;;  %s2910_s2 = inlined_call_operand.vmem [shape: f32[80,1], index: 2, kind: input, shape index: {}]   ;;  %s2911_s3 = inlined_call_operand.vmem [shape: bf16[2,80,16], index: 3, kind: output, shape index: {0}]   ;;  %s2912_s4 = inlined_call_operand.vmem [shape: f32[2,1,16], index: 4, kind: output, shape index: {1}]   ;;  %s2913_s5 = inlined_call_operand.vmem [shape: f32[2,1,16], index: 5, kind: output, shape index: {2}]  }
   0x1 LB: > { %s2015_s19 = sadd.s32 4294967295, %s2550_s18   ;;  %p2019_p0 = scmp.ge.s32.totalorder %s2550_s18, 1  ;;  %s2550_s18 = sphi %s2583_s18, %s16_s18  }
   0x2   : > { %p192_p1 = scmp.lt.s32.totalorder %s2550_s18, 3 }
   0x4   : > { %p193_p2 = pnand %p2019_p0, %p192_p1 }
   0x5   : > { %v901_v0 = vld [vmem:[%s2909_s1 + $0x40] sm:$0xff] (!%p193_p2)  ;;  %v902_v1 = vld [vmem:[%s2909_s1 + $0x48] sm:$0xff] (!%p193_p2)  ;;  %v264_v2 = vld [vmem:[%s2909_s1 + $0x10] sm:$0xff] (!%p193_p2)  ;;  %p226_p3 = scmp.lt.s32.totalorder (!%p193_p2), %s2015_s19, 1  ;;  %v2552_v7 = vmov (!%p193_p2), 0   ;;  %vm266_vm0 = vcmask (!%p193_p2), 130048  }
   0x6   : > { %196 = sbr.rel (%p193_p2) target bundleno = 344 (0x158), region = 32  ;;  %v2600_v3 = vpack.c.bf16 (!%p193_p2), %v902_v1, %v901_v0  ;;  %v265_v4 = vld [vmem:[%s2909_s1 + $0x18] sm:$0xff] (!%p193_p2)  ;;  %v1068_v5 = vld [vmem:[%s2909_s1 + $0x50] sm:$0xff] (!%p193_p2)  ;;  %2542 = vset.pattern.permute.xlu0 (!%p193_p2), %v2552_v7  ;;  %2543 = vset.pattern.permute.xlu1 (!%p193_p2), %v2552_v7  ;;  %v252_v10 = vld [vmem:[%s2909_s1] sm:$0xff] (!%p193_p2)  ;;  %vm1899_vm1 = vcmask (!%p193_p2), 125952   ;;  %vm1821_vm2 = vcmask (!%p193_p2), 122880  }
   0x7   : > { %v1069_v6 = vld [vmem:[%s2909_s1 + $0x58] sm:$0xff] (!%p193_p2)  ;;  %v2413_v8 = vpack.c.bf16 (!%p193_p2), %v265_v4, %v264_v2  ;;  %v253_v11 = vld [vmem:[%s2909_s1 + $0x8] sm:$0xff] (!%p193_p2)  ;;  %v1235_v13 = vld [vmem:[%s2909_s1 + $0x60] sm:$0xff] (!%p193_p2) }
   0x8   : > { %v2433_v9 = vpack.c.bf16 (!%p193_p2), %v1069_v6, %v1068_v5  ;;  %2430 = vmatprep.subr.bf16.mxu0 (!%p193_p2), %v2600_v3  ;;  %v2417_v12 = vpack.c.bf16 (!%p193_p2), %v253_v11, %v252_v10  ;;  %v1236_v14 = vld [vmem:[%s2909_s1 + $0x68] sm:$0xff] (!%p193_p2)  ;;  %v567_v15 = vld [vmem:[%s2909_s1 + $0x20] sm:$0xff] (!%p193_p2)  ;;  %v1728_v18 = vld [vmem:[%s2910_s2 + $0x10] sm:$0xff] (!%p193_p2) }
   0x9   : > { %2414 = vmatprep.subr.bf16.mxu1 (!%p193_p2), %v2413_v8  ;;  %2432 = vmatpush3.bf16.msra.mxu0 (!%p193_p2), %v2600_v3  ;;  %v568_v16 = vld [vmem:[%s2909_s1 + $0x28] sm:$0xff] (!%p193_p2)  ;;  %v1726_v17 = vld [vmem:[%s2910_s2] sm:$0xff] (!%p193_p2)  ;;  %v2437_v25 = vpack.c.bf16 (!%p193_p2), %v1236_v14, %v1235_v13  ;;  %v1402_v36 = vld [vmem:[%s2909_s1 + $0x70] sm:$0xff] (!%p193_p2) }
   0xa   : > { %2416 = vmatpush3.bf16.msra.mxu1 (!%p193_p2), %v2413_v8  ;;  %2434 = vmatprep.subr.bf16.mxu0 (!%p193_p2), %v2433_v9  ;;  %v2421_v26 = vpack.c.bf16 (!%p193_p2), %v568_v16, %v567_v15  ;;  %v1727_v31 = vld [vmem:[%s2910_s2 + $0x8] sm:$0xff] (!%p193_p2)  ;;  %v1403_v37 = vld [vmem:[%s2909_s1 + $0x78] sm:$0xff] (!%p193_p2)  ;;  %v734_v47 = vld [vmem:[%s2909_s1 + $0x30] sm:$0xff] (!%p193_p2) }
   0xb   : > { %2418 = vmatprep.subr.bf16.mxu1 (!%p193_p2), %v2417_v12  ;;  %1738 = vperm.xlu0 (!%p193_p2), %2542, %v1726_v17   ;;  %v2441_v41 = vpack.c.bf16 (!%p193_p2), %v1403_v37, %v1402_v36  ;;  %v735_v48 = vld [vmem:[%s2909_s1 + $0x38] sm:$0xff] (!%p193_p2)  ;;  %v1730_v59 = vld [vmem:[%s2910_s2 + $0x20] sm:$0xff] (!%p193_p2)  ;;  %v1731_v60 = vld [vmem:[%s2910_s2 + $0x28] sm:$0xff] (!%p193_p2) }
   0xc   : > { %1748 = vperm.xlu1 (!%p193_p2), %2543, %v1728_v18   ;;  %v2425_v53 = vpack.c.bf16 (!%p193_p2), %v735_v48, %v734_v47  ;;  %v1729_v58 = vld [vmem:[%s2910_s2 + $0x18] sm:$0xff] (!%p193_p2)  ;;  %v1569_v0 = vld [vmem:[%s2909_s1 + $0x80] sm:$0xff] (!%p193_p2)  ;;  %v1570_v1 = vld [vmem:[%s2909_s1 + $0x88] sm:$0xff] (!%p193_p2) }
   0xd   : > { %s2915_s19 = smov (!%p226_p3, %s2015_s19), 1  ;;  %v1732_v2 = vld [vmem:[%s2910_s2 + $0x30] sm:$0xff]  ;;  %v1733_v4 = vld [vmem:[%s2910_s2 + $0x38] sm:$0xff]  ;;  %v2445_v7 = vpack.c.bf16 %v1570_v1, %v1569_v0  ;;  %v1734_v8 = vld [vmem:[%s2910_s2 + $0x40] sm:$0xff] }
   0xe   : > { %s2531_s11 = smul.u32 112, %s2915_s19  ;;  %s238_s15 = scalar_lea.vmem %s2912_s4, %s2915_s19 }
   0xf   : > { %1743 = vperm.xlu0 %2542, %v1727_v31   ;;  %s2532_s10 = smul.u32 40, %s2915_s19  ;;  %s241_s20 = scalar_lea.vmem %s2913_s5, %s2915_s19 }
  0x10   : > { %s2637_s24 = scalar_lea.vmem %s2908_s0, %s2531_s11  ;;  %1753 = vperm.xlu1 %2543, %v1729_v58  }
  0x11   : > { %v254_v19 = vld [vmem:[%s2637_s24 + $0x1] sm:$0xff]  ;;  %v891_v20 = vld [vmem:[%s2637_s24 + $0xb] sm:$0xff]  ;;  %v892_v22 = vld [vmem:[%s2637_s24 + $0x13] sm:$0xff] }
  0x12   : > { %v255_v21 = vld [vmem:[%s2637_s24 + $0x9] sm:$0xff]  ;;  %2246 = vmatprep.mubr.msk.f32.mxu1 %vm266_vm0, %v254_v19  ;;  %2322 = vmatprep.mubr.msk.f32.mxu0 %vm266_vm0, %v891_v20  ;;  %v256_v23 = vld [vmem:[%s2637_s24 + $0x11] sm:$0xff]  ;;  %v893_v24 = vld [vmem:[%s2637_s24 + $0x1b] sm:$0xff] }
  0x13   : > { %2247 = vmatmul.mubr.msk.f32.vlgmr.msra.gmra.mrb[0].mxu1 %vm266_vm0, %v255_v21  ;;  %2323 = vmatmul.mubr.msk.f32.vlgmr.msra.gmra.mrb[0].mxu0 %vm266_vm0, %v892_v22  ;;  %v257_v27 = vld [vmem:[%s2637_s24 + $0x19] sm:$0xff]  ;;  %v894_v28 = vld [vmem:[%s2637_s24 + $0x23] sm:$0xff]  ;;  %v895_v30 = vld [vmem:[%s2637_s24 + $0x2b] sm:$0xff] }
  0x14   : > { %2436 = vmatpush3.bf16.msra.mxu0 %v2433_v9  ;;  %2249 = vmatprep.mubr.msk.f32.mxu1 %vm266_vm0, %v256_v23  ;;  %v258_v29 = vld [vmem:[%s2637_s24 + $0x21] sm:$0xff]  ;;  %v259_v32 = vld [vmem:[%s2637_s24 + $0x29] sm:$0xff]  ;;  %v896_v33 = vld [vmem:[%s2637_s24 + $0x33] sm:$0xff] }
  0x15   : > { %2325 = vmatprep.mubr.msk.f32.mxu0 %vm266_vm0, %v893_v24  ;;  %2420 = vmatpush3.bf16.msra.mxu1 %v2417_v12  ;;  %v260_v34 = vld [vmem:[%s2637_s24 + $0x31] sm:$0xff]  ;;  %v261_v38 = vld [vmem:[%s2637_s24 + $0x39] sm:$0xff]  ;;  %v262_v40 = vld [vmem:[%s2637_s24 + $0x41] sm:$0xff] }
  0x16   : > { %2438 = vmatprep.subr.bf16.mxu0 %v2437_v25  ;;  %2422 = vmatprep.subr.bf16.mxu1 %v2421_v26  ;;  %v1058_v35 = vld [vmem:[%s2637_s24 + $0xc] sm:$0xff]  ;;  %v1059_v39 = vld [vmem:[%s2637_s24 + $0x14] sm:$0xff]  ;;  %v1060_v42 = vld [vmem:[%s2637_s24 + $0x1c] sm:$0xff] }
  0x17   : > { %2250 = vmatmul.mubr.msk.f32.gmra.mrb[2].mxu1 %vm266_vm0, %v257_v27  ;;  %2326 = vmatmul.mubr.msk.f32.gmra.mrb[2].mxu0 %vm266_vm0, %v894_v28  ;;  %v263_v43 = vld [vmem:[%s2637_s24 + $0x49] sm:$0xff]  ;;  %v242_v45 = vld [vmem:[%s2637_s24] sm:$0xff]  ;;  %v1063_v50 = vld [vmem:[%s2637_s24 + $0x34] sm:$0xff] }
  0x18   : > { %2252 = vmatprep.mubr.msk.f32.mxu1 %vm266_vm0, %v258_v29  ;;  %2328 = vmatprep.mubr.msk.f32.mxu0 %vm266_vm0, %v895_v30  ;;  %v1061_v44 = vld [vmem:[%s2637_s24 + $0x24] sm:$0xff]  ;;  %v1062_v46 = vld [vmem:[%s2637_s24 + $0x2c] sm:$0xff]  ;;  %v1064_v52 = vld [vmem:[%s2637_s24 + $0x3c] sm:$0xff] }
  0x19   : > { %v243_v49 = vld [vmem:[%s2637_s24 + $0x8] sm:$0xff]  ;;  %v244_v51 = vld [vmem:[%s2637_s24 + $0x10] sm:$0xff]  ;;  %v245_v54 = vld [vmem:[%s2637_s24 + $0x18] sm:$0xff]  ;;  %1758 = vperm.xlu0 %2542, %v1730_v59   ;;  %1763 = vperm.xlu1 %2543, %v1731_v60  }
  0x1a   : > { %v1065_v55 = vld [vmem:[%s2637_s24 + $0x44] sm:$0xff]  ;;  %v1066_v57 = vld [vmem:[%s2637_s24 + $0x4c] sm:$0xff]  ;;  %v1067_v62 = vld [vmem:[%s2637_s24 + $0x54] sm:$0xff] }
  0x1b   : > { %2253 = vmatmul.mubr.msk.f32.gmra.mrb[4].mxu1 %vm266_vm0, %v259_v32  ;;  %2329 = vmatmul.mubr.msk.f32.gmra.mrb[4].mxu0 %vm266_vm0, %v896_v33  ;;  %v246_v56 = vld [vmem:[%s2637_s24 + $0x20] sm:$0xff]  ;;  %v247_v61 = vld [vmem:[%s2637_s24 + $0x28] sm:$0xff]  ;;  %v248_v63 = vld [vmem:[%s2637_s24 + $0x30] sm:$0xff] }
  0x1c   : > { %2255 = vmatprep.mubr.msk.f32.mxu1 %vm266_vm0, %v260_v34  ;;  %2341 = vmatprep.mubr.msk.f32.mxu0 %vm266_vm0, %v1058_v35  ;;  %v249_v5 = vld [vmem:[%s2637_s24 + $0x38] sm:$0xff]  ;;  %v250_v6 = vld [vmem:[%s2637_s24 + $0x40] sm:$0xff]  ;;  %v1735_v9 = vld [vmem:[%s2910_s2 + $0x48] sm:$0xff] }
  0x1d   : > { %1768 = vperm.xlu0 %2542, %v1732_v2   ;;  %1773 = vperm.xlu1 %2543, %v1733_v4   ;;  %v251_v10 = vld [vmem:[%s2637_s24 + $0x48] sm:$0xff]  ;;  %v559_v13 = vld [vmem:[%s2637_s24 + $0x12] sm:$0xff]  ;;  %v560_v14 = vld [vmem:[%s2637_s24 + $0x1a] sm:$0xff] }
  0x1e   : > { %v557_v11 = vld [vmem:[%s2637_s24 + $0x2] sm:$0xff]  ;;  %v558_v12 = vld [vmem:[%s2637_s24 + $0xa] sm:$0xff]  ;;  %v563_v18 = vld [vmem:[%s2637_s24 + $0x32] sm:$0xff] }
  0x1f   : > { %2256 = vmatmul.mubr.msk.f32.gmra.mrb[6].mxu1 %vm266_vm0, %v261_v38  ;;  %2342 = vmatmul.mubr.msk.f32.vlgmr.msra.gmra.mrb[0].mxu0 %vm266_vm0, %v1059_v39  ;;  %v561_v15 = vld [vmem:[%s2637_s24 + $0x22] sm:$0xff]  ;;  %v562_v16 = vld [vmem:[%s2637_s24 + $0x2a] sm:$0xff]  ;;  %v1392_v19 = vld [vmem:[%s2637_s24 + $0x15] sm:$0xff] }
  0x20   : > { %2440 = vmatpush3.bf16.msra.mxu0 %v2437_v25  ;;  %2258 = vmatprep.mubr.msk.f32.mxu1 %vm266_vm0, %v262_v40  ;;  %v1234_v17 = vld [vmem:[%s2637_s24 + $0x5c] sm:$0xff]  ;;  %v1394_v23 = vld [vmem:[%s2637_s24 + $0x25] sm:$0xff]  ;;  %v1395_v25 = vld [vmem:[%s2637_s24 + $0x2d] sm:$0xff] }
  0x21   : > { %2344 = vmatprep.mubr.msk.f32.mxu0 %vm266_vm0, %v1060_v42  ;;  %2442 = vmatprep.subr.bf16.mxu0 %v2441_v41  ;;  %v564_v20 = vld [vmem:[%s2637_s24 + $0x3a] sm:$0xff]  ;;  %v565_v22 = vld [vmem:[%s2637_s24 + $0x42] sm:$0xff]  ;;  %v566_v24 = vld [vmem:[%s2637_s24 + $0x4a] sm:$0xff] }
  0x22   : > { %1778 = vperm.xlu0 %2542, %v1734_v8   ;;  %1783 = vperm.xlu1 %2543, %v1735_v9   ;;  %v1393_v21 = vld [vmem:[%s2637_s24 + $0x1d] sm:$0xff]  ;;  %v1398_v28 = vld [vmem:[%s2637_s24 + $0x45] sm:$0xff]  ;;  %v1399_v29 = vld [vmem:[%s2637_s24 + $0x4d] sm:$0xff] }
  0x23   : > { %2259 = vmatmul.mubr.msk.f32.gmra.mrb[8].mxu1 %vm266_vm0, %v263_v43  ;;  %2345 = vmatmul.mubr.msk.f32.gmra.mrb[2].mxu0 %vm266_vm0, %v1061_v44  ;;  %v1397_v27 = vld [vmem:[%s2637_s24 + $0x3d] sm:$0xff]  ;;  %v1400_v30 = vld [vmem:[%s2637_s24 + $0x55] sm:$0xff]  ;;  %v1561_v33 = vld [vmem:[%s2637_s24 + $0x26] sm:$0xff] }
  0x24   : > { %2265 = vmatprep.mubr.msk.f32.mxu1 %vm266_vm0, %v242_v45  ;;  %2347 = vmatprep.mubr.msk.f32.mxu0 %vm266_vm0, %v1062_v46  ;;  %v1401_v31 = vld [vmem:[%s2637_s24 + $0x5d] sm:$0xff]  ;;  %v733_v34 = vld [vmem:[%s2637_s24 + $0x52] sm:$0xff] }
  0x25   : > { %v1559_v32 = vld [vmem:[%s2637_s24 + $0x16] sm:$0xff]  ;;  %v1562_v35 = vld [vmem:[%s2637_s24 + $0x2e] sm:$0xff]  ;;  %v898_v38 = vld [vmem:[%s2637_s24 + $0x43] sm:$0xff] }
  0x26   : > { %v897_v36 = vld [vmem:[%s2637_s24 + $0x3b] sm:$0xff]  ;;  %v899_v40 = vld [vmem:[%s2637_s24 + $0x4b] sm:$0xff] }
  0x27   : > { %2266 = vmatmul.mubr.msk.f32.vlgmr.msra.gmra.mrb[0].mxu1 %vm266_vm0, %v243_v49  ;;  %2348 = vmatmul.mubr.msk.f32.gmra.mrb[4].mxu0 %vm266_vm0, %v1063_v50  ;;  %v1563_v37 = vld [vmem:[%s2637_s24 + $0x36] sm:$0xff]  ;;  %v1566_v43 = vld [vmem:[%s2637_s24 + $0x4e] sm:$0xff]  ;;  %v1568_v45 = vld [vmem:[%s2637_s24 + $0x5e] sm:$0xff] }
  0x28   : > { %2268 = vmatprep.mubr.msk.f32.mxu1 %vm266_vm0, %v244_v51  ;;  %2350 = vmatprep.mubr.msk.f32.mxu0 %vm266_vm0, %v1064_v52 }
  0x29   : > { %2424 = vmatpush3.bf16.msra.mxu1 %v2421_v26  ;;  %v1396_v26 = vld [vmem:[%s2637_s24 + $0x35] sm:$0xff] }
  0x2a   : > { %2426 = vmatprep.subr.bf16.mxu1 %v2425_v53 }
  0x2b   : > { %2269 = vmatmul.mubr.msk.f32.gmra.mrb[2].mxu1 %vm266_vm0, %v245_v54  ;;  %2351 = vmatmul.mubr.msk.f32.gmra.mrb[6].mxu0 %vm266_vm0, %v1065_v55 }
  0x2c   : > { %2271 = vmatprep.mubr.msk.f32.mxu1 %vm266_vm0, %v246_v56  ;;  %2353 = vmatprep.mubr.msk.f32.mxu0 %vm266_vm0, %v1066_v57 }
  0x2f   : > { %2272 = vmatmul.mubr.msk.f32.gmra.mrb[4].mxu1 %vm266_vm0, %v247_v61  ;;  %2354 = vmatmul.mubr.msk.f32.gmra.mrb[8].mxu0 %vm266_vm0, %v1067_v62 }
  0x30   : > { %2274 = vmatprep.mubr.msk.f32.mxu1 %vm266_vm0, %v248_v63  ;;  %2360 = vmatprep.mubr.msk.f32.mxu0 %vm266_vm0, %v1059_v39  ;;  %v1564_v39 = vld [vmem:[%s2637_s24 + $0x3e] sm:$0xff] }
  0x33   : > { %2275 = vmatmul.mubr.msk.f32.gmra.mrb[6].mxu1 %vm266_vm0, %v249_v5  ;;  %2361 = vmatmul.mubr.msk.f32.vlgmr.msra.gmra.mrb[0].mxu0 %vm266_vm0, %v1060_v42  ;;  %v900_v42 = vld [vmem:[%s2637_s24 + $0x53] sm:$0xff] }
  0x34   : > { %2444 = vmatpush3.bf16.msra.mxu0 %v2441_v41  ;;  %2277 = vmatprep.mubr.msk.f32.mxu1 %vm266_vm0, %v250_v6  ;;  %v1565_v41 = vld [vmem:[%s2637_s24 + $0x46] sm:$0xff] }
  0x35   : > { %2363 = vmatprep.mubr.msk.f32.mxu0 %vm266_vm0, %v1061_v44  ;;  %2446 = vmatprep.subr.bf16.mxu0 %v2445_v7  ;;  %v1567_v44 = vld [vmem:[%s2637_s24 + $0x56] sm:$0xff] }
  0x37   : > { %2278 = vmatmul.mubr.msk.f32.gmra.mrb[8].mxu1 %vm266_vm0, %v251_v10  ;;  %2364 = vmatmul.mubr.msk.f32.gmra.mrb[2].mxu0 %vm266_vm0, %v1062_v46 }
  0x38   : > { %2284 = vmatprep.mubr.msk.f32.mxu1 %vm266_vm0, %v557_v11  ;;  %2366 = vmatprep.mubr.msk.f32.mxu0 %vm266_vm0, %v1063_v50 }
  0x3b   : > { %2285 = vmatmul.mubr.msk.f32.vlgmr.msra.gmra.mrb[0].mxu1 %vm266_vm0, %v558_v12  ;;  %2367 = vmatmul.mubr.msk.f32.gmra.mrb[4].mxu0 %vm266_vm0, %v1064_v52 }
  0x3c   : > { %2287 = vmatprep.mubr.msk.f32.mxu1 %vm266_vm0, %v559_v13  ;;  %2369 = vmatprep.mubr.msk.f32.mxu0 %vm266_vm0, %v1065_v55 }
  0x3d   : > { %2428 = vmatpush3.bf16.msra.mxu1 %v2425_v53 }
  0x3e   : > { %2449 = vmatprep.subr.bf16.mxu1 %v2600_v3 }
  0x3f   : > { %2288 = vmatmul.mubr.msk.f32.gmra.mrb[2].mxu1 %vm266_vm0, %v560_v14  ;;  %2370 = vmatmul.mubr.msk.f32.gmra.mrb[6].mxu0 %vm266_vm0, %v1066_v57 }
  0x40   : > { %2290 = vmatprep.mubr.msk.f32.mxu1 %vm266_vm0, %v561_v15  ;;  %2372 = vmatprep.mubr.msk.f32.mxu0 %vm266_vm0, %v1067_v62 }
  0x43   : > { %2291 = vmatmul.mubr.msk.f32.gmra.mrb[4].mxu1 %vm266_vm0, %v562_v16  ;;  %2373 = vmatmul.mubr.msk.f32.gmra.mrb[8].mxu0 %vm266_vm0, %v1234_v17 }
  0x44   : > { %2293 = vmatprep.mubr.msk.f32.mxu1 %vm266_vm0, %v563_v18  ;;  %2379 = vmatprep.mubr.msk.f32.mxu0 %vm266_vm0, %v1392_v19 }
  0x47   : > { %2294 = vmatmul.mubr.msk.f32.gmra.mrb[6].mxu1 %vm266_vm0, %v564_v20  ;;  %2380 = vmatmul.mubr.msk.f32.vlgmr.msra.gmra.mrb[0].mxu0 %vm266_vm0, %v1393_v21 }
  0x48   : > { %2448 = vmatpush3.bf16.msra.mxu0 %v2445_v7  ;;  %2296 = vmatprep.mubr.msk.f32.mxu1 %vm266_vm0, %v565_v22 }
  0x49   : > { %2382 = vmatprep.mubr.msk.f32.mxu0 %vm266_vm0, %v1394_v23 }
  0x4b   : > { %2297 = vmatmul.mubr.msk.f32.gmra.mrb[8].mxu1 %vm266_vm0, %v566_v24  ;;  %2383 = vmatmul.mubr.msk.f32.gmra.mrb[2].mxu0 %vm266_vm0, %v1395_v25 }
  0x4c   : > { %2303 = vmatprep.mubr.msk.f32.mxu1 %vm266_vm0, %v558_v12  ;;  %2385 = vmatprep.mubr.msk.f32.mxu0 %vm266_vm0, %v1396_v26 }
  0x4f   : > { %2304 = vmatmul.mubr.msk.f32.vlgmr.msra.gmra.mrb[0].mxu1 %vm266_vm0, %v559_v13  ;;  %2386 = vmatmul.mubr.msk.f32.gmra.mrb[4].mxu0 %vm266_vm0, %v1397_v27 }
  0x50   : > { %2306 = vmatprep.mubr.msk.f32.mxu1 %vm266_vm0, %v560_v14  ;;  %2388 = vmatprep.mubr.msk.f32.mxu0 %vm266_vm0, %v1398_v28 }
  0x51   : > { %2450 = vmatpush3.bf16.msra.mxu1 %v2600_v3  ;;  %v1560_v3 = vld [vmem:[%s2637_s24 + $0x1e] sm:$0xff]  ;;  %s2855_s24 = scalar_lea.vmem %s2911_s3, %s2532_s10 }
  0x53   : > { %2307 = vmatmul.mubr.msk.f32.gmra.mrb[2].mxu1 %vm266_vm0, %v561_v15  ;;  %2389 = vmatmul.mubr.msk.f32.gmra.mrb[6].mxu0 %vm266_vm0, %v1399_v29 }
  0x54   : > { %2309 = vmatprep.mubr.msk.f32.mxu1 %vm266_vm0, %v562_v16  ;;  %2391 = vmatprep.mubr.msk.f32.mxu0 %vm266_vm0, %v1400_v30 }
  0x57   : > { %2310 = vmatmul.mubr.msk.f32.gmra.mrb[4].mxu1 %vm266_vm0, %v563_v18  ;;  %2392 = vmatmul.mubr.msk.f32.gmra.mrb[8].mxu0 %vm266_vm0, %v1401_v31 }
  0x58   : > { %2312 = vmatprep.mubr.msk.f32.mxu1 %vm266_vm0, %v564_v20  ;;  %2398 = vmatprep.mubr.msk.f32.mxu0 %vm266_vm0, %v1559_v32 }
  0x5b   : > { %2313 = vmatmul.mubr.msk.f32.gmra.mrb[6].mxu1 %vm266_vm0, %v565_v22  ;;  %2399 = vmatmul.mubr.msk.f32.vlgmr.msra.gmra.mrb[0].mxu0 %vm266_vm0, %v1560_v3 }
  0x5c   : > { %2315 = vmatprep.mubr.msk.f32.mxu1 %vm266_vm0, %v566_v24  ;;  %2401 = vmatprep.mubr.msk.f32.mxu0 %vm266_vm0, %v1561_v33 }
  0x5f   : > { %2316 = vmatmul.mubr.msk.f32.gmra.mrb[8].mxu1 %vm266_vm0, %v733_v34  ;;  %2402 = vmatmul.mubr.msk.f32.gmra.mrb[2].mxu0 %vm266_vm0, %v1562_v35 }
  0x60   : > { %2331 = vmatprep.mubr.msk.f32.mxu1 %vm266_vm0, %v897_v36  ;;  %2404 = vmatprep.mubr.msk.f32.mxu0 %vm266_vm0, %v1563_v37 }
  0x63   : > { %2332 = vmatmul.mubr.msk.f32.vlgmr.msra.gmra.mrb[6].mxu1 %vm266_vm0, %v898_v38  ;;  %2405 = vmatmul.mubr.msk.f32.gmra.mrb[4].mxu0 %vm266_vm0, %v1564_v39 }
  0x64   : > { %2334 = vmatprep.mubr.msk.f32.mxu1 %vm266_vm0, %v899_v40  ;;  %2407 = vmatprep.mubr.msk.f32.mxu0 %vm266_vm0, %v1565_v41 }
  0x67   : > { %2335 = vmatmul.mubr.msk.f32.gmra.mrb[8].mxu1 %vm266_vm0, %v900_v42  ;;  %2408 = vmatmul.mubr.msk.f32.gmra.mrb[6].mxu0 %vm266_vm0, %v1566_v43 }
  0x68   : > { %2410 = vmatprep.mubr.msk.f32.mxu0 %vm266_vm0, %v1567_v44 }
  0x6b   : > { %2411 = vmatmul.mubr.msk.f32.gmra.mrb[8].mxu0 %vm266_vm0, %v1568_v45 }
  0x8a   : > { %v1739_v51 = vpop.permute.xlu0 %1738 }
  0x8b   : > { %v1749_v49 = vpop.permute.xlu1 %1748 }
  0x8e   : > { %v1744_v56 = vpop.permute.xlu0 %1743 }
  0x8f   : > { %v1754_v54 = vpop.permute.xlu1 %1753 }
  0x98   : > { %v1764_v1 = vpop.permute.xlu1 %1763  ;;  %v1759_v10 = vpop.permute.xlu0 %1758 }
  0x9c   : > { %v1774_v28 = vpop.permute.xlu1 %1773 }
 0x122   : > { %v2305_v46 = vpop.f32.mrb[0].mxu1 }
 0x123   : > { %v832_v47 = vpop.f32.mrb[1].mxu1 }
 0x126   : > { %v2308_v48 = vpop.f32.mrb[2].mxu1 }
 0x127   : > { %v842_v50 = vpop.f32.mrb[3].mxu1 }
 0x12a   : > { %v2311_v52 = vpop.f32.mrb[4].mxu1 }
 0x12b   : > { %v852_v53 = vpop.f32.mrb[5].mxu1 }
 0x12e   : > { %v2400_v55 = vpop.f32.mrb[0].mxu0 }
 0x12f   : > { %v2451_v57 = vadd.f32 %v2400_v55, %v2305_v46  ;;  %v1667_v58 = vpop.f32.mrb[1].mxu0 }
 0x130   : > { %v2452_v59 = vadd.f32 %v1667_v58, %v832_v47  ;;  %v1769_v47 = vpop.permute.xlu0 %1768 }
 0x131   : > { %v1787_v60 = vmul.f32 %v2451_v57, %v1744_v56  ;;  %v2125_v61 = vpack.c.bf16 %v2451_v57, %v2451_v57 }
 0x132   : > { %v1786_v62 = vmul.f32 %v2452_v59, %v1739_v51  ;;  %v2124_v63 = vpack.c.bf16 %v2452_v59, %v2452_v59  ;;  %v2403_v0 = vpop.f32.mrb[2].mxu0 }
 0x133   : > { %v1797_v2 = vsel %vm266_vm0, %v1787_v60, 0.0  ;;  %v1824_v4 = vmul.f32 %v2451_v57, %v1787_v60  ;;  %1901 = vst.msk [vmem:[%s2855_s24 + $0x4] sm:$0xf] %vm1899_vm1, %v2125_v61  ;;  %v2453_v5 = vadd.f32 %v2403_v0, %v2308_v48  ;;  %v1677_v6 = vpop.f32.mrb[3].mxu0 }
 0x134   : > { %v1796_v7 = vsel %vm266_vm0, %v1786_v62, 0.0  ;;  %v1823_v8 = vmul.f32 %v2452_v59, %v1786_v62  ;;  %1900 = vst.msk [vmem:[%s2855_s24] sm:$0xf] %vm1899_vm1, %v2124_v63  ;;  %v2454_v9 = vadd.f32 %v1677_v6, %v842_v50 }
 0x135   : > { %v1834_v11 = vsel %vm266_vm0, %v1824_v4, 0.0  ;;  %v1798_v12 = vadd.f32 %v1797_v2, %v1796_v7  ;;  %v1789_v13 = vmul.f32 %v2453_v5, %v1754_v54  ;;  %v2127_v14 = vpack.c.bf16 %v2453_v5, %v2453_v5 }
 0x136   : > { %v1833_v15 = vsel %vm266_vm0, %v1823_v8, 0.0  ;;  %v1788_v16 = vmul.f32 %v2454_v9, %v1749_v49  ;;  %v2126_v17 = vpack.c.bf16 %v2454_v9, %v2454_v9  ;;  %v2333_v18 = vpop.f32.mrb[6].mxu1  ;;  %v2406_v19 = vpop.f32.mrb[4].mxu0 }
 0x137   : > { %v1835_v20 = vadd.f32 %v1834_v11, %v1833_v15  ;;  %v1826_v21 = vmul.f32 %v2453_v5, %v1789_v13  ;;  %1903 = vst.msk [vmem:[%s2855_s24 + $0xc] sm:$0xf] %vm1899_vm1, %v2127_v14  ;;  %v2455_v22 = vadd.f32 %v2406_v19, %v2311_v52  ;;  %v1029_v23 = vpop.f32.mrb[7].mxu1  ;;  %v1687_v24 = vpop.f32.mrb[5].mxu0  ;;  %v1801_v32 = vsel %vm266_vm0, %v1789_v13, 0.0 }
 0x138   : > { %v1799_v25 = vsel %vm266_vm0, %v1788_v16, 0.0  ;;  %v1825_v26 = vmul.f32 %v2454_v9, %v1788_v16  ;;  %1902 = vst.msk [vmem:[%s2855_s24 + $0x8] sm:$0xf] %vm1899_vm1, %v2126_v17  ;;  %v2456_v27 = vadd.f32 %v1687_v24, %v852_v53 }
 0x139   : > { %v1800_v29 = vadd.f32 %v1799_v25, %v1798_v12  ;;  %v1791_v30 = vmul.f32 %v2455_v22, %v1764_v1  ;;  %v2129_v31 = vpack.c.bf16 %v2455_v22, %v2455_v22  ;;  %v1838_v37 = vsel %vm266_vm0, %v1826_v21, 0.0  ;;  %v1784_v1 = vpop.permute.xlu1 %1783 }
 0x13a   : > { %v1836_v3 = vsel %vm266_vm0, %v1825_v26, 0.0  ;;  %v1790_v33 = vmul.f32 %v2456_v27, %v1759_v10  ;;  %v2128_v34 = vpack.c.bf16 %v2456_v27, %v2456_v27  ;;  %v2336_v35 = vpop.f32.mrb[8].mxu1  ;;  %v2409_v36 = vpop.f32.mrb[6].mxu0 }
 0x13b   : > { %v1837_v38 = vadd.f32 %v1836_v3, %v1835_v20  ;;  %v1828_v39 = vmul.f32 %v2455_v22, %v1791_v30  ;;  %1905 = vst.msk [vmem:[%s2855_s24 + $0x14] sm:$0xf] %vm1899_vm1, %v2129_v31  ;;  %v1802_v40 = vadd.f32 %v1801_v32, %v1800_v29  ;;  %v1039_v41 = vpop.f32.mrb[9].mxu1  ;;  %v1697_v42 = vpop.f32.mrb[7].mxu0  ;;  %v2457_v45 = vadd.f32 %v2409_v36, %v2333_v18 }
 0x13c   : > { %v1803_v43 = vsel %vm266_vm0, %v1790_v33, 0.0  ;;  %v1827_v44 = vmul.f32 %v2456_v27, %v1790_v33  ;;  %1904 = vst.msk [vmem:[%s2855_s24 + $0x10] sm:$0xf] %vm1899_vm1, %v2128_v34  ;;  %v2458_v46 = vadd.f32 %v1697_v42, %v1029_v23  ;;  %v1805_v48 = vsel %vm266_vm0, %v1791_v30, 0.0  ;;  %v1779_v10 = vpop.permute.xlu0 %1778 }
 0x13d   : > { %v1804_v49 = vadd.f32 %v1803_v43, %v1802_v40  ;;  %v1839_v50 = vadd.f32 %v1838_v37, %v1837_v38  ;;  %v1793_v52 = vmul.f32 %v2457_v45, %v1774_v28  ;;  %v2131_v53 = vpack.c.bf16 %v2457_v45, %v2457_v45 }
 0x13e   : > { %v1840_v51 = vsel %vm266_vm0, %v1827_v44, 0.0  ;;  %v1792_v54 = vmul.f32 %v2458_v46, %v1769_v47  ;;  %v2412_v55 = vpop.f32.mrb[8].mxu0  ;;  %v2130_v58 = vpack.c.bf16 %v2458_v46, %v2458_v46  ;;  %v1842_v61 = vsel %vm266_vm0, %v1828_v39, 0.0 }
 0x13f   : > { %v1841_v56 = vadd.f32 %v1840_v51, %v1839_v50  ;;  %v1806_v57 = vadd.f32 %v1805_v48, %v1804_v49  ;;  %v2459_v59 = vadd.f32 %v2412_v55, %v2336_v35  ;;  %v1707_v60 = vpop.f32.mrb[9].mxu0  ;;  %v1830_v62 = vmul.f32 %v2457_v45, %v1793_v52  ;;  %1907 = vst.msk [vmem:[%s2855_s24 + $0x1c] sm:$0xf] %vm1899_vm1, %v2131_v53 }
 0x140   : > { %v1807_v63 = vsel %vm266_vm0, %v1792_v54, 0.0  ;;  %v1829_v0 = vmul.f32 %v2458_v46, %v1792_v54  ;;  %1906 = vst.msk [vmem:[%s2855_s24 + $0x18] sm:$0xf] %vm1899_vm1, %v2130_v58  ;;  %v1809_v6 = vsel %vm266_vm0, %v1793_v52, 0.0  ;;  %v2460_v9 = vadd.f32 %v1707_v60, %v1039_v41 }
 0x141   : > { %v1808_v2 = vadd.f32 %v1807_v63, %v1806_v57  ;;  %v1843_v4 = vadd.f32 %v1842_v61, %v1841_v56  ;;  %v2133_v5 = vpack.c.bf16 %v2459_v59, %v2459_v59  ;;  %v1795_v8 = vmul.f32 %v2459_v59, %v1784_v1 }
 0x142   : > { %v1844_v7 = vsel %vm266_vm0, %v1829_v0, 0.0  ;;  %v1846_v13 = vsel %vm266_vm0, %v1830_v62, 0.0  ;;  %v1794_v14 = vmul.f32 %v2460_v9, %v1779_v10  ;;  %v2132_v15 = vpack.c.bf16 %v2460_v9, %v2460_v9 }
 0x143   : > { %v1845_v11 = vadd.f32 %v1844_v7, %v1843_v4  ;;  %1909 = vst.msk [vmem:[%s2855_s24 + $0x24] sm:$0xf] %vm1899_vm1, %v2133_v5  ;;  %v1810_v12 = vadd.f32 %v1809_v6, %v1808_v2  ;;  %v1832_v17 = vmul.f32 %v2459_v59, %v1795_v8  ;;  %v1813_v21 = vsel %vm266_vm0, %v1795_v8, 0.0 }
 0x144   : > { %v1811_v18 = vsel %vm266_vm0, %v1794_v14, 0.0  ;;  %v1831_v19 = vmul.f32 %v2460_v9, %v1794_v14  ;;  %1908 = vst.msk [vmem:[%s2855_s24 + $0x20] sm:$0xf] %vm1899_vm1, %v2132_v15 }
 0x145   : > { %v1847_v16 = vadd.f32 %v1846_v13, %v1845_v11  ;;  %v1812_v20 = vadd.f32 %v1811_v18, %v1810_v12  ;;  %v1850_v25 = vsel %vm266_vm0, %v1832_v17, 0.0 }
 0x146   : > { %v1848_v22 = vsel %vm266_vm0, %v1831_v19, 0.0 }
 0x147   : > { %v1814_v23 = vadd.f32 %v1813_v21, %v1812_v20  ;;  %v1849_v24 = vadd.f32 %v1848_v22, %v1847_v16 }
 0x149   : > { %v1815_v26 = vrot.slane %v1814_v23, 4  ;;  %v1851_v27 = vadd.f32 %v1850_v25, %v1849_v24 }
 0x14b   : > { %v1816_v28 = vadd.f32 %v1815_v26, %v1814_v23  ;;  %v1852_v29 = vrot.slane %v1851_v27, 4 }
 0x14d   : > { %v1817_v30 = vrot.slane %v1816_v28, 2  ;;  %v1853_v31 = vadd.f32 %v1852_v29, %v1851_v27 }
 0x14f   : > { %v1818_v32 = vadd.f32 %v1817_v30, %v1816_v28  ;;  %v1854_v3 = vrot.slane %v1853_v31, 2 }
 0x151   : > { %v1819_v33 = vrot.slane %v1818_v32, 1  ;;  %v1855_v34 = vadd.f32 %v1854_v3, %v1853_v31 }
 0x153   : > { %v1820_v35 = vadd.f32 %v1819_v33, %v1818_v32  ;;  %v1856_v36 = vrot.slane %v1855_v34, 1 }
 0x155   : > { %1822 = vst.msk [vmem:[%s238_s15] sm:$0x1] %vm1821_vm2, %v1820_v35  ;;  %v1857_v37 = vadd.f32 %v1856_v36, %v1855_v34 }
 0x157   : > { %1858 = vst.msk [vmem:[%s241_s20] sm:$0x1] %vm1821_vm2, %v1857_v37 }
 0x158 PF: > { %s16_s18 = sadd.s32 1, %s2550_s18  }
 0x159   : > { %p13_p4 = scmp.ge.s32.totalorder %s16_s18, 4  }
 0x15b   :  { %15 = sbr.rel (!%p13_p4) target bundleno = 1 (0x1), region = 86 }

// kernel: detector_forward.9
= control target key start
LH: loop header
LB: loop body
LE: loop exit
PB: predicated region body
PF: predicated region fallthrough
CT: control target
= control target key end

     0   :  { %vm110_vm0 = vcmask 1040384   ;;  %vm111_vm1 = vcmask 1041408   ;;  %vm85_vm2 = vcmask 23552   ;;  %v513_v1 = vmov 65535   ;;  %s715_s1 = inlined_call_operand.vmem [shape: bf16[3,16], index: 1, kind: input, shape index: {}]   ;;  %s716_s0 = inlined_call_operand.vmem [shape: bf16[128,3], index: 0, kind: input, shape index: {}]   ;;  %s717_s3 = inlined_call_operand.vmem [shape: bf16[128,16], index: 3, kind: input, shape index: {}]   ;;  %s718_s4 = inlined_call_operand.vmem [shape: f32[1,16], index: 4, kind: input, shape index: {}]   ;;  %s719_s2 = inlined_call_operand.vmem [shape: f32[1,16], index: 2, kind: input, shape index: {}]   ;;  %s720_s5 = inlined_call_operand.vmem [shape: bf16[128,16], index: 5, kind: output, shape index: {}]  }
   0x1   :  { %v37_v0 = vld [vmem:[%s715_s1] sm:$0x3]  ;;  %v112_v2 = vsel %vm110_vm0, 4294967295, %v513_v1  ;;  %v507_v7 = vld [vmem:[%s716_s0 + $0x8] sm:$0xff]   ;;  %v509_v9 = vld [vmem:[%s716_s0 + $0x10] sm:$0xff]   ;;  %vm365_vm3 = vcmask 125952  }
   0x2   :  { %v505_v3 = vld [vmem:[%s716_s0] sm:$0xff]   ;;  %v113_v4 = vsel %vm111_vm1, %v112_v2, 0  ;;  %v508_v8 = vld [vmem:[%s716_s0 + $0x28] sm:$0xff]   ;;  %v510_v10 = vld [vmem:[%s716_s0 + $0x30] sm:$0xff]  }
   0x3   :  { %v506_v5 = vld [vmem:[%s716_s0 + $0x20] sm:$0xff]   ;;  %v115_v6 = vand.u32 %v113_v4, %v37_v0  ;;  %486 = vmatprep.mubr.msk.bf16.mxu0 %vm85_vm2, %v505_v3  ;;  %v511_v11 = vld [vmem:[%s716_s0 + $0x18] sm:$0xff]   ;;  %v468_v13 = vld [vmem:[%s717_s3 + $0x8] sm:$0xff]  }
   0x4   :  { %494 = vmatprep.mubr.msk.bf16.mxu1 %vm85_vm2, %v506_v5  ;;  %v512_v12 = vld [vmem:[%s716_s0 + $0x38] sm:$0xff]   ;;  %v472_v14 = vld [vmem:[%s717_s3 + $0x28] sm:$0xff]   ;;  %v437_v15 = vld [vmem:[%s717_s3] sm:$0xff]   ;;  %v442_v16 = vunpack.c.l.bf16 %v468_v13  ;;  %v443_v26 = vunpack.c.h.bf16 %v468_v13 }
   0x5   :  { %484 = vmatprep.subr.bf16.mxu0 %v115_v6  ;;  %502 = vmatprep.subr.bf16.mxu1 %v115_v6  ;;  %v471_v17 = vld [vmem:[%s717_s3 + $0x20] sm:$0xff]   ;;  %v470_v19 = vld [vmem:[%s717_s3 + $0x18] sm:$0xff]   ;;  %v458_v20 = vunpack.c.l.bf16 %v472_v14  ;;  %v438_v21 = vunpack.c.l.bf16 %v437_v15  ;;  %v469_v23 = vld [vmem:[%s717_s3 + $0x10] sm:$0xff]   ;;  %v459_v28 = vunpack.c.h.bf16 %v472_v14  ;;  %v439_v29 = vunpack.c.h.bf16 %v437_v15 }
   0x6   :  { %485 = vmatpush3.bf16.msra.mxu0 %v115_v6  ;;  %503 = vmatpush3.bf16.msra.mxu1 %v115_v6  ;;  %v403_v18 = vld [vmem:[%s718_s4] ss:$0 sm:$0xff]  ;;  %v474_v22 = vld [vmem:[%s717_s3 + $0x38] sm:$0xff]   ;;  %v473_v24 = vld [vmem:[%s717_s3 + $0x30] sm:$0xff]   ;;  %v454_v25 = vunpack.c.l.bf16 %v471_v17  ;;  %v455_v30 = vunpack.c.h.bf16 %v471_v17  ;;  %v450_v31 = vunpack.c.l.bf16 %v470_v19  ;;  %v446_v33 = vunpack.c.l.bf16 %v469_v23 }
   0x7   :  { %v255_v27 = vmul.f32 %v442_v16, %v403_v18  ;;  %v466_v32 = vunpack.c.l.bf16 %v474_v22  ;;  %v462_v34 = vunpack.c.l.bf16 %v473_v24  ;;  %v263_v35 = vmul.f32 %v458_v20, %v403_v18  ;;  %v609_v39 = vld [vmem:[%s719_s2] ss:$0 sm:$0xff] }
   0x8   :  { %v253_v36 = vmul.f32 %v438_v21, %v403_v18  ;;  %v451_v37 = vunpack.c.h.bf16 %v470_v19  ;;  %v467_v38 = vunpack.c.h.bf16 %v474_v22  ;;  %v261_v40 = vmul.f32 %v454_v25, %v403_v18 }
   0x9   :  { %487 = vmatmul.mubr.msk.bf16.vlgmr.msra.gmra.mrb[0].mxu0 %vm85_vm2, %v507_v7  ;;  %495 = vmatmul.mubr.msk.bf16.vlgmr.msra.gmra.mrb[0].mxu1 %vm85_vm2, %v508_v8  ;;  %v256_v41 = vmul.f32 %v443_v26, %v403_v18  ;;  %v447_v42 = vunpack.c.h.bf16 %v469_v23  ;;  %v463_v43 = vunpack.c.h.bf16 %v473_v24  ;;  %v264_v44 = vmul.f32 %v459_v28, %v403_v18 }
   0xa   :  { %490 = vmatprep.mubr.msk.bf16.mxu0 %vm85_vm2, %v509_v9  ;;  %498 = vmatprep.mubr.msk.bf16.mxu1 %vm85_vm2, %v510_v10  ;;  %v254_v45 = vmul.f32 %v439_v29, %v403_v18  ;;  %v262_v46 = vmul.f32 %v455_v30, %v403_v18  ;;  %v611_v49 = vmul.f32 %v450_v31, %v403_v18 }
   0xb   :  { %v613_v50 = vmul.f32 %v466_v32, %v403_v18  ;;  %v615_v51 = vmul.f32 %v446_v33, %v403_v18  ;;  %v617_v52 = vmul.f32 %v462_v34, %v403_v18  ;;  %v621_v57 = vmul.f32 %v451_v37, %v403_v18 }
   0xc   :  { %v623_v58 = vmul.f32 %v467_v38, %v403_v18  ;;  %v627_v63 = vmul.f32 %v447_v42, %v403_v18  ;;  %v629_v0 = vmul.f32 %v463_v43, %v403_v18 }
  0x11   :  { %491 = vmatmul.mubr.msk.bf16.gmra.mrb[4].mxu0 %vm85_vm2, %v511_v11  ;;  %499 = vmatmul.mubr.msk.bf16.gmra.mrb[4].mxu1 %vm85_vm2, %v512_v12 }
  0xdc   :  { %v488_v47 = vpop.f32.mrb[0].mxu0  ;;  %v496_v48 = vpop.f32.mrb[0].mxu1 }
  0xdd   :  { %v160_v53 = vadd.f32 %v488_v47, %v609_v39  ;;  %v192_v54 = vadd.f32 %v496_v48, %v609_v39  ;;  %v151_v55 = vpop.f32.mrb[1].mxu0  ;;  %v183_v56 = vpop.f32.mrb[1].mxu1 }
  0xde   :  { %v152_v59 = vadd.f32 %v609_v39, %v151_v55  ;;  %v184_v60 = vadd.f32 %v609_v39, %v183_v56  ;;  %v489_v61 = vpop.f32.mrb[2].mxu0  ;;  %v497_v62 = vpop.f32.mrb[2].mxu1 }
  0xdf   :  { %v271_v1 = vadd.f32 %v255_v27, %v160_v53  ;;  %v279_v2 = vadd.f32 %v263_v35, %v192_v54  ;;  %v163_v3 = vadd.f32 %v489_v61, %v609_v39  ;;  %v195_v4 = vadd.f32 %v497_v62, %v609_v39  ;;  %v154_v5 = vpop.f32.mrb[3].mxu0  ;;  %v186_v6 = vpop.f32.mrb[3].mxu1 }
  0xe0   :  { %v269_v7 = vadd.f32 %v253_v36, %v152_v59  ;;  %v277_v8 = vadd.f32 %v261_v40, %v184_v60  ;;  %v155_v9 = vadd.f32 %v609_v39, %v154_v5  ;;  %v187_v10 = vadd.f32 %v609_v39, %v186_v6 }
  0xe1   :  { %v287_v11 = vmax.f32 %v271_v1, 0.0  ;;  %v295_v12 = vmax.f32 %v279_v2, 0.0  ;;  %v272_v13 = vadd.f32 %v256_v41, %v163_v3  ;;  %v280_v14 = vadd.f32 %v264_v44, %v195_v4 }
  0xe2   :  { %v285_v15 = vmax.f32 %v269_v7, 0.0  ;;  %v293_v16 = vmax.f32 %v277_v8, 0.0  ;;  %v270_v17 = vadd.f32 %v254_v45, %v155_v9  ;;  %v278_v18 = vadd.f32 %v262_v46, %v187_v10 }
  0xe3   :  { %v422_v19 = vpack.c.bf16 %v287_v11, %v287_v11  ;;  %v430_v20 = vpack.c.bf16 %v295_v12, %v295_v12  ;;  %v288_v21 = vmax.f32 %v272_v13, 0.0  ;;  %v296_v22 = vmax.f32 %v280_v14, 0.0 }
  0xe4   :  { %v420_v23 = vpack.c.bf16 %v285_v15, %v285_v15  ;;  %v428_v24 = vpack.c.bf16 %v293_v16, %v293_v16  ;;  %v286_v25 = vmax.f32 %v270_v17, 0.0  ;;  %v294_v26 = vmax.f32 %v278_v18, 0.0  ;;  %v492_v27 = vpop.f32.mrb[4].mxu0  ;;  %v500_v28 = vpop.f32.mrb[4].mxu1 }
  0xe5   :  { %368 = vst.msk [vmem:[%s720_s5 + $0x8] sm:$0xf] %vm365_vm3, %v422_v19  ;;  %376 = vst.msk [vmem:[%s720_s5 + $0x28] sm:$0xf] %vm365_vm3, %v430_v20  ;;  %v423_v29 = vpack.c.bf16 %v288_v21, %v288_v21  ;;  %v431_v30 = vpack.c.bf16 %v296_v22, %v296_v22  ;;  %v176_v31 = vadd.f32 %v492_v27, %v609_v39  ;;  %v167_v33 = vpop.f32.mrb[5].mxu0  ;;  %v199_v34 = vpop.f32.mrb[5].mxu1 }
  0xe6   :  { %v208_v32 = vadd.f32 %v500_v28, %v609_v39  ;;  %366 = vst.msk [vmem:[%s720_s5] sm:$0xf] %vm365_vm3, %v420_v23  ;;  %374 = vst.msk [vmem:[%s720_s5 + $0x20] sm:$0xf] %vm365_vm3, %v428_v24  ;;  %v421_v35 = vpack.c.bf16 %v286_v25, %v286_v25  ;;  %v429_v36 = vpack.c.bf16 %v294_v26, %v294_v26  ;;  %v493_v40 = vpop.f32.mrb[6].mxu0  ;;  %v501_v41 = vpop.f32.mrb[6].mxu1 }
  0xe7   :  { %v168_v37 = vadd.f32 %v609_v39, %v167_v33  ;;  %v200_v38 = vadd.f32 %v609_v39, %v199_v34  ;;  %369 = vst.msk [vmem:[%s720_s5 + $0xc] sm:$0xf] %vm365_vm3, %v423_v29  ;;  %377 = vst.msk [vmem:[%s720_s5 + $0x2c] sm:$0xf] %vm365_vm3, %v431_v30  ;;  %v275_v42 = vadd.f32 %v611_v49, %v176_v31  ;;  %v170_v46 = vpop.f32.mrb[7].mxu0  ;;  %v202_v47 = vpop.f32.mrb[7].mxu1 }
  0xe8   :  { %v283_v43 = vadd.f32 %v613_v50, %v208_v32  ;;  %v179_v44 = vadd.f32 %v493_v40, %v609_v39  ;;  %v211_v45 = vadd.f32 %v501_v41, %v609_v39  ;;  %367 = vst.msk [vmem:[%s720_s5 + $0x4] sm:$0xf] %vm365_vm3, %v421_v35  ;;  %375 = vst.msk [vmem:[%s720_s5 + $0x24] sm:$0xf] %vm365_vm3, %v429_v36 }
  0xe9   :  { %v273_v48 = vadd.f32 %v615_v51, %v168_v37  ;;  %v281_v49 = vadd.f32 %v617_v52, %v200_v38  ;;  %v171_v50 = vadd.f32 %v609_v39, %v170_v46  ;;  %v203_v53 = vadd.f32 %v609_v39, %v202_v47 }
  0xea   :  { %v291_v54 = vmax.f32 %v275_v42, 0.0  ;;  %v299_v55 = vmax.f32 %v283_v43, 0.0  ;;  %v276_v56 = vadd.f32 %v621_v57, %v179_v44  ;;  %v284_v59 = vadd.f32 %v623_v58, %v211_v45 }
  0xeb   :  { %v289_v60 = vmax.f32 %v273_v48, 0.0  ;;  %v297_v61 = vmax.f32 %v281_v49, 0.0  ;;  %v274_v62 = vadd.f32 %v627_v63, %v171_v50  ;;  %v282_v1 = vadd.f32 %v629_v0, %v203_v53 }
  0xec   :  { %v426_v2 = vpack.c.bf16 %v291_v54, %v291_v54  ;;  %v434_v51 = vpack.c.bf16 %v299_v55, %v299_v55  ;;  %v292_v3 = vmax.f32 %v276_v56, 0.0  ;;  %v300_v52 = vmax.f32 %v284_v59, 0.0 }
  0xed   :  { %v424_v4 = vpack.c.bf16 %v289_v60, %v289_v60  ;;  %v432_v5 = vpack.c.bf16 %v297_v61, %v297_v61  ;;  %v290_v6 = vmax.f32 %v274_v62, 0.0  ;;  %v298_v39 = vmax.f32 %v282_v1, 0.0 }
  0xee   :  { %372 = vst.msk [vmem:[%s720_s5 + $0x18] sm:$0xf] %vm365_vm3, %v426_v2  ;;  %380 = vst.msk [vmem:[%s720_s5 + $0x38] sm:$0xf] %vm365_vm3, %v434_v51  ;;  %v427_v57 = vpack.c.bf16 %v292_v3, %v292_v3  ;;  %v435_v58 = vpack.c.bf16 %v300_v52, %v300_v52 }
  0xef   :  { %370 = vst.msk [vmem:[%s720_s5 + $0x10] sm:$0xf] %vm365_vm3, %v424_v4  ;;  %378 = vst.msk [vmem:[%s720_s5 + $0x30] sm:$0xf] %vm365_vm3, %v432_v5  ;;  %v425_v63 = vpack.c.bf16 %v290_v6, %v290_v6  ;;  %v433_v0 = vpack.c.bf16 %v298_v39, %v298_v39 }
  0xf0   :  { %373 = vst.msk [vmem:[%s720_s5 + $0x1c] sm:$0xf] %vm365_vm3, %v427_v57  ;;  %381 = vst.msk [vmem:[%s720_s5 + $0x3c] sm:$0xf] %vm365_vm3, %v435_v58 }
  0xf1   :  { %371 = vst.msk [vmem:[%s720_s5 + $0x14] sm:$0xf] %vm365_vm3, %v425_v63  ;;  %379 = vst.msk [vmem:[%s720_s5 + $0x34] sm:$0xf] %vm365_vm3, %v433_v0 }

// kernel: reverse
= control target key start
LH: loop header
LB: loop body
LE: loop exit
PB: predicated region body
PF: predicated region fallthrough
CT: control target
= control target key end

     0   :  { %v503_v3 = vmov 0.0   ;;  %s1018_s0 = inlined_call_operand.vmem [shape: f32[3,3,64,64], index: 0, kind: input, shape index: {}]   ;;  %s1019_s1 = inlined_call_operand.vmem [shape: bf16[3,3,64,64], index: 1, kind: output, shape index: {}]  }
   0x1   :  { %v360_v0 = vld [vmem:[%s1018_s0 + $0x200] sm:$0xff]  ;;  %v376_v19 = vld [vmem:[%s1018_s0 + $0x208] sm:$0xff]  ;;  %v394_v37 = vld [vmem:[%s1018_s0 + $0x210] sm:$0xff] }
   0x2   :  { %v361_v1 = vld [vmem:[%s1018_s0 + $0x140] sm:$0xff]  ;;  %v4_v4 = vpack.c.bf16 %v503_v3, %v360_v0  ;;  %v378_v20 = vld [vmem:[%s1018_s0 + $0x148] sm:$0xff]  ;;  %v48_v22 = vpack.c.bf16 %v503_v3, %v376_v19  ;;  %v396_v38 = vld [vmem:[%s1018_s0 + $0x150] sm:$0xff]  ;;  %v93_v40 = vpack.c.bf16 %v503_v3, %v394_v37 }
   0x3   :  { %v363_v2 = vld [vmem:[%s1018_s0 + $0x80] sm:$0xff]  ;;  %v9_v5 = vpack.c.bf16 %v503_v3, %v361_v1  ;;  %v380_v21 = vld [vmem:[%s1018_s0 + $0x88] sm:$0xff]  ;;  %v53_v23 = vpack.c.bf16 %v503_v3, %v378_v20  ;;  %v398_v39 = vld [vmem:[%s1018_s0 + $0x90] sm:$0xff]  ;;  %v98_v41 = vpack.c.bf16 %v503_v3, %v396_v38 }
   0x4   :  { %v14_v6 = vpack.c.bf16 %v503_v3, %v363_v2  ;;  %v365_v7 = vld [vmem:[%s1018_s0 + $0x1c0] sm:$0xff]  ;;  %5 = vst [vmem:[%s1019_s1] sm:$0xf] %v4_v4  ;;  %v58_v24 = vpack.c.bf16 %v503_v3, %v380_v21  ;;  %v382_v25 = vld [vmem:[%s1018_s0 + $0x1c8] sm:$0xff]  ;;  %377 = vst [vmem:[%s1019_s1 + $0x4] sm:$0xf] %v48_v22  ;;  %v103_v42 = vpack.c.bf16 %v503_v3, %v398_v39 }
   0x5   :  { %v367_v8 = vld [vmem:[%s1018_s0 + $0x100] sm:$0xff]  ;;  %v19_v10 = vpack.c.bf16 %v503_v3, %v365_v7  ;;  %362 = vst [vmem:[%s1019_s1 + $0x60] sm:$0xf] %v9_v5  ;;  %v384_v26 = vld [vmem:[%s1018_s0 + $0x108] sm:$0xff]  ;;  %v63_v28 = vpack.c.bf16 %v503_v3, %v382_v25  ;;  %379 = vst [vmem:[%s1019_s1 + $0x64] sm:$0xf] %v53_v23 }
   0x6   :  { %v369_v9 = vld [vmem:[%s1018_s0 + $0x40] sm:$0xff]  ;;  %v24_v11 = vpack.c.bf16 %v503_v3, %v367_v8  ;;  %364 = vst [vmem:[%s1019_s1 + $0xc0] sm:$0xf] %v14_v6  ;;  %v386_v27 = vld [vmem:[%s1018_s0 + $0x48] sm:$0xff]  ;;  %v68_v29 = vpack.c.bf16 %v503_v3, %v384_v26  ;;  %381 = vst [vmem:[%s1019_s1 + $0xc4] sm:$0xf] %v58_v24 }
   0x7   :  { %v29_v12 = vpack.c.bf16 %v503_v3, %v369_v9  ;;  %v371_v13 = vld [vmem:[%s1018_s0 + $0x180] sm:$0xff]  ;;  %366 = vst [vmem:[%s1019_s1 + $0x20] sm:$0xf] %v19_v10  ;;  %v73_v30 = vpack.c.bf16 %v503_v3, %v386_v27  ;;  %v388_v31 = vld [vmem:[%s1018_s0 + $0x188] sm:$0xff]  ;;  %383 = vst [vmem:[%s1019_s1 + $0x24] sm:$0xf] %v63_v28 }
   0x8   :  { %v373_v14 = vld [vmem:[%s1018_s0 + $0xc0] sm:$0xff]  ;;  %v34_v16 = vpack.c.bf16 %v503_v3, %v371_v13  ;;  %368 = vst [vmem:[%s1019_s1 + $0x80] sm:$0xf] %v24_v11  ;;  %v390_v32 = vld [vmem:[%s1018_s0 + $0xc8] sm:$0xff]  ;;  %v78_v34 = vpack.c.bf16 %v503_v3, %v388_v31  ;;  %385 = vst [vmem:[%s1019_s1 + $0x84] sm:$0xf] %v68_v29 }
   0x9   :  { %v41_v15 = vld [vmem:[%s1018_s0] sm:$0xff]  ;;  %v39_v17 = vpack.c.bf16 %v503_v3, %v373_v14  ;;  %370 = vst [vmem:[%s1019_s1 + $0xe0] sm:$0xf] %v29_v12  ;;  %v392_v33 = vld [vmem:[%s1018_s0 + $0x8] sm:$0xff]  ;;  %v83_v35 = vpack.c.bf16 %v503_v3, %v390_v32  ;;  %387 = vst [vmem:[%s1019_s1 + $0xe4] sm:$0xf] %v73_v30 }
   0xa   :  { %v43_v18 = vpack.c.bf16 %v503_v3, %v41_v15  ;;  %372 = vst [vmem:[%s1019_s1 + $0x40] sm:$0xf] %v34_v16  ;;  %v88_v36 = vpack.c.bf16 %v503_v3, %v392_v33  ;;  %v400_v43 = vld [vmem:[%s1018_s0 + $0x1d0] sm:$0xff]  ;;  %389 = vst [vmem:[%s1019_s1 + $0x44] sm:$0xf] %v78_v34  ;;  %v412_v55 = vld [vmem:[%s1018_s0 + $0x218] sm:$0xff] }
   0xb   :  { %374 = vst [vmem:[%s1019_s1 + $0xa0] sm:$0xf] %v39_v17  ;;  %v402_v44 = vld [vmem:[%s1018_s0 + $0x110] sm:$0xff]  ;;  %391 = vst [vmem:[%s1019_s1 + $0xa4] sm:$0xf] %v83_v35  ;;  %v108_v46 = vpack.c.bf16 %v503_v3, %v400_v43  ;;  %v414_v56 = vld [vmem:[%s1018_s0 + $0x158] sm:$0xff]  ;;  %v138_v58 = vpack.c.bf16 %v503_v3, %v412_v55 }
   0xc   :  { %375 = vst [vmem:[%s1019_s1 + $0x100] sm:$0xf] %v43_v18  ;;  %v404_v45 = vld [vmem:[%s1018_s0 + $0x50] sm:$0xff]  ;;  %393 = vst [vmem:[%s1019_s1 + $0x104] sm:$0xf] %v88_v36  ;;  %v113_v47 = vpack.c.bf16 %v503_v3, %v402_v44  ;;  %v416_v57 = vld [vmem:[%s1018_s0 + $0x98] sm:$0xff]  ;;  %v143_v59 = vpack.c.bf16 %v503_v3, %v414_v56 }
   0xd   :  { %v118_v48 = vpack.c.bf16 %v503_v3, %v404_v45  ;;  %v406_v49 = vld [vmem:[%s1018_s0 + $0x190] sm:$0xff]  ;;  %395 = vst [vmem:[%s1019_s1 + $0x8] sm:$0xf] %v93_v40  ;;  %397 = vst [vmem:[%s1019_s1 + $0x68] sm:$0xf] %v98_v41  ;;  %v148_v60 = vpack.c.bf16 %v503_v3, %v416_v57  ;;  %v418_v61 = vld [vmem:[%s1018_s0 + $0x1d8] sm:$0xff] }
   0xe   :  { %v408_v50 = vld [vmem:[%s1018_s0 + $0xd0] sm:$0xff]  ;;  %399 = vst [vmem:[%s1019_s1 + $0xc8] sm:$0xf] %v103_v42  ;;  %v123_v52 = vpack.c.bf16 %v503_v3, %v406_v49  ;;  %401 = vst [vmem:[%s1019_s1 + $0x28] sm:$0xf] %v108_v46  ;;  %v420_v62 = vld [vmem:[%s1018_s0 + $0x118] sm:$0xff]  ;;  %v153_v0 = vpack.c.bf16 %v503_v3, %v418_v61 }
   0xf   :  { %v410_v51 = vld [vmem:[%s1018_s0 + $0x10] sm:$0xff]  ;;  %v128_v53 = vpack.c.bf16 %v503_v3, %v408_v50  ;;  %403 = vst [vmem:[%s1019_s1 + $0x88] sm:$0xf] %v113_v47  ;;  %405 = vst [vmem:[%s1019_s1 + $0xe8] sm:$0xf] %v118_v48  ;;  %v422_v63 = vld [vmem:[%s1018_s0 + $0x58] sm:$0xff]  ;;  %v158_v1 = vpack.c.bf16 %v503_v3, %v420_v62 }
  0x10   :  { %v133_v54 = vpack.c.bf16 %v503_v3, %v410_v51  ;;  %407 = vst [vmem:[%s1019_s1 + $0x48] sm:$0xf] %v123_v52  ;;  %v163_v2 = vpack.c.bf16 %v503_v3, %v422_v63  ;;  %v424_v4 = vld [vmem:[%s1018_s0 + $0x198] sm:$0xff]  ;;  %413 = vst [vmem:[%s1019_s1 + $0xc] sm:$0xf] %v138_v58  ;;  %v430_v10 = vld [vmem:[%s1018_s0 + $0x220] sm:$0xff] }
  0x11   :  { %409 = vst [vmem:[%s1019_s1 + $0xa8] sm:$0xf] %v128_v53  ;;  %v426_v5 = vld [vmem:[%s1018_s0 + $0xd8] sm:$0xff]  ;;  %415 = vst [vmem:[%s1019_s1 + $0x6c] sm:$0xf] %v143_v59  ;;  %v168_v7 = vpack.c.bf16 %v503_v3, %v424_v4  ;;  %v432_v11 = vld [vmem:[%s1018_s0 + $0x160] sm:$0xff]  ;;  %v183_v13 = vpack.c.bf16 %v503_v3, %v430_v10 }
  0x12   :  { %411 = vst [vmem:[%s1019_s1 + $0x108] sm:$0xf] %v133_v54  ;;  %v428_v6 = vld [vmem:[%s1018_s0 + $0x18] sm:$0xff]  ;;  %417 = vst [vmem:[%s1019_s1 + $0xcc] sm:$0xf] %v148_v60  ;;  %v173_v8 = vpack.c.bf16 %v503_v3, %v426_v5  ;;  %v434_v12 = vld [vmem:[%s1018_s0 + $0xa0] sm:$0xff]  ;;  %v188_v14 = vpack.c.bf16 %v503_v3, %v432_v11 }
  0x13   :  { %v178_v9 = vpack.c.bf16 %v503_v3, %v428_v6  ;;  %419 = vst [vmem:[%s1019_s1 + $0x2c] sm:$0xf] %v153_v0  ;;  %421 = vst [vmem:[%s1019_s1 + $0x8c] sm:$0xf] %v158_v1  ;;  %v193_v15 = vpack.c.bf16 %v503_v3, %v434_v12  ;;  %v436_v16 = vld [vmem:[%s1018_s0 + $0x1e0] sm:$0xff]  ;;  %v448_v28 = vld [vmem:[%s1018_s0 + $0x228] sm:$0xff] }
  0x14   :  { %423 = vst [vmem:[%s1019_s1 + $0xec] sm:$0xf] %v163_v2  ;;  %v438_v17 = vld [vmem:[%s1018_s0 + $0x120] sm:$0xff]  ;;  %425 = vst [vmem:[%s1019_s1 + $0x4c] sm:$0xf] %v168_v7  ;;  %v198_v19 = vpack.c.bf16 %v503_v3, %v436_v16  ;;  %v450_v29 = vld [vmem:[%s1018_s0 + $0x168] sm:$0xff]  ;;  %v228_v31 = vpack.c.bf16 %v503_v3, %v448_v28 }
  0x15   :  { %v440_v18 = vld [vmem:[%s1018_s0 + $0x60] sm:$0xff]  ;;  %427 = vst [vmem:[%s1019_s1 + $0xac] sm:$0xf] %v173_v8  ;;  %429 = vst [vmem:[%s1019_s1 + $0x10c] sm:$0xf] %v178_v9  ;;  %v203_v20 = vpack.c.bf16 %v503_v3, %v438_v17  ;;  %v452_v30 = vld [vmem:[%s1018_s0 + $0xa8] sm:$0xff]  ;;  %v233_v32 = vpack.c.bf16 %v503_v3, %v450_v29 }
  0x16   :  { %v208_v21 = vpack.c.bf16 %v503_v3, %v440_v18  ;;  %v442_v22 = vld [vmem:[%s1018_s0 + $0x1a0] sm:$0xff]  ;;  %431 = vst [vmem:[%s1019_s1 + $0x10] sm:$0xf] %v183_v13  ;;  %433 = vst [vmem:[%s1019_s1 + $0x70] sm:$0xf] %v188_v14  ;;  %v238_v33 = vpack.c.bf16 %v503_v3, %v452_v30  ;;  %v454_v34 = vld [vmem:[%s1018_s0 + $0x1e8] sm:$0xff] }
  0x17   :  { %v444_v23 = vld [vmem:[%s1018_s0 + $0xe0] sm:$0xff]  ;;  %435 = vst [vmem:[%s1019_s1 + $0xd0] sm:$0xf] %v193_v15  ;;  %v213_v25 = vpack.c.bf16 %v503_v3, %v442_v22  ;;  %437 = vst [vmem:[%s1019_s1 + $0x30] sm:$0xf] %v198_v19  ;;  %v456_v35 = vld [vmem:[%s1018_s0 + $0x128] sm:$0xff]  ;;  %v243_v37 = vpack.c.bf16 %v503_v3, %v454_v34 }
  0x18   :  { %v446_v24 = vld [vmem:[%s1018_s0 + $0x20] sm:$0xff]  ;;  %v218_v26 = vpack.c.bf16 %v503_v3, %v444_v23  ;;  %439 = vst [vmem:[%s1019_s1 + $0x90] sm:$0xf] %v203_v20  ;;  %441 = vst [vmem:[%s1019_s1 + $0xf0] sm:$0xf] %v208_v21  ;;  %v458_v36 = vld [vmem:[%s1018_s0 + $0x68] sm:$0xff]  ;;  %v248_v38 = vpack.c.bf16 %v503_v3, %v456_v35 }
  0x19   :  { %v223_v27 = vpack.c.bf16 %v503_v3, %v446_v24  ;;  %443 = vst [vmem:[%s1019_s1 + $0x50] sm:$0xf] %v213_v25  ;;  %v253_v39 = vpack.c.bf16 %v503_v3, %v458_v36  ;;  %v460_v40 = vld [vmem:[%s1018_s0 + $0x1a8] sm:$0xff]  ;;  %449 = vst [vmem:[%s1019_s1 + $0x14] sm:$0xf] %v228_v31  ;;  %v466_v46 = vld [vmem:[%s1018_s0 + $0x230] sm:$0xff] }
  0x1a   :  { %445 = vst [vmem:[%s1019_s1 + $0xb0] sm:$0xf] %v218_v26  ;;  %v462_v41 = vld [vmem:[%s1018_s0 + $0xe8] sm:$0xff]  ;;  %451 = vst [vmem:[%s1019_s1 + $0x74] sm:$0xf] %v233_v32  ;;  %v258_v43 = vpack.c.bf16 %v503_v3, %v460_v40  ;;  %v468_v47 = vld [vmem:[%s1018_s0 + $0x170] sm:$0xff]  ;;  %v273_v49 = vpack.c.bf16 %v503_v3, %v466_v46 }
  0x1b   :  { %447 = vst [vmem:[%s1019_s1 + $0x110] sm:$0xf] %v223_v27  ;;  %v464_v42 = vld [vmem:[%s1018_s0 + $0x28] sm:$0xff]  ;;  %453 = vst [vmem:[%s1019_s1 + $0xd4] sm:$0xf] %v238_v33  ;;  %v263_v44 = vpack.c.bf16 %v503_v3, %v462_v41  ;;  %v470_v48 = vld [vmem:[%s1018_s0 + $0xb0] sm:$0xff]  ;;  %v278_v50 = vpack.c.bf16 %v503_v3, %v468_v47 }
  0x1c   :  { %v268_v45 = vpack.c.bf16 %v503_v3, %v464_v42  ;;  %455 = vst [vmem:[%s1019_s1 + $0x34] sm:$0xf] %v243_v37  ;;  %457 = vst [vmem:[%s1019_s1 + $0x94] sm:$0xf] %v248_v38  ;;  %v283_v51 = vpack.c.bf16 %v503_v3, %v470_v48  ;;  %v472_v52 = vld [vmem:[%s1018_s0 + $0x1f0] sm:$0xff]  ;;  %v484_v0 = vld [vmem:[%s1018_s0 + $0x238] sm:$0xff] }
  0x1d   :  { %459 = vst [vmem:[%s1019_s1 + $0xf4] sm:$0xf] %v253_v39  ;;  %v474_v53 = vld [vmem:[%s1018_s0 + $0x130] sm:$0xff]  ;;  %461 = vst [vmem:[%s1019_s1 + $0x54] sm:$0xf] %v258_v43  ;;  %v288_v55 = vpack.c.bf16 %v503_v3, %v472_v52  ;;  %v486_v1 = vld [vmem:[%s1018_s0 + $0x178] sm:$0xff]  ;;  %v318_v4 = vpack.c.bf16 %v503_v3, %v484_v0 }
  0x1e   :  { %v476_v54 = vld [vmem:[%s1018_s0 + $0x70] sm:$0xff]  ;;  %463 = vst [vmem:[%s1019_s1 + $0xb4] sm:$0xf] %v263_v44  ;;  %465 = vst [vmem:[%s1019_s1 + $0x114] sm:$0xf] %v268_v45  ;;  %v293_v56 = vpack.c.bf16 %v503_v3, %v474_v53  ;;  %v488_v2 = vld [vmem:[%s1018_s0 + $0xb8] sm:$0xff]  ;;  %v323_v5 = vpack.c.bf16 %v503_v3, %v486_v1 }
  0x1f   :  { %v298_v57 = vpack.c.bf16 %v503_v3, %v476_v54  ;;  %v478_v58 = vld [vmem:[%s1018_s0 + $0x1b0] sm:$0xff]  ;;  %467 = vst [vmem:[%s1019_s1 + $0x18] sm:$0xf] %v273_v49  ;;  %469 = vst [vmem:[%s1019_s1 + $0x78] sm:$0xf] %v278_v50  ;;  %v328_v6 = vpack.c.bf16 %v503_v3, %v488_v2  ;;  %v490_v7 = vld [vmem:[%s1018_s0 + $0x1f8] sm:$0xff] }
  0x20   :  { %v480_v59 = vld [vmem:[%s1018_s0 + $0xf0] sm:$0xff]  ;;  %471 = vst [vmem:[%s1019_s1 + $0xd8] sm:$0xf] %v283_v51  ;;  %v303_v61 = vpack.c.bf16 %v503_v3, %v478_v58  ;;  %473 = vst [vmem:[%s1019_s1 + $0x38] sm:$0xf] %v288_v55  ;;  %v492_v8 = vld [vmem:[%s1018_s0 + $0x138] sm:$0xff]  ;;  %v333_v10 = vpack.c.bf16 %v503_v3, %v490_v7 }
  0x21   :  { %v482_v60 = vld [vmem:[%s1018_s0 + $0x30] sm:$0xff]  ;;  %v308_v62 = vpack.c.bf16 %v503_v3, %v480_v59  ;;  %475 = vst [vmem:[%s1019_s1 + $0x98] sm:$0xf] %v293_v56  ;;  %477 = vst [vmem:[%s1019_s1 + $0xf8] sm:$0xf] %v298_v57  ;;  %v494_v9 = vld [vmem:[%s1018_s0 + $0x78] sm:$0xff]  ;;  %v338_v11 = vpack.c.bf16 %v503_v3, %v492_v8 }
  0x22   :  { %v313_v63 = vpack.c.bf16 %v503_v3, %v482_v60  ;;  %479 = vst [vmem:[%s1019_s1 + $0x58] sm:$0xf] %v303_v61  ;;  %v343_v12 = vpack.c.bf16 %v503_v3, %v494_v9  ;;  %v496_v13 = vld [vmem:[%s1018_s0 + $0x1b8] sm:$0xff]  ;;  %485 = vst [vmem:[%s1019_s1 + $0x1c] sm:$0xf] %v318_v4 }
  0x23   :  { %481 = vst [vmem:[%s1019_s1 + $0xb8] sm:$0xf] %v308_v62  ;;  %v498_v14 = vld [vmem:[%s1018_s0 + $0xf8] sm:$0xff]  ;;  %487 = vst [vmem:[%s1019_s1 + $0x7c] sm:$0xf] %v323_v5  ;;  %v348_v16 = vpack.c.bf16 %v503_v3, %v496_v13 }
  0x24   :  { %483 = vst [vmem:[%s1019_s1 + $0x118] sm:$0xf] %v313_v63  ;;  %v500_v15 = vld [vmem:[%s1018_s0 + $0x38] sm:$0xff]  ;;  %489 = vst [vmem:[%s1019_s1 + $0xdc] sm:$0xf] %v328_v6  ;;  %v353_v17 = vpack.c.bf16 %v503_v3, %v498_v14 }
  0x25   :  { %v358_v3 = vpack.c.bf16 %v503_v3, %v500_v15  ;;  %491 = vst [vmem:[%s1019_s1 + $0x3c] sm:$0xf] %v333_v10  ;;  %493 = vst [vmem:[%s1019_s1 + $0x9c] sm:$0xf] %v338_v11 }
  0x26   :  { %495 = vst [vmem:[%s1019_s1 + $0xfc] sm:$0xf] %v343_v12  ;;  %497 = vst [vmem:[%s1019_s1 + $0x5c] sm:$0xf] %v348_v16 }
  0x27   :  { %499 = vst [vmem:[%s1019_s1 + $0xbc] sm:$0xf] %v353_v17  ;;  %501 = vst [vmem:[%s1019_s1 + $0x11c] sm:$0xf] %v358_v3 }

// kernel: reverse.2
= control target key start
LH: loop header
LB: loop body
LE: loop exit
PB: predicated region body
PF: predicated region fallthrough
CT: control target
= control target key end

     0   :  { %v1007_v3 = vmov 0.0   ;;  %s2026_s0 = inlined_call_operand.vmem [shape: f32[3,3,128,128], index: 0, kind: input, shape index: {}]   ;;  %s2027_s1 = inlined_call_operand.vmem [shape: bf16[3,3,128,128], index: 1, kind: output, shape index: {}]  }
   0x1   :  { %v720_v0 = vld [vmem:[%s2026_s0 + $0x400] sm:$0xff]  ;;  %v736_v19 = vld [vmem:[%s2026_s0 + $0x408] sm:$0xff]  ;;  %v754_v37 = vld [vmem:[%s2026_s0 + $0x410] sm:$0xff] }
   0x2   :  { %v721_v1 = vld [vmem:[%s2026_s0 + $0x280] sm:$0xff]  ;;  %v4_v4 = vpack.c.bf16 %v1007_v3, %v720_v0  ;;  %v738_v20 = vld [vmem:[%s2026_s0 + $0x288] sm:$0xff]  ;;  %v48_v22 = vpack.c.bf16 %v1007_v3, %v736_v19  ;;  %v756_v38 = vld [vmem:[%s2026_s0 + $0x290] sm:$0xff]  ;;  %v93_v40 = vpack.c.bf16 %v1007_v3, %v754_v37 }
   0x3   :  { %v723_v2 = vld [vmem:[%s2026_s0 + $0x100] sm:$0xff]  ;;  %v9_v5 = vpack.c.bf16 %v1007_v3, %v721_v1  ;;  %v740_v21 = vld [vmem:[%s2026_s0 + $0x108] sm:$0xff]  ;;  %v53_v23 = vpack.c.bf16 %v1007_v3, %v738_v20  ;;  %v758_v39 = vld [vmem:[%s2026_s0 + $0x110] sm:$0xff]  ;;  %v98_v41 = vpack.c.bf16 %v1007_v3, %v756_v38 }
   0x4   :  { %v14_v6 = vpack.c.bf16 %v1007_v3, %v723_v2  ;;  %v725_v7 = vld [vmem:[%s2026_s0 + $0x380] sm:$0xff]  ;;  %5 = vst [vmem:[%s2027_s1] sm:$0xf] %v4_v4  ;;  %v58_v24 = vpack.c.bf16 %v1007_v3, %v740_v21  ;;  %v742_v25 = vld [vmem:[%s2026_s0 + $0x388] sm:$0xff]  ;;  %737 = vst [vmem:[%s2027_s1 + $0x4] sm:$0xf] %v48_v22  ;;  %v103_v42 = vpack.c.bf16 %v1007_v3, %v758_v39 }
   0x5   :  { %v727_v8 = vld [vmem:[%s2026_s0 + $0x200] sm:$0xff]  ;;  %v19_v10 = vpack.c.bf16 %v1007_v3, %v725_v7  ;;  %722 = vst [vmem:[%s2027_s1 + $0xc0] sm:$0xf] %v9_v5  ;;  %v744_v26 = vld [vmem:[%s2026_s0 + $0x208] sm:$0xff]  ;;  %v63_v28 = vpack.c.bf16 %v1007_v3, %v742_v25  ;;  %739 = vst [vmem:[%s2027_s1 + $0xc4] sm:$0xf] %v53_v23 }
   0x6   :  { %v729_v9 = vld [vmem:[%s2026_s0 + $0x80] sm:$0xff]  ;;  %v24_v11 = vpack.c.bf16 %v1007_v3, %v727_v8  ;;  %724 = vst [vmem:[%s2027_s1 + $0x180] sm:$0xf] %v14_v6  ;;  %v746_v27 = vld [vmem:[%s2026_s0 + $0x88] sm:$0xff]  ;;  %v68_v29 = vpack.c.bf16 %v1007_v3, %v744_v26  ;;  %741 = vst [vmem:[%s2027_s1 + $0x184] sm:$0xf] %v58_v24 }
   0x7   :  { %v29_v12 = vpack.c.bf16 %v1007_v3, %v729_v9  ;;  %v731_v13 = vld [vmem:[%s2026_s0 + $0x300] sm:$0xff]  ;;  %726 = vst [vmem:[%s2027_s1 + $0x40] sm:$0xf] %v19_v10  ;;  %v73_v30 = vpack.c.bf16 %v1007_v3, %v746_v27  ;;  %v748_v31 = vld [vmem:[%s2026_s0 + $0x308] sm:$0xff]  ;;  %743 = vst [vmem:[%s2027_s1 + $0x44] sm:$0xf] %v63_v28 }
   0x8   :  { %v733_v14 = vld [vmem:[%s2026_s0 + $0x180] sm:$0xff]  ;;  %v34_v16 = vpack.c.bf16 %v1007_v3, %v731_v13  ;;  %728 = vst [vmem:[%s2027_s1 + $0x100] sm:$0xf] %v24_v11  ;;  %v750_v32 = vld [vmem:[%s2026_s0 + $0x188] sm:$0xff]  ;;  %v78_v34 = vpack.c.bf16 %v1007_v3, %v748_v31  ;;  %745 = vst [vmem:[%s2027_s1 + $0x104] sm:$0xf] %v68_v29 }
   0x9   :  { %v41_v15 = vld [vmem:[%s2026_s0] sm:$0xff]  ;;  %v39_v17 = vpack.c.bf16 %v1007_v3, %v733_v14  ;;  %730 = vst [vmem:[%s2027_s1 + $0x1c0] sm:$0xf] %v29_v12  ;;  %v752_v33 = vld [vmem:[%s2026_s0 + $0x8] sm:$0xff]  ;;  %v83_v35 = vpack.c.bf16 %v1007_v3, %v750_v32  ;;  %747 = vst [vmem:[%s2027_s1 + $0x1c4] sm:$0xf] %v73_v30 }
   0xa   :  { %v43_v18 = vpack.c.bf16 %v1007_v3, %v41_v15  ;;  %732 = vst [vmem:[%s2027_s1 + $0x80] sm:$0xf] %v34_v16  ;;  %v88_v36 = vpack.c.bf16 %v1007_v3, %v752_v33  ;;  %v760_v43 = vld [vmem:[%s2026_s0 + $0x390] sm:$0xff]  ;;  %749 = vst [vmem:[%s2027_s1 + $0x84] sm:$0xf] %v78_v34  ;;  %v772_v55 = vld [vmem:[%s2026_s0 + $0x418] sm:$0xff] }
   0xb   :  { %734 = vst [vmem:[%s2027_s1 + $0x140] sm:$0xf] %v39_v17  ;;  %v762_v44 = vld [vmem:[%s2026_s0 + $0x210] sm:$0xff]  ;;  %751 = vst [vmem:[%s2027_s1 + $0x144] sm:$0xf] %v83_v35  ;;  %v108_v46 = vpack.c.bf16 %v1007_v3, %v760_v43  ;;  %v774_v56 = vld [vmem:[%s2026_s0 + $0x298] sm:$0xff]  ;;  %v138_v58 = vpack.c.bf16 %v1007_v3, %v772_v55 }
   0xc   :  { %735 = vst [vmem:[%s2027_s1 + $0x200] sm:$0xf] %v43_v18  ;;  %v764_v45 = vld [vmem:[%s2026_s0 + $0x90] sm:$0xff]  ;;  %753 = vst [vmem:[%s2027_s1 + $0x204] sm:$0xf] %v88_v36  ;;  %v113_v47 = vpack.c.bf16 %v1007_v3, %v762_v44  ;;  %v776_v57 = vld [vmem:[%s2026_s0 + $0x118] sm:$0xff]  ;;  %v143_v59 = vpack.c.bf16 %v1007_v3, %v774_v56 }
   0xd   :  { %v118_v48 = vpack.c.bf16 %v1007_v3, %v764_v45  ;;  %v766_v49 = vld [vmem:[%s2026_s0 + $0x310] sm:$0xff]  ;;  %755 = vst [vmem:[%s2027_s1 + $0x8] sm:$0xf] %v93_v40  ;;  %757 = vst [vmem:[%s2027_s1 + $0xc8] sm:$0xf] %v98_v41  ;;  %v148_v60 = vpack.c.bf16 %v1007_v3, %v776_v57  ;;  %v778_v61 = vld [vmem:[%s2026_s0 + $0x398] sm:$0xff] }
   0xe   :  { %v768_v50 = vld [vmem:[%s2026_s0 + $0x190] sm:$0xff]  ;;  %759 = vst [vmem:[%s2027_s1 + $0x188] sm:$0xf] %v103_v42  ;;  %v123_v52 = vpack.c.bf16 %v1007_v3, %v766_v49  ;;  %761 = vst [vmem:[%s2027_s1 + $0x48] sm:$0xf] %v108_v46  ;;  %v780_v62 = vld [vmem:[%s2026_s0 + $0x218] sm:$0xff]  ;;  %v153_v0 = vpack.c.bf16 %v1007_v3, %v778_v61 }
   0xf   :  { %v770_v51 = vld [vmem:[%s2026_s0 + $0x10] sm:$0xff]  ;;  %v128_v53 = vpack.c.bf16 %v1007_v3, %v768_v50  ;;  %763 = vst [vmem:[%s2027_s1 + $0x108] sm:$0xf] %v113_v47  ;;  %765 = vst [vmem:[%s2027_s1 + $0x1c8] sm:$0xf] %v118_v48  ;;  %v782_v63 = vld [vmem:[%s2026_s0 + $0x98] sm:$0xff]  ;;  %v158_v1 = vpack.c.bf16 %v1007_v3, %v780_v62 }
  0x10   :  { %v133_v54 = vpack.c.bf16 %v1007_v3, %v770_v51  ;;  %767 = vst [vmem:[%s2027_s1 + $0x88] sm:$0xf] %v123_v52  ;;  %v163_v2 = vpack.c.bf16 %v1007_v3, %v782_v63  ;;  %v784_v4 = vld [vmem:[%s2026_s0 + $0x318] sm:$0xff]  ;;  %773 = vst [vmem:[%s2027_s1 + $0xc] sm:$0xf] %v138_v58  ;;  %v790_v10 = vld [vmem:[%s2026_s0 + $0x420] sm:$0xff] }
  0x11   :  { %769 = vst [vmem:[%s2027_s1 + $0x148] sm:$0xf] %v128_v53  ;;  %v786_v5 = vld [vmem:[%s2026_s0 + $0x198] sm:$0xff]  ;;  %775 = vst [vmem:[%s2027_s1 + $0xcc] sm:$0xf] %v143_v59  ;;  %v168_v7 = vpack.c.bf16 %v1007_v3, %v784_v4  ;;  %v792_v11 = vld [vmem:[%s2026_s0 + $0x2a0] sm:$0xff]  ;;  %v183_v13 = vpack.c.bf16 %v1007_v3, %v790_v10 }
  0x12   :  { %771 = vst [vmem:[%s2027_s1 + $0x208] sm:$0xf] %v133_v54  ;;  %v788_v6 = vld [vmem:[%s2026_s0 + $0x18] sm:$0xff]  ;;  %777 = vst [vmem:[%s2027_s1 + $0x18c] sm:$0xf] %v148_v60  ;;  %v173_v8 = vpack.c.bf16 %v1007_v3, %v786_v5  ;;  %v794_v12 = vld [vmem:[%s2026_s0 + $0x120] sm:$0xff]  ;;  %v188_v14 = vpack.c.bf16 %v1007_v3, %v792_v11 }
  0x13   :  { %v178_v9 = vpack.c.bf16 %v1007_v3, %v788_v6  ;;  %779 = vst [vmem:[%s2027_s1 + $0x4c] sm:$0xf] %v153_v0  ;;  %781 = vst [vmem:[%s2027_s1 + $0x10c] sm:$0xf] %v158_v1  ;;  %v193_v15 = vpack.c.bf16 %v1007_v3, %v794_v12  ;;  %v796_v16 = vld [vmem:[%s2026_s0 + $0x3a0] sm:$0xff]  ;;  %v808_v28 = vld [vmem:[%s2026_s0 + $0x428] sm:$0xff] }
  0x14   :  { %783 = vst [vmem:[%s2027_s1 + $0x1cc] sm:$0xf] %v163_v2  ;;  %v798_v17 = vld [vmem:[%s2026_s0 + $0x220] sm:$0xff]  ;;  %785 = vst [vmem:[%s2027_s1 + $0x8c] sm:$0xf] %v168_v7  ;;  %v198_v19 = vpack.c.bf16 %v1007_v3, %v796_v16  ;;  %v810_v29 = vld [vmem:[%s2026_s0 + $0x2a8] sm:$0xff]  ;;  %v228_v31 = vpack.c.bf16 %v1007_v3, %v808_v28 }
  0x15   :  { %v800_v18 = vld [vmem:[%s2026_s0 + $0xa0] sm:$0xff]  ;;  %787 = vst [vmem:[%s2027_s1 + $0x14c] sm:$0xf] %v173_v8  ;;  %789 = vst [vmem:[%s2027_s1 + $0x20c] sm:$0xf] %v178_v9  ;;  %v203_v20 = vpack.c.bf16 %v1007_v3, %v798_v17  ;;  %v812_v30 = vld [vmem:[%s2026_s0 + $0x128] sm:$0xff]  ;;  %v233_v32 = vpack.c.bf16 %v1007_v3, %v810_v29 }
  0x16   :  { %v208_v21 = vpack.c.bf16 %v1007_v3, %v800_v18  ;;  %v802_v22 = vld [vmem:[%s2026_s0 + $0x320] sm:$0xff]  ;;  %791 = vst [vmem:[%s2027_s1 + $0x10] sm:$0xf] %v183_v13  ;;  %793 = vst [vmem:[%s2027_s1 + $0xd0] sm:$0xf] %v188_v14  ;;  %v238_v33 = vpack.c.bf16 %v1007_v3, %v812_v30  ;;  %v814_v34 = vld [vmem:[%s2026_s0 + $0x3a8] sm:$0xff] }
  0x17   :  { %v804_v23 = vld [vmem:[%s2026_s0 + $0x1a0] sm:$0xff]  ;;  %795 = vst [vmem:[%s2027_s1 + $0x190] sm:$0xf] %v193_v15  ;;  %v213_v25 = vpack.c.bf16 %v1007_v3, %v802_v22  ;;  %797 = vst [vmem:[%s2027_s1 + $0x50] sm:$0xf] %v198_v19  ;;  %v816_v35 = vld [vmem:[%s2026_s0 + $0x228] sm:$0xff]  ;;  %v243_v37 = vpack.c.bf16 %v1007_v3, %v814_v34 }
  0x18   :  { %v806_v24 = vld [vmem:[%s2026_s0 + $0x20] sm:$0xff]  ;;  %v218_v26 = vpack.c.bf16 %v1007_v3, %v804_v23  ;;  %799 = vst [vmem:[%s2027_s1 + $0x110] sm:$0xf] %v203_v20  ;;  %801 = vst [vmem:[%s2027_s1 + $0x1d0] sm:$0xf] %v208_v21  ;;  %v818_v36 = vld [vmem:[%s2026_s0 + $0xa8] sm:$0xff]  ;;  %v248_v38 = vpack.c.bf16 %v1007_v3, %v816_v35 }
  0x19   :  { %v223_v27 = vpack.c.bf16 %v1007_v3, %v806_v24  ;;  %803 = vst [vmem:[%s2027_s1 + $0x90] sm:$0xf] %v213_v25  ;;  %v253_v39 = vpack.c.bf16 %v1007_v3, %v818_v36  ;;  %v820_v40 = vld [vmem:[%s2026_s0 + $0x328] sm:$0xff]  ;;  %809 = vst [vmem:[%s2027_s1 + $0x14] sm:$0xf] %v228_v31  ;;  %v826_v46 = vld [vmem:[%s2026_s0 + $0x430] sm:$0xff] }
  0x1a   :  { %805 = vst [vmem:[%s2027_s1 + $0x150] sm:$0xf] %v218_v26  ;;  %v822_v41 = vld [vmem:[%s2026_s0 + $0x1a8] sm:$0xff]  ;;  %811 = vst [vmem:[%s2027_s1 + $0xd4] sm:$0xf] %v233_v32  ;;  %v258_v43 = vpack.c.bf16 %v1007_v3, %v820_v40  ;;  %v828_v47 = vld [vmem:[%s2026_s0 + $0x2b0] sm:$0xff]  ;;  %v273_v49 = vpack.c.bf16 %v1007_v3, %v826_v46 }
  0x1b   :  { %807 = vst [vmem:[%s2027_s1 + $0x210] sm:$0xf] %v223_v27  ;;  %v824_v42 = vld [vmem:[%s2026_s0 + $0x28] sm:$0xff]  ;;  %813 = vst [vmem:[%s2027_s1 + $0x194] sm:$0xf] %v238_v33  ;;  %v263_v44 = vpack.c.bf16 %v1007_v3, %v822_v41  ;;  %v830_v48 = vld [vmem:[%s2026_s0 + $0x130] sm:$0xff]  ;;  %v278_v50 = vpack.c.bf16 %v1007_v3, %v828_v47 }
  0x1c   :  { %v268_v45 = vpack.c.bf16 %v1007_v3, %v824_v42  ;;  %815 = vst [vmem:[%s2027_s1 + $0x54] sm:$0xf] %v243_v37  ;;  %817 = vst [vmem:[%s2027_s1 + $0x114] sm:$0xf] %v248_v38  ;;  %v283_v51 = vpack.c.bf16 %v1007_v3, %v830_v48  ;;  %v832_v52 = vld [vmem:[%s2026_s0 + $0x3b0] sm:$0xff]  ;;  %v844_v0 = vld [vmem:[%s2026_s0 + $0x438] sm:$0xff] }
  0x1d   :  { %819 = vst [vmem:[%s2027_s1 + $0x1d4] sm:$0xf] %v253_v39  ;;  %v834_v53 = vld [vmem:[%s2026_s0 + $0x230] sm:$0xff]  ;;  %821 = vst [vmem:[%s2027_s1 + $0x94] sm:$0xf] %v258_v43  ;;  %v288_v55 = vpack.c.bf16 %v1007_v3, %v832_v52  ;;  %v846_v1 = vld [vmem:[%s2026_s0 + $0x2b8] sm:$0xff]  ;;  %v318_v4 = vpack.c.bf16 %v1007_v3, %v844_v0 }
  0x1e   :  { %v836_v54 = vld [vmem:[%s2026_s0 + $0xb0] sm:$0xff]  ;;  %823 = vst [vmem:[%s2027_s1 + $0x154] sm:$0xf] %v263_v44  ;;  %825 = vst [vmem:[%s2027_s1 + $0x214] sm:$0xf] %v268_v45  ;;  %v293_v56 = vpack.c.bf16 %v1007_v3, %v834_v53  ;;  %v848_v2 = vld [vmem:[%s2026_s0 + $0x138] sm:$0xff]  ;;  %v323_v5 = vpack.c.bf16 %v1007_v3, %v846_v1 }
  0x1f   :  { %v298_v57 = vpack.c.bf16 %v1007_v3, %v836_v54  ;;  %v838_v58 = vld [vmem:[%s2026_s0 + $0x330] sm:$0xff]  ;;  %827 = vst [vmem:[%s2027_s1 + $0x18] sm:$0xf] %v273_v49  ;;  %829 = vst [vmem:[%s2027_s1 + $0xd8] sm:$0xf] %v278_v50  ;;  %v328_v6 = vpack.c.bf16 %v1007_v3, %v848_v2  ;;  %v850_v7 = vld [vmem:[%s2026_s0 + $0x3b8] sm:$0xff] }
  0x20   :  { %v840_v59 = vld [vmem:[%s2026_s0 + $0x1b0] sm:$0xff]  ;;  %831 = vst [vmem:[%s2027_s1 + $0x198] sm:$0xf] %v283_v51  ;;  %v303_v61 = vpack.c.bf16 %v1007_v3, %v838_v58  ;;  %833 = vst [vmem:[%s2027_s1 + $0x58] sm:$0xf] %v288_v55  ;;  %v852_v8 = vld [vmem:[%s2026_s0 + $0x238] sm:$0xff]  ;;  %v333_v10 = vpack.c.bf16 %v1007_v3, %v850_v7 }
  0x21   :  { %v842_v60 = vld [vmem:[%s2026_s0 + $0x30] sm:$0xff]  ;;  %v308_v62 = vpack.c.bf16 %v1007_v3, %v840_v59  ;;  %835 = vst [vmem:[%s2027_s1 + $0x118] sm:$0xf] %v293_v56  ;;  %837 = vst [vmem:[%s2027_s1 + $0x1d8] sm:$0xf] %v298_v57  ;;  %v854_v9 = vld [vmem:[%s2026_s0 + $0xb8] sm:$0xff]  ;;  %v338_v11 = vpack.c.bf16 %v1007_v3, %v852_v8 }
  0x22   :  { %v313_v63 = vpack.c.bf16 %v1007_v3, %v842_v60  ;;  %839 = vst [vmem:[%s2027_s1 + $0x98] sm:$0xf] %v303_v61  ;;  %v343_v12 = vpack.c.bf16 %v1007_v3, %v854_v9  ;;  %v856_v13 = vld [vmem:[%s2026_s0 + $0x338] sm:$0xff]  ;;  %845 = vst [vmem:[%s2027_s1 + $0x1c] sm:$0xf] %v318_v4  ;;  %v862_v19 = vld [vmem:[%s2026_s0 + $0x440] sm:$0xff] }
  0x23   :  { %841 = vst [vmem:[%s2027_s1 + $0x158] sm:$0xf] %v308_v62  ;;  %v858_v14 = vld [vmem:[%s2026_s0 + $0x1b8] sm:$0xff]  ;;  %847 = vst [vmem:[%s2027_s1 + $0xdc] sm:$0xf] %v323_v5  ;;  %v348_v16 = vpack.c.bf16 %v1007_v3, %v856_v13  ;;  %v864_v20 = vld [vmem:[%s2026_s0 + $0x2c0] sm:$0xff]  ;;  %v363_v22 = vpack.c.bf16 %v1007_v3, %v862_v19 }
  0x24   :  { %843 = vst [vmem:[%s2027_s1 + $0x218] sm:$0xf] %v313_v63  ;;  %v860_v15 = vld [vmem:[%s2026_s0 + $0x38] sm:$0xff]  ;;  %849 = vst [vmem:[%s2027_s1 + $0x19c] sm:$0xf] %v328_v6  ;;  %v353_v17 = vpack.c.bf16 %v1007_v3, %v858_v14  ;;  %v866_v21 = vld [vmem:[%s2026_s0 + $0x140] sm:$0xff]  ;;  %v368_v23 = vpack.c.bf16 %v1007_v3, %v864_v20 }
  0x25   :  { %v358_v18 = vpack.c.bf16 %v1007_v3, %v860_v15  ;;  %851 = vst [vmem:[%s2027_s1 + $0x5c] sm:$0xf] %v333_v10  ;;  %853 = vst [vmem:[%s2027_s1 + $0x11c] sm:$0xf] %v338_v11  ;;  %v373_v24 = vpack.c.bf16 %v1007_v3, %v866_v21  ;;  %v868_v25 = vld [vmem:[%s2026_s0 + $0x3c0] sm:$0xff]  ;;  %v880_v37 = vld [vmem:[%s2026_s0 + $0x448] sm:$0xff] }
  0x26   :  { %855 = vst [vmem:[%s2027_s1 + $0x1dc] sm:$0xf] %v343_v12  ;;  %v870_v26 = vld [vmem:[%s2026_s0 + $0x240] sm:$0xff]  ;;  %857 = vst [vmem:[%s2027_s1 + $0x9c] sm:$0xf] %v348_v16  ;;  %v378_v28 = vpack.c.bf16 %v1007_v3, %v868_v25  ;;  %v882_v38 = vld [vmem:[%s2026_s0 + $0x2c8] sm:$0xff]  ;;  %v408_v40 = vpack.c.bf16 %v1007_v3, %v880_v37 }
  0x27   :  { %v872_v27 = vld [vmem:[%s2026_s0 + $0xc0] sm:$0xff]  ;;  %859 = vst [vmem:[%s2027_s1 + $0x15c] sm:$0xf] %v353_v17  ;;  %861 = vst [vmem:[%s2027_s1 + $0x21c] sm:$0xf] %v358_v18  ;;  %v383_v29 = vpack.c.bf16 %v1007_v3, %v870_v26  ;;  %v884_v39 = vld [vmem:[%s2026_s0 + $0x148] sm:$0xff]  ;;  %v413_v41 = vpack.c.bf16 %v1007_v3, %v882_v38 }
  0x28   :  { %v388_v30 = vpack.c.bf16 %v1007_v3, %v872_v27  ;;  %v874_v31 = vld [vmem:[%s2026_s0 + $0x340] sm:$0xff]  ;;  %863 = vst [vmem:[%s2027_s1 + $0x20] sm:$0xf] %v363_v22  ;;  %865 = vst [vmem:[%s2027_s1 + $0xe0] sm:$0xf] %v368_v23  ;;  %v418_v42 = vpack.c.bf16 %v1007_v3, %v884_v39  ;;  %v886_v43 = vld [vmem:[%s2026_s0 + $0x3c8] sm:$0xff] }
  0x29   :  { %v876_v32 = vld [vmem:[%s2026_s0 + $0x1c0] sm:$0xff]  ;;  %867 = vst [vmem:[%s2027_s1 + $0x1a0] sm:$0xf] %v373_v24  ;;  %v393_v34 = vpack.c.bf16 %v1007_v3, %v874_v31  ;;  %869 = vst [vmem:[%s2027_s1 + $0x60] sm:$0xf] %v378_v28  ;;  %v888_v44 = vld [vmem:[%s2026_s0 + $0x248] sm:$0xff]  ;;  %v423_v46 = vpack.c.bf16 %v1007_v3, %v886_v43 }
  0x2a   :  { %v878_v33 = vld [vmem:[%s2026_s0 + $0x40] sm:$0xff]  ;;  %v398_v35 = vpack.c.bf16 %v1007_v3, %v876_v32  ;;  %871 = vst [vmem:[%s2027_s1 + $0x120] sm:$0xf] %v383_v29  ;;  %873 = vst [vmem:[%s2027_s1 + $0x1e0] sm:$0xf] %v388_v30  ;;  %v890_v45 = vld [vmem:[%s2026_s0 + $0xc8] sm:$0xff]  ;;  %v428_v47 = vpack.c.bf16 %v1007_v3, %v888_v44 }
  0x2b   :  { %v403_v36 = vpack.c.bf16 %v1007_v3, %v878_v33  ;;  %875 = vst [vmem:[%s2027_s1 + $0xa0] sm:$0xf] %v393_v34  ;;  %v433_v48 = vpack.c.bf16 %v1007_v3, %v890_v45  ;;  %v892_v49 = vld [vmem:[%s2026_s0 + $0x348] sm:$0xff]  ;;  %881 = vst [vmem:[%s2027_s1 + $0x24] sm:$0xf] %v408_v40  ;;  %v898_v55 = vld [vmem:[%s2026_s0 + $0x450] sm:$0xff] }
  0x2c   :  { %877 = vst [vmem:[%s2027_s1 + $0x160] sm:$0xf] %v398_v35  ;;  %v894_v50 = vld [vmem:[%s2026_s0 + $0x1c8] sm:$0xff]  ;;  %883 = vst [vmem:[%s2027_s1 + $0xe4] sm:$0xf] %v413_v41  ;;  %v438_v52 = vpack.c.bf16 %v1007_v3, %v892_v49  ;;  %v900_v56 = vld [vmem:[%s2026_s0 + $0x2d0] sm:$0xff]  ;;  %v453_v58 = vpack.c.bf16 %v1007_v3, %v898_v55 }
  0x2d   :  { %879 = vst [vmem:[%s2027_s1 + $0x220] sm:$0xf] %v403_v36  ;;  %v896_v51 = vld [vmem:[%s2026_s0 + $0x48] sm:$0xff]  ;;  %885 = vst [vmem:[%s2027_s1 + $0x1a4] sm:$0xf] %v418_v42  ;;  %v443_v53 = vpack.c.bf16 %v1007_v3, %v894_v50  ;;  %v902_v57 = vld [vmem:[%s2026_s0 + $0x150] sm:$0xff]  ;;  %v458_v59 = vpack.c.bf16 %v1007_v3, %v900_v56 }
  0x2e   :  { %v448_v54 = vpack.c.bf16 %v1007_v3, %v896_v51  ;;  %887 = vst [vmem:[%s2027_s1 + $0x64] sm:$0xf] %v423_v46  ;;  %889 = vst [vmem:[%s2027_s1 + $0x124] sm:$0xf] %v428_v47  ;;  %v463_v60 = vpack.c.bf16 %v1007_v3, %v902_v57  ;;  %v904_v61 = vld [vmem:[%s2026_s0 + $0x3d0] sm:$0xff]  ;;  %v916_v10 = vld [vmem:[%s2026_s0 + $0x458] sm:$0xff] }
  0x2f   :  { %891 = vst [vmem:[%s2027_s1 + $0x1e4] sm:$0xf] %v433_v48  ;;  %v906_v62 = vld [vmem:[%s2026_s0 + $0x250] sm:$0xff]  ;;  %893 = vst [vmem:[%s2027_s1 + $0xa4] sm:$0xf] %v438_v52  ;;  %v468_v0 = vpack.c.bf16 %v1007_v3, %v904_v61  ;;  %v918_v11 = vld [vmem:[%s2026_s0 + $0x2d8] sm:$0xff]  ;;  %v498_v13 = vpack.c.bf16 %v1007_v3, %v916_v10 }
  0x30   :  { %v908_v63 = vld [vmem:[%s2026_s0 + $0xd0] sm:$0xff]  ;;  %895 = vst [vmem:[%s2027_s1 + $0x164] sm:$0xf] %v443_v53  ;;  %897 = vst [vmem:[%s2027_s1 + $0x224] sm:$0xf] %v448_v54  ;;  %v473_v1 = vpack.c.bf16 %v1007_v3, %v906_v62  ;;  %v920_v12 = vld [vmem:[%s2026_s0 + $0x158] sm:$0xff]  ;;  %v503_v14 = vpack.c.bf16 %v1007_v3, %v918_v11 }
  0x31   :  { %v478_v2 = vpack.c.bf16 %v1007_v3, %v908_v63  ;;  %v910_v4 = vld [vmem:[%s2026_s0 + $0x350] sm:$0xff]  ;;  %899 = vst [vmem:[%s2027_s1 + $0x28] sm:$0xf] %v453_v58  ;;  %901 = vst [vmem:[%s2027_s1 + $0xe8] sm:$0xf] %v458_v59  ;;  %v508_v15 = vpack.c.bf16 %v1007_v3, %v920_v12  ;;  %v922_v16 = vld [vmem:[%s2026_s0 + $0x3d8] sm:$0xff] }
  0x32   :  { %v912_v5 = vld [vmem:[%s2026_s0 + $0x1d0] sm:$0xff]  ;;  %903 = vst [vmem:[%s2027_s1 + $0x1a8] sm:$0xf] %v463_v60  ;;  %v483_v7 = vpack.c.bf16 %v1007_v3, %v910_v4  ;;  %905 = vst [vmem:[%s2027_s1 + $0x68] sm:$0xf] %v468_v0  ;;  %v924_v17 = vld [vmem:[%s2026_s0 + $0x258] sm:$0xff]  ;;  %v513_v19 = vpack.c.bf16 %v1007_v3, %v922_v16 }
  0x33   :  { %v914_v6 = vld [vmem:[%s2026_s0 + $0x50] sm:$0xff]  ;;  %v488_v8 = vpack.c.bf16 %v1007_v3, %v912_v5  ;;  %907 = vst [vmem:[%s2027_s1 + $0x128] sm:$0xf] %v473_v1  ;;  %909 = vst [vmem:[%s2027_s1 + $0x1e8] sm:$0xf] %v478_v2  ;;  %v926_v18 = vld [vmem:[%s2026_s0 + $0xd8] sm:$0xff]  ;;  %v518_v20 = vpack.c.bf16 %v1007_v3, %v924_v17 }
  0x34   :  { %v493_v9 = vpack.c.bf16 %v1007_v3, %v914_v6  ;;  %911 = vst [vmem:[%s2027_s1 + $0xa8] sm:$0xf] %v483_v7  ;;  %v523_v21 = vpack.c.bf16 %v1007_v3, %v926_v18  ;;  %v928_v22 = vld [vmem:[%s2026_s0 + $0x358] sm:$0xff]  ;;  %917 = vst [vmem:[%s2027_s1 + $0x2c] sm:$0xf] %v498_v13  ;;  %v934_v28 = vld [vmem:[%s2026_s0 + $0x460] sm:$0xff] }
  0x35   :  { %913 = vst [vmem:[%s2027_s1 + $0x168] sm:$0xf] %v488_v8  ;;  %v930_v23 = vld [vmem:[%s2026_s0 + $0x1d8] sm:$0xff]  ;;  %919 = vst [vmem:[%s2027_s1 + $0xec] sm:$0xf] %v503_v14  ;;  %v528_v25 = vpack.c.bf16 %v1007_v3, %v928_v22  ;;  %v936_v29 = vld [vmem:[%s2026_s0 + $0x2e0] sm:$0xff]  ;;  %v543_v31 = vpack.c.bf16 %v1007_v3, %v934_v28 }
  0x36   :  { %915 = vst [vmem:[%s2027_s1 + $0x228] sm:$0xf] %v493_v9  ;;  %v932_v24 = vld [vmem:[%s2026_s0 + $0x58] sm:$0xff]  ;;  %921 = vst [vmem:[%s2027_s1 + $0x1ac] sm:$0xf] %v508_v15  ;;  %v533_v26 = vpack.c.bf16 %v1007_v3, %v930_v23  ;;  %v938_v30 = vld [vmem:[%s2026_s0 + $0x160] sm:$0xff]  ;;  %v548_v32 = vpack.c.bf16 %v1007_v3, %v936_v29 }
  0x37   :  { %v538_v27 = vpack.c.bf16 %v1007_v3, %v932_v24  ;;  %923 = vst [vmem:[%s2027_s1 + $0x6c] sm:$0xf] %v513_v19  ;;  %925 = vst [vmem:[%s2027_s1 + $0x12c] sm:$0xf] %v518_v20  ;;  %v553_v33 = vpack.c.bf16 %v1007_v3, %v938_v30  ;;  %v940_v34 = vld [vmem:[%s2026_s0 + $0x3e0] sm:$0xff]  ;;  %v952_v46 = vld [vmem:[%s2026_s0 + $0x468] sm:$0xff] }
  0x38   :  { %927 = vst [vmem:[%s2027_s1 + $0x1ec] sm:$0xf] %v523_v21  ;;  %v942_v35 = vld [vmem:[%s2026_s0 + $0x260] sm:$0xff]  ;;  %929 = vst [vmem:[%s2027_s1 + $0xac] sm:$0xf] %v528_v25  ;;  %v558_v37 = vpack.c.bf16 %v1007_v3, %v940_v34  ;;  %v954_v47 = vld [vmem:[%s2026_s0 + $0x2e8] sm:$0xff]  ;;  %v588_v49 = vpack.c.bf16 %v1007_v3, %v952_v46 }
  0x39   :  { %v944_v36 = vld [vmem:[%s2026_s0 + $0xe0] sm:$0xff]  ;;  %931 = vst [vmem:[%s2027_s1 + $0x16c] sm:$0xf] %v533_v26  ;;  %933 = vst [vmem:[%s2027_s1 + $0x22c] sm:$0xf] %v538_v27  ;;  %v563_v38 = vpack.c.bf16 %v1007_v3, %v942_v35  ;;  %v956_v48 = vld [vmem:[%s2026_s0 + $0x168] sm:$0xff]  ;;  %v593_v50 = vpack.c.bf16 %v1007_v3, %v954_v47 }
  0x3a   :  { %v568_v39 = vpack.c.bf16 %v1007_v3, %v944_v36  ;;  %v946_v40 = vld [vmem:[%s2026_s0 + $0x360] sm:$0xff]  ;;  %935 = vst [vmem:[%s2027_s1 + $0x30] sm:$0xf] %v543_v31  ;;  %937 = vst [vmem:[%s2027_s1 + $0xf0] sm:$0xf] %v548_v32  ;;  %v598_v51 = vpack.c.bf16 %v1007_v3, %v956_v48  ;;  %v958_v52 = vld [vmem:[%s2026_s0 + $0x3e8] sm:$0xff] }
  0x3b   :  { %v948_v41 = vld [vmem:[%s2026_s0 + $0x1e0] sm:$0xff]  ;;  %939 = vst [vmem:[%s2027_s1 + $0x1b0] sm:$0xf] %v553_v33  ;;  %v573_v43 = vpack.c.bf16 %v1007_v3, %v946_v40  ;;  %941 = vst [vmem:[%s2027_s1 + $0x70] sm:$0xf] %v558_v37  ;;  %v960_v53 = vld [vmem:[%s2026_s0 + $0x268] sm:$0xff]  ;;  %v603_v55 = vpack.c.bf16 %v1007_v3, %v958_v52 }
  0x3c   :  { %v950_v42 = vld [vmem:[%s2026_s0 + $0x60] sm:$0xff]  ;;  %v578_v44 = vpack.c.bf16 %v1007_v3, %v948_v41  ;;  %943 = vst [vmem:[%s2027_s1 + $0x130] sm:$0xf] %v563_v38  ;;  %945 = vst [vmem:[%s2027_s1 + $0x1f0] sm:$0xf] %v568_v39  ;;  %v962_v54 = vld [vmem:[%s2026_s0 + $0xe8] sm:$0xff]  ;;  %v608_v56 = vpack.c.bf16 %v1007_v3, %v960_v53 }
  0x3d   :  { %v583_v45 = vpack.c.bf16 %v1007_v3, %v950_v42  ;;  %947 = vst [vmem:[%s2027_s1 + $0xb0] sm:$0xf] %v573_v43  ;;  %v613_v57 = vpack.c.bf16 %v1007_v3, %v962_v54  ;;  %v964_v58 = vld [vmem:[%s2026_s0 + $0x368] sm:$0xff]  ;;  %953 = vst [vmem:[%s2027_s1 + $0x34] sm:$0xf] %v588_v49  ;;  %v970_v0 = vld [vmem:[%s2026_s0 + $0x470] sm:$0xff] }
  0x3e   :  { %949 = vst [vmem:[%s2027_s1 + $0x170] sm:$0xf] %v578_v44  ;;  %v966_v59 = vld [vmem:[%s2026_s0 + $0x1e8] sm:$0xff]  ;;  %955 = vst [vmem:[%s2027_s1 + $0xf4] sm:$0xf] %v593_v50  ;;  %v618_v61 = vpack.c.bf16 %v1007_v3, %v964_v58  ;;  %v972_v1 = vld [vmem:[%s2026_s0 + $0x2f0] sm:$0xff]  ;;  %v633_v4 = vpack.c.bf16 %v1007_v3, %v970_v0 }
  0x3f   :  { %951 = vst [vmem:[%s2027_s1 + $0x230] sm:$0xf] %v583_v45  ;;  %v968_v60 = vld [vmem:[%s2026_s0 + $0x68] sm:$0xff]  ;;  %957 = vst [vmem:[%s2027_s1 + $0x1b4] sm:$0xf] %v598_v51  ;;  %v623_v62 = vpack.c.bf16 %v1007_v3, %v966_v59  ;;  %v974_v2 = vld [vmem:[%s2026_s0 + $0x170] sm:$0xff]  ;;  %v638_v5 = vpack.c.bf16 %v1007_v3, %v972_v1 }
  0x40   :  { %v628_v63 = vpack.c.bf16 %v1007_v3, %v968_v60  ;;  %959 = vst [vmem:[%s2027_s1 + $0x74] sm:$0xf] %v603_v55  ;;  %961 = vst [vmem:[%s2027_s1 + $0x134] sm:$0xf] %v608_v56  ;;  %v643_v6 = vpack.c.bf16 %v1007_v3, %v974_v2  ;;  %v976_v7 = vld [vmem:[%s2026_s0 + $0x3f0] sm:$0xff]  ;;  %v988_v19 = vld [vmem:[%s2026_s0 + $0x478] sm:$0xff] }
  0x41   :  { %963 = vst [vmem:[%s2027_s1 + $0x1f4] sm:$0xf] %v613_v57  ;;  %v978_v8 = vld [vmem:[%s2026_s0 + $0x270] sm:$0xff]  ;;  %965 = vst [vmem:[%s2027_s1 + $0xb4] sm:$0xf] %v618_v61  ;;  %v648_v10 = vpack.c.bf16 %v1007_v3, %v976_v7  ;;  %v990_v20 = vld [vmem:[%s2026_s0 + $0x2f8] sm:$0xff]  ;;  %v678_v22 = vpack.c.bf16 %v1007_v3, %v988_v19 }
  0x42   :  { %v980_v9 = vld [vmem:[%s2026_s0 + $0xf0] sm:$0xff]  ;;  %967 = vst [vmem:[%s2027_s1 + $0x174] sm:$0xf] %v623_v62  ;;  %969 = vst [vmem:[%s2027_s1 + $0x234] sm:$0xf] %v628_v63  ;;  %v653_v11 = vpack.c.bf16 %v1007_v3, %v978_v8  ;;  %v992_v21 = vld [vmem:[%s2026_s0 + $0x178] sm:$0xff]  ;;  %v683_v23 = vpack.c.bf16 %v1007_v3, %v990_v20 }
  0x43   :  { %v658_v12 = vpack.c.bf16 %v1007_v3, %v980_v9  ;;  %v982_v13 = vld [vmem:[%s2026_s0 + $0x370] sm:$0xff]  ;;  %971 = vst [vmem:[%s2027_s1 + $0x38] sm:$0xf] %v633_v4  ;;  %973 = vst [vmem:[%s2027_s1 + $0xf8] sm:$0xf] %v638_v5  ;;  %v688_v24 = vpack.c.bf16 %v1007_v3, %v992_v21  ;;  %v994_v25 = vld [vmem:[%s2026_s0 + $0x3f8] sm:$0xff] }
  0x44   :  { %v984_v14 = vld [vmem:[%s2026_s0 + $0x1f0] sm:$0xff]  ;;  %975 = vst [vmem:[%s2027_s1 + $0x1b8] sm:$0xf] %v643_v6  ;;  %v663_v16 = vpack.c.bf16 %v1007_v3, %v982_v13  ;;  %977 = vst [vmem:[%s2027_s1 + $0x78] sm:$0xf] %v648_v10  ;;  %v996_v26 = vld [vmem:[%s2026_s0 + $0x278] sm:$0xff]  ;;  %v693_v28 = vpack.c.bf16 %v1007_v3, %v994_v25 }
  0x45   :  { %v986_v15 = vld [vmem:[%s2026_s0 + $0x70] sm:$0xff]  ;;  %v668_v17 = vpack.c.bf16 %v1007_v3, %v984_v14  ;;  %979 = vst [vmem:[%s2027_s1 + $0x138] sm:$0xf] %v653_v11  ;;  %981 = vst [vmem:[%s2027_s1 + $0x1f8] sm:$0xf] %v658_v12  ;;  %v998_v27 = vld [vmem:[%s2026_s0 + $0xf8] sm:$0xff]  ;;  %v698_v29 = vpack.c.bf16 %v1007_v3, %v996_v26 }
  0x46   :  { %v673_v18 = vpack.c.bf16 %v1007_v3, %v986_v15  ;;  %983 = vst [vmem:[%s2027_s1 + $0xb8] sm:$0xf] %v663_v16  ;;  %v703_v30 = vpack.c.bf16 %v1007_v3, %v998_v27  ;;  %v1000_v31 = vld [vmem:[%s2026_s0 + $0x378] sm:$0xff]  ;;  %989 = vst [vmem:[%s2027_s1 + $0x3c] sm:$0xf] %v678_v22 }
  0x47   :  { %985 = vst [vmem:[%s2027_s1 + $0x178] sm:$0xf] %v668_v17  ;;  %v1002_v32 = vld [vmem:[%s2026_s0 + $0x1f8] sm:$0xff]  ;;  %991 = vst [vmem:[%s2027_s1 + $0xfc] sm:$0xf] %v683_v23  ;;  %v708_v34 = vpack.c.bf16 %v1007_v3, %v1000_v31 }
  0x48   :  { %987 = vst [vmem:[%s2027_s1 + $0x238] sm:$0xf] %v673_v18  ;;  %v1004_v33 = vld [vmem:[%s2026_s0 + $0x78] sm:$0xff]  ;;  %993 = vst [vmem:[%s2027_s1 + $0x1bc] sm:$0xf] %v688_v24  ;;  %v713_v35 = vpack.c.bf16 %v1007_v3, %v1002_v32 }
  0x49   :  { %v718_v3 = vpack.c.bf16 %v1007_v3, %v1004_v33  ;;  %995 = vst [vmem:[%s2027_s1 + $0x7c] sm:$0xf] %v693_v28  ;;  %997 = vst [vmem:[%s2027_s1 + $0x13c] sm:$0xf] %v698_v29 }
  0x4a   :  { %999 = vst [vmem:[%s2027_s1 + $0x1fc] sm:$0xf] %v703_v30  ;;  %1001 = vst [vmem:[%s2027_s1 + $0xbc] sm:$0xf] %v708_v34 }
  0x4b   :  { %1003 = vst [vmem:[%s2027_s1 + $0x17c] sm:$0xf] %v713_v35  ;;  %1005 = vst [vmem:[%s2027_s1 + $0x23c] sm:$0xf] %v718_v3 }

// kernel: tile.28
= control target key start
LH: loop header
LB: loop body
LE: loop exit
PB: predicated region body
PF: predicated region fallthrough
CT: control target
= control target key end

     0   :  { %s22_s0 = inlined_call_operand.vmem [shape: f32[64], index: 0, kind: input, shape index: {}]   ;;  %s23_s1 = inlined_call_operand.vmem [shape: f32[4,64], index: 1, kind: output, shape index: {}]  }
   0x1   :  { %v4_v0 = vld [vmem:[%s22_s0] ss:$0 sm:$0xff] }
   0x2   :  { %5 = vst [vmem:[%s23_s1] sm:$0xf] %v4_v0 }

// kernel: tile.33
= control target key start
LH: loop header
LB: loop body
LE: loop exit
PB: predicated region body
PF: predicated region fallthrough
CT: control target
= control target key end

     0   :  { %s22_s0 = inlined_call_operand.vmem [shape: f32[32], index: 0, kind: input, shape index: {}]   ;;  %s23_s1 = inlined_call_operand.vmem [shape: f32[4,32], index: 1, kind: output, shape index: {}]  }
   0x1   :  { %v4_v0 = vld [vmem:[%s22_s0] ss:$0 sm:$0xff] }
   0x2   :  { %5 = vst [vmem:[%s23_s1] sm:$0xf] %v4_v0 }

// kernel: tile.38
= control target key start
LH: loop header
LB: loop body
LE: loop exit
PB: predicated region body
PF: predicated region fallthrough
CT: control target
= control target key end

     0   :  { %s22_s0 = inlined_call_operand.vmem [shape: f32[16], index: 0, kind: input, shape index: {}]   ;;  %s23_s1 = inlined_call_operand.vmem [shape: f32[4,16], index: 1, kind: output, shape index: {}]  }
   0x1   :  { %v4_v0 = vld [vmem:[%s22_s0] ss:$0 sm:$0xff] }
   0x2   :  { %5 = vst [vmem:[%s23_s1] sm:$0xf] %v4_v0 }

// kernel: tile.39
= control target key start
LH: loop header
LB: loop body
LE: loop exit
PB: predicated region body
PF: predicated region fallthrough
CT: control target
= control target key end

     0   :  { %vm7_vm0 = vcmask 130048   ;;  %s37_s8 = smov 16   ;;  %s38_s9 = smov 32   ;;  %vm13_vm1 = vcmask 523648   ;;  %vm19_vm2 = vcmask 392448   ;;  %vm25_vm3 = vcmask 261248   ;;  %s55_s0 = inlined_call_operand.vmem [shape: f32[4,16], index: 0, kind: input, shape index: {}]   ;;  %s56_s1 = inlined_call_operand.vmem [shape: f32[1,64], index: 1, kind: output, shape index: {}]  }
   0x1   :  { %v4_v0 = vld [vmem:[%s55_s0] sm:$0xf]  ;;  %s36_s0 = smov 48  }
   0x2   :  { %5 = vst [vmem:[#allocation1] sm:$0xf] %v4_v0 }
   0x9   :  { %v10_v1 = vld [vmem:[#allocation1 + $0x3] sm:$0x1]   ;;  %v22_v2 = vld [vmem:[#allocation1 + $0x1] sm:$0x1]   ;;  %v6_v3 = vld [vmem:[#allocation1] sm:$0x1]  }
   0xa   :  { %11 = vrot.lane.b32.xlu0 %v10_v1, %s36_s0  ;;  %23 = vrot.lane.b32.xlu1 %v22_v2, %s37_s8  ;;  %v16_v4 = vld [vmem:[#allocation1 + $0x2] sm:$0x1]   ;;  %8 = vst.msk [vmem:[#allocation0] sm:$0x1] %vm7_vm0, %v6_v3  }
   0xe   :  { %17 = vrot.lane.b32.xlu0 %v16_v4, %s38_s9 }
  0x7c   :  { %v12_v5 = vpop.permute.xlu0 %11   ;;  %v24_v6 = vpop.permute.xlu1 %23  }
  0x7d   :  { %14 = vst.msk [vmem:[#allocation0] sm:$0x1] %vm13_vm1, %v12_v5  }
  0x80   :  { %v18_v7 = vpop.permute.xlu0 %17  }
  0x81   :  { %20 = vst.msk [vmem:[#allocation0] sm:$0x1] %vm19_vm2, %v18_v7  }
  0x82   :  { %26 = vst.msk [vmem:[#allocation0] sm:$0x1] %vm25_vm3, %v24_v6  }
  0x89   :  { %v30_v8 = vld [vmem:[#allocation0] sm:$0x1] }
  0x8a   :  { %32 = vst [vmem:[%s56_s1] sm:$0x1] %v30_v8 }

// kernel: detector_forward.10
= control target key start
LH: loop header
LB: loop body
LE: loop exit
PB: predicated region body
PF: predicated region fallthrough
CT: control target
= control target key end

     0   :  { %v559_v0 = vmov 0   ;;  %vm206_vm0 = vcmask 523264   ;;  %vm408_vm1 = vcmask 519168   ;;  %s781_s1 = inlined_call_operand.vmem [shape: bf16[192,64], index: 1, kind: input, shape index: {}]   ;;  %s782_s0 = inlined_call_operand.vmem [shape: bf16[128,192], index: 0, kind: input, shape index: {}]   ;;  %s783_s2 = inlined_call_operand.vmem [shape: f32[1,64], index: 2, kind: input, shape index: {}]   ;;  %s784_s3 = inlined_call_operand.vmem [shape: bf16[128,64], index: 3, kind: output, shape index: {}]  }
   0x1   :  { %231 = vmatprep.subr.bf16.mxu0 %v559_v0  ;;  %498 = vmatprep.subr.bf16.mxu1 %v559_v0  ;;  %v523_v1 = vld [vmem:[%s781_s1] sm:$0xff]   ;;  %v524_v2 = vld [vmem:[%s781_s1 + $0x8] sm:$0xff]   ;;  %v525_v3 = vld [vmem:[%s781_s1 + $0x10] sm:$0xff]  }
   0x2   :  { %232 = vmatpush1.bf16.msra.mxu0 %v523_v1  ;;  %510 = vmatpush1.bf16.msra.mxu1 %v523_v1  ;;  %v526_v4 = vld [vmem:[%s781_s1 + $0x18] sm:$0xff]   ;;  %v537_v5 = vld [vmem:[%s782_s0 + $0x4] ss:$8 sps:$4 sm:$0xff]   ;;  %v529_v9 = vld [vmem:[%s781_s1 + $0x30] sm:$0xff]  }
   0x3   :  { %233 = vmatprep.subr.bf16.mxu0 %v559_v0  ;;  %499 = vmatprep.subr.bf16.mxu1 %v559_v0  ;;  %v527_v6 = vld [vmem:[%s781_s1 + $0x20] sm:$0xff]   ;;  %v528_v8 = vld [vmem:[%s781_s1 + $0x28] sm:$0xff]   ;;  %v530_v10 = vld [vmem:[%s781_s1 + $0x38] sm:$0xff]  }
   0x4   :  { %v540_v7 = vld [vmem:[%s782_s0 + $0x44] ss:$8 sps:$4 sm:$0xff]   ;;  %458 = vmatprep.mubr.msk.bf16.mxu0 %vm206_vm0, %v537_v5  ;;  %v533_v13 = vld [vmem:[%s781_s1 + $0x50] sm:$0xff]   ;;  %v534_v14 = vld [vmem:[%s781_s1 + $0x58] sm:$0xff]  }
   0x5   :  { %462 = vmatprep.mubr.msk.bf16.mxu1 %vm206_vm0, %v540_v7  ;;  %v531_v11 = vld [vmem:[%s781_s1 + $0x40] sm:$0xff]   ;;  %v532_v12 = vld [vmem:[%s781_s1 + $0x48] sm:$0xff]   ;;  %v541_v17 = vld [vmem:[%s782_s0 + $0x14] ss:$8 sps:$4 sm:$0xff]  }
   0x6   :  { %234 = vmatpush1.bf16.msra.mxu0 %v524_v2  ;;  %511 = vmatpush1.bf16.msra.mxu1 %v524_v2  ;;  %v535_v15 = vld [vmem:[%s782_s0] ss:$8 sps:$4 sm:$0xff]   ;;  %v543_v18 = vld [vmem:[%s782_s0 + $0x54] ss:$8 sps:$4 sm:$0xff]   ;;  %v545_v19 = vld [vmem:[%s782_s0 + $0x10] ss:$8 sps:$4 sm:$0xff]  }
   0x7   :  { %235 = vmatprep.subr.bf16.mxu0 %v559_v0  ;;  %500 = vmatprep.subr.bf16.mxu1 %v559_v0  ;;  %v538_v16 = vld [vmem:[%s782_s0 + $0x40] ss:$8 sps:$4 sm:$0xff]   ;;  %v546_v20 = vld [vmem:[%s782_s0 + $0x50] ss:$8 sps:$4 sm:$0xff]   ;;  %v547_v21 = vld [vmem:[%s782_s0 + $0x24] ss:$8 sps:$4 sm:$0xff]  }
   0x8   :  { %v549_v22 = vld [vmem:[%s782_s0 + $0x64] ss:$8 sps:$4 sm:$0xff]   ;;  %v551_v23 = vld [vmem:[%s782_s0 + $0x20] ss:$8 sps:$4 sm:$0xff]   ;;  %v553_v25 = vld [vmem:[%s782_s0 + $0x34] ss:$8 sps:$4 sm:$0xff]  }
   0x9   :  { %v552_v24 = vld [vmem:[%s782_s0 + $0x60] ss:$8 sps:$4 sm:$0xff]   ;;  %v555_v26 = vld [vmem:[%s782_s0 + $0x74] ss:$8 sps:$4 sm:$0xff]   ;;  %v557_v27 = vld [vmem:[%s782_s0 + $0x30] ss:$8 sps:$4 sm:$0xff]  }
   0xa   :  { %236 = vmatpush1.bf16.msra.mxu0 %v525_v3  ;;  %512 = vmatpush1.bf16.msra.mxu1 %v525_v3  ;;  %v558_v28 = vld [vmem:[%s782_s0 + $0x70] ss:$8 sps:$4 sm:$0xff]   ;;  %v699_v29 = vld [vmem:[%s783_s2] ss:$0 sm:$0xff] }
   0xb   :  { %237 = vmatprep.subr.bf16.mxu0 %v559_v0  ;;  %501 = vmatprep.subr.bf16.mxu1 %v559_v0 }
   0xe   :  { %238 = vmatpush1.bf16.msra.mxu0 %v526_v4  ;;  %513 = vmatpush1.bf16.msra.mxu1 %v526_v4 }
   0xf   :  { %239 = vmatprep.subr.bf16.mxu0 %v559_v0  ;;  %502 = vmatprep.subr.bf16.mxu1 %v559_v0 }
  0x12   :  { %240 = vmatpush1.bf16.msra.mxu0 %v527_v6  ;;  %514 = vmatpush1.bf16.msra.mxu1 %v527_v6 }
  0x13   :  { %241 = vmatprep.subr.bf16.mxu0 %v559_v0  ;;  %503 = vmatprep.subr.bf16.mxu1 %v559_v0 }
  0x16   :  { %242 = vmatpush1.bf16.msra.mxu0 %v528_v8  ;;  %515 = vmatpush1.bf16.msra.mxu1 %v528_v8 }
  0x17   :  { %243 = vmatprep.subr.bf16.mxu0 %v559_v0  ;;  %504 = vmatprep.subr.bf16.mxu1 %v559_v0 }
  0x1a   :  { %244 = vmatpush1.bf16.msra.mxu0 %v529_v9  ;;  %516 = vmatpush1.bf16.msra.mxu1 %v529_v9 }
  0x1b   :  { %245 = vmatprep.subr.bf16.mxu0 %v559_v0  ;;  %505 = vmatprep.subr.bf16.mxu1 %v559_v0 }
  0x1e   :  { %246 = vmatpush1.bf16.msra.mxu0 %v530_v10  ;;  %517 = vmatpush1.bf16.msra.mxu1 %v530_v10 }
  0x1f   :  { %247 = vmatprep.subr.bf16.mxu0 %v559_v0  ;;  %506 = vmatprep.subr.bf16.mxu1 %v559_v0 }
  0x22   :  { %248 = vmatpush1.bf16.msra.mxu0 %v531_v11  ;;  %518 = vmatpush1.bf16.msra.mxu1 %v531_v11 }
  0x23   :  { %249 = vmatprep.subr.bf16.mxu0 %v559_v0  ;;  %507 = vmatprep.subr.bf16.mxu1 %v559_v0 }
  0x26   :  { %250 = vmatpush1.bf16.msra.mxu0 %v532_v12  ;;  %519 = vmatpush1.bf16.msra.mxu1 %v532_v12 }
  0x27   :  { %251 = vmatprep.subr.bf16.mxu0 %v559_v0  ;;  %508 = vmatprep.subr.bf16.mxu1 %v559_v0 }
  0x2a   :  { %252 = vmatpush1.bf16.msra.mxu0 %v533_v13  ;;  %520 = vmatpush1.bf16.msra.mxu1 %v533_v13 }
  0x2b   :  { %253 = vmatprep.subr.bf16.mxu0 %v559_v0  ;;  %509 = vmatprep.subr.bf16.mxu1 %v559_v0 }
  0x2e   :  { %254 = vmatpush1.bf16.msra.mxu0 %v534_v14  ;;  %521 = vmatpush1.bf16.msra.mxu1 %v534_v14 }
  0x31   :  { %264 = vmatmul.mubr.bf16.vlgmr.msra.gmra.mrb[0].mxu0 %v535_v15  ;;  %296 = vmatmul.mubr.bf16.vlgmr.msra.gmra.mrb[0].mxu1 %v538_v16 }
  0x32   :  { %459 = vmatprep.mubr.msk.bf16.mxu0 %vm206_vm0, %v541_v17  ;;  %463 = vmatprep.mubr.msk.bf16.mxu1 %vm206_vm0, %v543_v18 }
  0x39   :  { %272 = vmatmul.mubr.bf16.gmra.mrb[4].mxu0 %v545_v19  ;;  %304 = vmatmul.mubr.bf16.gmra.mrb[4].mxu1 %v546_v20 }
  0x3a   :  { %460 = vmatprep.mubr.msk.bf16.mxu0 %vm206_vm0, %v547_v21  ;;  %464 = vmatprep.mubr.msk.bf16.mxu1 %vm206_vm0, %v549_v22 }
  0x41   :  { %280 = vmatmul.mubr.bf16.gmra.mrb[8].mxu0 %v551_v23  ;;  %312 = vmatmul.mubr.bf16.gmra.mrb[8].mxu1 %v552_v24 }
  0x42   :  { %461 = vmatprep.mubr.msk.bf16.mxu0 %vm206_vm0, %v553_v25  ;;  %465 = vmatprep.mubr.msk.bf16.mxu1 %vm206_vm0, %v555_v26 }
  0x49   :  { %288 = vmatmul.mubr.bf16.gmra.mrb[12].mxu0 %v557_v27  ;;  %320 = vmatmul.mubr.bf16.gmra.mrb[12].mxu1 %v558_v28 }
 0x104   :  { %v265_v30 = vpop.f32.mrb[0].mxu0  ;;  %v297_v31 = vpop.f32.mrb[0].mxu1 }
 0x105   :  { %v266_v32 = vadd.f32 %v699_v29, %v265_v30  ;;  %v298_v33 = vadd.f32 %v699_v29, %v297_v31  ;;  %v267_v34 = vpop.f32.mrb[1].mxu0  ;;  %v299_v35 = vpop.f32.mrb[1].mxu1 }
 0x106   :  { %v268_v36 = vpop.f32.mrb[2].mxu0  ;;  %v300_v37 = vpop.f32.mrb[2].mxu1 }
 0x107   :  { %v328_v38 = vmax.f32 %v266_v32, 0.0  ;;  %v336_v39 = vmax.f32 %v298_v33, 0.0  ;;  %v269_v40 = vadd.f32 %v699_v29, %v268_v36  ;;  %v301_v41 = vadd.f32 %v699_v29, %v300_v37  ;;  %v270_v42 = vpop.f32.mrb[3].mxu0  ;;  %v302_v43 = vpop.f32.mrb[3].mxu1 }
 0x109   :  { %v482_v44 = vpack.c.bf16 %v328_v38, %v328_v38  ;;  %v490_v45 = vpack.c.bf16 %v336_v39, %v336_v39  ;;  %v329_v46 = vmax.f32 %v269_v40, 0.0  ;;  %v337_v47 = vmax.f32 %v301_v41, 0.0 }
 0x10b   :  { %409 = vst.msk [vmem:[%s784_s3] sm:$0xf] %vm408_vm1, %v482_v44  ;;  %417 = vst.msk [vmem:[%s784_s3 + $0x20] sm:$0xf] %vm408_vm1, %v490_v45  ;;  %v483_v48 = vpack.c.bf16 %v329_v46, %v329_v46  ;;  %v491_v49 = vpack.c.bf16 %v337_v47, %v337_v47 }
 0x10c   :  { %v273_v50 = vpop.f32.mrb[4].mxu0  ;;  %v305_v51 = vpop.f32.mrb[4].mxu1 }
 0x10d   :  { %410 = vst.msk [vmem:[%s784_s3 + $0x4] sm:$0xf] %vm408_vm1, %v483_v48  ;;  %418 = vst.msk [vmem:[%s784_s3 + $0x24] sm:$0xf] %vm408_vm1, %v491_v49  ;;  %v274_v52 = vadd.f32 %v699_v29, %v273_v50  ;;  %v306_v53 = vadd.f32 %v699_v29, %v305_v51  ;;  %v275_v54 = vpop.f32.mrb[5].mxu0  ;;  %v307_v55 = vpop.f32.mrb[5].mxu1 }
 0x10e   :  { %v276_v56 = vpop.f32.mrb[6].mxu0  ;;  %v308_v57 = vpop.f32.mrb[6].mxu1 }
 0x10f   :  { %v330_v58 = vmax.f32 %v274_v52, 0.0  ;;  %v338_v59 = vmax.f32 %v306_v53, 0.0  ;;  %v277_v60 = vadd.f32 %v699_v29, %v276_v56  ;;  %v309_v61 = vadd.f32 %v699_v29, %v308_v57  ;;  %v278_v62 = vpop.f32.mrb[7].mxu0  ;;  %v310_v63 = vpop.f32.mrb[7].mxu1 }
 0x111   :  { %v484_v0 = vpack.c.bf16 %v330_v58, %v330_v58  ;;  %v492_v1 = vpack.c.bf16 %v338_v59, %v338_v59  ;;  %v331_v2 = vmax.f32 %v277_v60, 0.0  ;;  %v339_v3 = vmax.f32 %v309_v61, 0.0 }
 0x113   :  { %411 = vst.msk [vmem:[%s784_s3 + $0x8] sm:$0xf] %vm408_vm1, %v484_v0  ;;  %419 = vst.msk [vmem:[%s784_s3 + $0x28] sm:$0xf] %vm408_vm1, %v492_v1  ;;  %v485_v4 = vpack.c.bf16 %v331_v2, %v331_v2  ;;  %v493_v5 = vpack.c.bf16 %v339_v3, %v339_v3 }
 0x114   :  { %v281_v6 = vpop.f32.mrb[8].mxu0  ;;  %v313_v7 = vpop.f32.mrb[8].mxu1 }
 0x115   :  { %412 = vst.msk [vmem:[%s784_s3 + $0xc] sm:$0xf] %vm408_vm1, %v485_v4  ;;  %420 = vst.msk [vmem:[%s784_s3 + $0x2c] sm:$0xf] %vm408_vm1, %v493_v5  ;;  %v282_v8 = vadd.f32 %v699_v29, %v281_v6  ;;  %v314_v9 = vadd.f32 %v699_v29, %v313_v7  ;;  %v283_v10 = vpop.f32.mrb[9].mxu0  ;;  %v315_v11 = vpop.f32.mrb[9].mxu1 }
 0x116   :  { %v284_v12 = vpop.f32.mrb[10].mxu0  ;;  %v316_v13 = vpop.f32.mrb[10].mxu1 }
 0x117   :  { %v332_v14 = vmax.f32 %v282_v8, 0.0  ;;  %v340_v15 = vmax.f32 %v314_v9, 0.0  ;;  %v285_v16 = vadd.f32 %v699_v29, %v284_v12  ;;  %v317_v17 = vadd.f32 %v699_v29, %v316_v13  ;;  %v286_v18 = vpop.f32.mrb[11].mxu0  ;;  %v318_v19 = vpop.f32.mrb[11].mxu1 }
 0x119   :  { %v486_v20 = vpack.c.bf16 %v332_v14, %v332_v14  ;;  %v494_v21 = vpack.c.bf16 %v340_v15, %v340_v15  ;;  %v333_v22 = vmax.f32 %v285_v16, 0.0  ;;  %v341_v23 = vmax.f32 %v317_v17, 0.0 }
 0x11b   :  { %413 = vst.msk [vmem:[%s784_s3 + $0x10] sm:$0xf] %vm408_vm1, %v486_v20  ;;  %421 = vst.msk [vmem:[%s784_s3 + $0x30] sm:$0xf] %vm408_vm1, %v494_v21  ;;  %v487_v24 = vpack.c.bf16 %v333_v22, %v333_v22  ;;  %v495_v25 = vpack.c.bf16 %v341_v23, %v341_v23 }
 0x11c   :  { %v289_v26 = vpop.f32.mrb[12].mxu0  ;;  %v321_v27 = vpop.f32.mrb[12].mxu1 }
 0x11d   :  { %414 = vst.msk [vmem:[%s784_s3 + $0x14] sm:$0xf] %vm408_vm1, %v487_v24  ;;  %422 = vst.msk [vmem:[%s784_s3 + $0x34] sm:$0xf] %vm408_vm1, %v495_v25  ;;  %v290_v28 = vadd.f32 %v699_v29, %v289_v26  ;;  %v322_v30 = vadd.f32 %v699_v29, %v321_v27  ;;  %v291_v31 = vpop.f32.mrb[13].mxu0  ;;  %v323_v32 = vpop.f32.mrb[13].mxu1 }
 0x11e   :  { %v292_v33 = vpop.f32.mrb[14].mxu0  ;;  %v324_v34 = vpop.f32.mrb[14].mxu1 }
 0x11f   :  { %v334_v35 = vmax.f32 %v290_v28, 0.0  ;;  %v342_v36 = vmax.f32 %v322_v30, 0.0  ;;  %v293_v37 = vadd.f32 %v699_v29, %v292_v33  ;;  %v325_v38 = vadd.f32 %v699_v29, %v324_v34  ;;  %v294_v39 = vpop.f32.mrb[15].mxu0  ;;  %v326_v40 = vpop.f32.mrb[15].mxu1 }
 0x121   :  { %v488_v41 = vpack.c.bf16 %v334_v35, %v334_v35  ;;  %v496_v42 = vpack.c.bf16 %v342_v36, %v342_v36  ;;  %v335_v43 = vmax.f32 %v293_v37, 0.0  ;;  %v343_v44 = vmax.f32 %v325_v38, 0.0 }
 0x123   :  { %415 = vst.msk [vmem:[%s784_s3 + $0x18] sm:$0xf] %vm408_vm1, %v488_v41  ;;  %423 = vst.msk [vmem:[%s784_s3 + $0x38] sm:$0xf] %vm408_vm1, %v496_v42  ;;  %v489_v45 = vpack.c.bf16 %v335_v43, %v335_v43  ;;  %v497_v46 = vpack.c.bf16 %v343_v44, %v343_v44 }
 0x125   :  { %416 = vst.msk [vmem:[%s784_s3 + $0x1c] sm:$0xf] %vm408_vm1, %v489_v45  ;;  %424 = vst.msk [vmem:[%s784_s3 + $0x3c] sm:$0xf] %vm408_vm1, %v497_v46 }

// kernel: detector_forward.11
= control target key start
LH: loop header
LB: loop body
LE: loop exit
PB: predicated region body
PF: predicated region fallthrough
CT: control target
= control target key end

     0   :  { %vm62_vm0 = vcmask 1040384   ;;  %vm63_vm1 = vcmask 1041408   ;;  %v191_v1 = vmov 65535   ;;  %v192_v3 = vmov 0   ;;  %s249_s1 = inlined_call_operand.vmem [shape: bf16[19,512], index: 1, kind: input, shape index: {}]   ;;  %s250_s2 = inlined_call_operand.vmem [shape: f32[8,1], index: 2, kind: input, shape index: {}]   ;;  %s251_s0 = inlined_call_operand.vmem [shape: bf16[8,19], index: 0, kind: input, shape index: {}]   ;;  %s252_s3 = inlined_call_operand.vmem [shape: f32[8,512], index: 3, kind: output, shape index: {}]  }
   0x1   :  { %v181_v0 = vld [vmem:[%s249_s1 + $0x4] ss:$16 sps:$4 sm:$0xff]   ;;  %v64_v2 = vsel %vm62_vm0, 4294967295, %v191_v1  ;;  %110 = vmatprep.mubr.bf16.mxu0 %v192_v3  ;;  %151 = vmatprep.mubr.bf16.mxu1 %v192_v3  ;;  %v183_v4 = vld [vmem:[%s249_s1 + $0xc] ss:$16 sps:$4 sm:$0xff]   ;;  %vm58_vm2 = vcmask 154624  }
   0x2   :  { %v65_v5 = vsel %vm63_vm1, %v64_v2, 0  ;;  %180 = vset.pattern.permute.xlu0 %v192_v3  ;;  %78 = vmatprep.subr.bf16.mxu0 %v181_v0  ;;  %v185_v6 = vld [vmem:[%s249_s1] ss:$16 sps:$4 sm:$0xff]   ;;  %v186_v7 = vld [vmem:[%s249_s1 + $0x8] ss:$16 sps:$4 sm:$0xff]  }
   0x3   :  { %v20_v8 = vld [vmem:[%s249_s1 + $0x20] sm:$0x33]  ;;  %119 = vmatprep.subr.bf16.mxu1 %v183_v4  ;;  %v21_v10 = vld [vmem:[%s249_s1 + $0x28] sm:$0x33]  ;;  %79 = vmatpush1.bf16.msra.mxu0 %v185_v6 }
   0x4   :  { %v173_v9 = vcombine.high %v20_v8, %v20_v8  ;;  %v172_v11 = vcombine.low %v20_v8, %v20_v8  ;;  %v22_v12 = vld [vmem:[%s250_s2] sm:$0xff]  ;;  %120 = vmatpush1.bf16.msra.mxu1 %v186_v7  ;;  %v175_v13 = vcombine.high %v21_v10, %v21_v10  ;;  %v174_v14 = vcombine.low %v21_v10, %v21_v10 }
   0x5   :  { %25 = vperm.xlu0 %180, %v22_v12   ;;  %v15_v19 = vld [vmem:[%s251_s0] sm:$0xf] }
   0x6   :  { %v70_v15 = vand.u32 %v173_v9, %v65_v5  ;;  %v67_v16 = vand.u32 %v172_v11, %v65_v5  ;;  %v76_v17 = vand.u32 %v175_v13, %v65_v5  ;;  %v73_v18 = vand.u32 %v174_v14, %v65_v5 }
   0x8   :  { %80 = vmatprep.subr.bf16.mxu0 %v70_v15  ;;  %121 = vmatprep.subr.bf16.mxu1 %v76_v17 }
   0x9   :  { %81 = vmatpush1.bf16.msra.mxu0 %v67_v16  ;;  %122 = vmatpush1.bf16.msra.mxu1 %v73_v18 }
   0xc   :  { %176 = vmatmul.mubr.msk.bf16.vlgmr.msra.gmra.mrb[0].mxu0 %vm58_vm2, %v15_v19  ;;  %177 = vmatmul.mubr.msk.bf16.vlgmr.msra.gmra.mrb[0].mxu1 %vm58_vm2, %v15_v19 }
  0x84   :  { %v26_v20 = vpop.permute.xlu0 %25 }
  0xdf   :  { %v112_v21 = vpop.f32.mrb[0].mxu0  ;;  %v153_v23 = vpop.f32.mrb[0].mxu1 }
  0xe0   :  { %v113_v22 = vadd.f32 %v112_v21, %v26_v20  ;;  %v114_v24 = vpop.f32.mrb[1].mxu0  ;;  %v154_v25 = vadd.f32 %v153_v23, %v26_v20  ;;  %v155_v27 = vpop.f32.mrb[1].mxu1 }
  0xe1   :  { %v115_v26 = vadd.f32 %v114_v24, %v26_v20  ;;  %v116_v28 = vpop.f32.mrb[2].mxu0  ;;  %v156_v29 = vadd.f32 %v155_v27, %v26_v20  ;;  %v157_v30 = vpop.f32.mrb[2].mxu1 }
  0xe2   :  { %160 = vst [vmem:[%s252_s3] sm:$0xff] %v113_v22  ;;  %v117_v31 = vpop.f32.mrb[3].mxu0  ;;  %162 = vst [vmem:[%s252_s3 + $0x10] sm:$0xff] %v154_v25  ;;  %v158_v32 = vpop.f32.mrb[3].mxu1 }
  0xe3   :  { %161 = vst [vmem:[%s252_s3 + $0x8] sm:$0xff] %v115_v26  ;;  %163 = vst [vmem:[%s252_s3 + $0x18] sm:$0xff] %v156_v29 }

</bundles_post_ra>
